<compile_context>
chip_gen: v7x
topology: tpu7x:2x2x1
jax: 0.10.0
libtpu: 0.0.40
codegen_flags: <defaults>
</compile_context>

<pallas_src>
import functools

import jax
import jax.numpy as jnp
from jax import lax
from jax.experimental import pallas as pl
from jax.experimental.pallas import tpu as pltpu


def _round_up(x, m):
    return ((x + m - 1) // m) * m


# ----------------------------------------------------------------------------
# RoI pooling (torchvision RoIPool semantics: max over bin, empty bin -> 0)
# ----------------------------------------------------------------------------
def _round_half_away(x):
    # C round(): half away from zero (correct for negative coordinates too).
    return jnp.sign(x) * jnp.floor(jnp.abs(x) + 0.5)


def _compute_bins(bbx, spatial_scale, H, W, P):
    """Per-ROI, per-bin [start, end) boundaries, following torchvision RoIPool."""
    x1 = _round_half_away(bbx[:, 1] * spatial_scale).astype(jnp.int32)
    y1 = _round_half_away(bbx[:, 2] * spatial_scale).astype(jnp.int32)
    x2 = _round_half_away(bbx[:, 3] * spatial_scale).astype(jnp.int32)
    y2 = _round_half_away(bbx[:, 4] * spatial_scale).astype(jnp.int32)

    roi_w = jnp.maximum(x2 - x1 + 1, 1).astype(jnp.float32)
    roi_h = jnp.maximum(y2 - y1 + 1, 1).astype(jnp.float32)
    bin_w = roi_w / P
    bin_h = roi_h / P

    p = jnp.arange(P, dtype=jnp.float32)
    hstart = jnp.floor(p[None, :] * bin_h[:, None]).astype(jnp.int32) + y1[:, None]
    hend = jnp.ceil((p[None, :] + 1.0) * bin_h[:, None]).astype(jnp.int32) + y1[:, None]
    wstart = jnp.floor(p[None, :] * bin_w[:, None]).astype(jnp.int32) + x1[:, None]
    wend = jnp.ceil((p[None, :] + 1.0) * bin_w[:, None]).astype(jnp.int32) + x1[:, None]

    hstart = jnp.clip(hstart, 0, H)
    hend = jnp.clip(hend, 0, H)
    wstart = jnp.clip(wstart, 0, W)
    wend = jnp.clip(wend, 0, W)
    return hstart, hend, wstart, wend


def roi_pool_kernel(bids_ref, hs_ref, he_ref, ws_ref, we_ref,
                    feat_ref, out_ref, colmax_ref, *, P, WBIN):
    """Grid = (C blocks, ROIs).  feat_ref: (1, H, W, Ct) bf16 of this ROI's image."""
    n = pl.program_id(1)
    _, H, W, Ct = feat_ref.shape
    neg = jnp.float32(-jnp.inf)

    # Per-bin column windows (depend only on pw): hoisted out of the ph loop.
    pos = lax.broadcasted_iota(jnp.int32, (WBIN, 1), 0)
    w_start, w_mask, w_empty = [], [], []
    for pw in range(P):
        ws = ws_ref[n * P + pw]
        we = we_ref[n * P + pw]
        s = jnp.minimum(ws, W - WBIN)            # keep the static-width window in-bounds
        w_start.append(s)
        w_mask.append(jnp.logical_and(pos + s >= ws, pos + s < we))
        w_empty.append(we <= ws)

    rows = []
    for ph in range(P):
        hs = hs_ref[n * P + ph]
        he = he_ref[n * P + ph]
        h_empty = he <= hs

        # Stage 1: max over ONLY this bin's h-rows (bf16 rows upcast to f32).
        def h_body(h, cmax):
            return jnp.maximum(cmax, feat_ref[0, h].astype(jnp.float32))
        colmax_ref[...] = lax.fori_loop(hs, he, h_body,
                                        jnp.full((W, Ct), neg, jnp.float32))

        # Stage 2: per-bin max over a narrow dynamic window of the column max
        # (residual mask selects the exact [ws, we) range) instead of full W.
        for pw in range(P):
            win = colmax_ref[pl.ds(w_start[pw], WBIN), :]
            bmax = jnp.max(jnp.where(w_mask[pw], win, neg), axis=0, keepdims=True)
            empty = jnp.logical_or(h_empty, w_empty[pw])
            rows.append(jnp.where(empty, jnp.float32(0.0), bmax))

    # Single dense store of all P*P bin maxima (bin index = ph*P + pw).
    out_ref[0, :, :] = jnp.concatenate(rows, axis=0)          # (P*P, Ct)


def roi_pool(feature_nchw, bbx, spatial_scale, P):
    """RoIPool(output_size=P, spatial_scale) -> (N, P*P, C) f32, channels last.

    Pass bbx sorted by batch id so consecutive ROI grid steps reuse the same
    feature block (Pallas skips the DMA when the block index repeats).
    Assumes scaled ROI extents fit the feature map (standard detector boxes);
    a bin wider than the static window would be reduced over a truncated range.
    """
    B, C, H, W = feature_nchw.shape
    N = bbx.shape[0]
    # NCHW -> NHWC fused with an f32 -> bf16 cast (halves transpose writes and
    # the kernel's feature reads/VMEM; max pooling is order preserving).
    feat = jnp.transpose(feature_nchw, (0, 2, 3, 1)).astype(jnp.bfloat16)

    bids = bbx[:, 0].astype(jnp.int32)
    hs, he, ws, we = _compute_bins(bbx.astype(jnp.float32), spatial_scale, H, W, P)
    # Flatten to 1-D so the SMEM scalar-prefetch arrays don't pad to (x8, x128).
    hs, he, ws, we = [a.reshape(-1) for a in (hs, he, ws, we)]

    # Channel blocking bounds the per-step block (production C=512 -> Ct=256).
    if C % 256 == 0:
        Ct = 256
    elif C % 128 == 0:
        Ct = 128
    else:
        Ct = C
    # Static column-window width: ~one bin plus slack, rounded to full sublanes.
    WBIN = min(W, _round_up(pl.cdiv(W, P) + 2, 8))

    grid_spec = pltpu.PrefetchScalarGridSpec(
        num_scalar_prefetch=5,
        grid=(C // Ct, N),      # C outer, N inner: keeps sorted-ROI block reuse
        in_specs=[
            pl.BlockSpec((1, H, W, Ct),
                         lambda c, n, bids, hs, he, ws, we: (bids[n], 0, 0, c)),
        ],
        out_specs=pl.BlockSpec((1, P * P, Ct),
                               lambda c, n, bids, hs, he, ws, we: (n, 0, c)),
        scratch_shapes=[pltpu.VMEM((W, Ct), jnp.float32)],
    )
    return pl.pallas_call(
        functools.partial(roi_pool_kernel, P=P, WBIN=WBIN),
        out_shape=jax.ShapeDtypeStruct((N, P * P, C), jnp.float32),
        grid_spec=grid_spec,
        compiler_params=pltpu.CompilerParams(
            # Both axes are independent -> shard across v7x's two TensorCores.
            dimension_semantics=("parallel", "parallel")),
    )(bids, hs, he, ws, we, feat)


# ----------------------------------------------------------------------------
# Tiled linear — MXU matmul + bias, bf16 streaming weights, resident bf16 x,
# f32 accumulation.
# ----------------------------------------------------------------------------
def linear_kernel(x_ref, w_ref, b_ref, o_ref, acc_ref):
    k = pl.program_id(2)

    @pl.when(k == 0)
    def _():
        acc_ref[...] = jnp.zeros_like(acc_ref)

    # x_ref holds the full-K slab for this row tile (resident across j and k);
    # the k-th (tm, tk) chunk is selected by a cheap leading-axis index.
    acc_ref[...] += jnp.dot(x_ref[k], w_ref[...],
                            preferred_element_type=jnp.float32)

    @pl.when(k == pl.num_programs(2) - 1)
    def _():
        o_ref[...] = acc_ref[...] + b_ref[...]


def linear(x, w, b, *, tn=512, tk=2048):
    """x: (M, Din) f32/bf16, w: (Din, Dout) bf16, b: (Dout,) f32 -> (M, Dout) f32."""
    M, Din = x.shape
    Dout = w.shape[1]

    # MXU-friendly tiles, clamped for small dims; everything padded to tile.
    tm = min(128, _round_up(M, 16))          # bf16 LHS packs 16 rows per vreg
    tn = min(tn, _round_up(Dout, 128))
    tk = min(tk, _round_up(Din, 128))
    Mp, Kp, Np = _round_up(M, tm), _round_up(Din, tk), _round_up(Dout, tn)
    nk = Kp // tk

    # Cast x to bf16 once here (not every k step inside the kernel) and lay it
    # out as (nk, Mp, tk) so the kernel slices the k-chunk with a leading index.
    xp = jnp.pad(x.astype(jnp.bfloat16), ((0, Mp - M), (0, Kp - Din)))
    xp = xp.reshape(Mp, nk, tk).transpose(1, 0, 2)
    wp = jnp.pad(w.astype(jnp.bfloat16), ((0, Kp - Din), (0, Np - Dout)))
    bp = jnp.pad(b.astype(jnp.float32), ((0, Np - Dout),)).reshape(1, Np)

    out = pl.pallas_call(
        linear_kernel,
        out_shape=jax.ShapeDtypeStruct((Mp, Np), jnp.float32),
        grid_spec=pltpu.PrefetchScalarGridSpec(
            num_scalar_prefetch=0,
            grid=(Mp // tm, Np // tn, nk),
            in_specs=[
                # Full-K x slab; block index depends only on i -> loaded once per
                # row tile and reused for every (j, k) step (no re-streaming).
                pl.BlockSpec((nk, tm, tk), lambda i, j, k: (0, i, 0)),
                pl.BlockSpec((tk, tn), lambda i, j, k: (k, j)),
                pl.BlockSpec((1, tn), lambda i, j, k: (0, j)),
            ],
            out_specs=pl.BlockSpec((tm, tn), lambda i, j, k: (i, j)),
            scratch_shapes=[pltpu.VMEM((tm, tn), jnp.float32)],
        ),
        compiler_params=pltpu.CompilerParams(
            dimension_semantics=("parallel", "parallel", "arbitrary"),
            # Resident x (~2x6.4 MiB at Din=25088) + two (tk, tn) bf16 weight
            # buffers exceed v5e's 16 MiB scoped default -> raise it explicitly.
            vmem_limit_bytes=32 * 1024 * 1024),
    )(xp, wp, bp)
    return out[:M, :Dout]


# ----------------------------------------------------------------------------
# RotationBranch forward
# ----------------------------------------------------------------------------
def rotation_branch_forward(feature1, feature2, bbx, params, *, roi_shape=7,
                            fold_fc=True):
    P = roi_shape
    bbx = bbx.astype(jnp.float32)
    N = bbx.shape[0]
    C = feature1.shape[1]

    # Sort ROIs by batch id -> consecutive roi_pool grid steps hit the same
    # feature block (feature HBM traffic ~B fetches per channel pass, not ~N).
    order = jnp.argsort(bbx[:, 0])
    bbx_sorted = bbx[order]

    feat_1 = roi_pool(feature1, bbx_sorted, 1.0 / 8.0, P)    # (N, P*P, C) f32
    feat_2 = roi_pool(feature2, bbx_sorted, 1.0 / 16.0, P)   # (N, P*P, C) f32
    # Channels-last flatten (bin*C + c); the PyTorch (N, C, P, P) flatten order
    # is folded into fc1's weight rows at init.  Single hoisted bf16 cast.
    x = (feat_1 + feat_2).reshape(N, P * P * C).astype(jnp.bfloat16)

    if fold_fc:
        # fc1/fc2/fc3 have no activation between them in the reference forward,
        # so they were folded at init into one affine map (~50x less weight HBM
        # traffic per forward).
        out = linear(x, params["w_fold"], params["b_fold"])
    else:
        out = linear(x, params["w1"], params["b1"])
        out = linear(out, params["w2"], params["b2"])
        out = linear(out, params["w3"], params["b3"])

    # Undo the ROI sort on the (small) final output.
    inv = jnp.argsort(order)
    return out[inv]                                          # (N, 4*num_classes)


def init_params(key, roi_shape, feature_dim, hidden_dim, num_classes):
    """kaiming_normal_(mode='fan_out', nonlinearity='relu'), zero biases.

    Weights stored (in, out) and streamed as bf16 with f32 accumulation.  fc1's
    rows are permuted once so it consumes channels-last pooled activations
    (bin*C + c).  Because the reference forward has no activation between the
    three Linears, the folded affine map (w_fold, b_fold) is also precomputed
    (composed in f32, then cast to bf16).
    """
    P, C = roi_shape, feature_dim
    in_dim = P * P * C
    out_dim = 4 * num_classes
    k1, k2, k3 = jax.random.split(key, 3)

    def kaiming_fan_out(k, out_f, in_f):
        std = jnp.sqrt(2.0 / out_f)
        w_torch = jax.random.normal(k, (out_f, in_f), jnp.float32) * std
        return w_torch.T                                     # (in, out)

    w1_t = kaiming_fan_out(k1, hidden_dim, in_dim)           # torch row order c*P*P+bin
    w2 = kaiming_fan_out(k2, hidden_dim, hidden_dim)
    w3 = kaiming_fan_out(k3, out_dim, hidden_dim)
    b1 = jnp.zeros((hidden_dim,), jnp.float32)
    b2 = jnp.zeros((hidden_dim,), jnp.float32)
    b3 = jnp.zeros((out_dim,), jnp.float32)

    # Row bin*C + c of the permuted weight is PyTorch row c*P*P + bin.
    bins = jnp.arange(P * P)
    cs = jnp.arange(C)
    perm = (cs[None, :] * (P * P) + bins[:, None]).reshape(-1)
    w1 = w1_t[perm, :]

    w_fold = w1 @ w2 @ w3                                    # f32 compose, then bf16
    b_fold = (b1 @ w2 + b2) @ w3 + b3
    # Same fold in the original PyTorch row order (used for reference checking).
    w_fold_torch = jnp.zeros_like(w_fold).at[perm].set(w_fold)

    return {
        "w1": w1.astype(jnp.bfloat16), "b1": b1,
        "w2": w2.astype(jnp.bfloat16), "b2": b2,
        "w3": w3.astype(jnp.bfloat16), "b3": b3,
        "w_fold": w_fold.astype(jnp.bfloat16), "b_fold": b_fold,
        "w_fold_torch": w_fold_torch.astype(jnp.bfloat16),
    }


# ----------------------------------------------------------------------------
# Pure-jnp reference (same dtype path as the kernels for a tight check)
# ----------------------------------------------------------------------------
def _roi_pool_ref(feat_nchw, bbx, spatial_scale, P):
    B, C, H, W = feat_nchw.shape
    hs, he, ws, we = _compute_bins(bbx.astype(jnp.float32), spatial_scale, H, W, P)
    bids = bbx[:, 0].astype(jnp.int32)
    # Match the kernel's bf16 feature streaming (max is order preserving).
    f = feat_nchw.astype(jnp.bfloat16).astype(jnp.float32)[bids]       # (N,C,H,W)
    hh = jnp.arange(H)
    wv = jnp.arange(W)
    hmask = (hh[None, None, :] >= hs[:, :, None]) & (hh[None, None, :] < he[:, :, None])
    wmask = (wv[None, None, :] >= ws[:, :, None]) & (wv[None, None, :] < we[:, :, None])
    m = hmask[:, :, None, :, None] & wmask[:, None, :, None, :]        # (N,Ph,Pw,H,W)
    vals = jnp.where(m[:, None], f[:, :, None, None, :, :], -jnp.inf)  # (N,C,Ph,Pw,H,W)
    mx = jnp.max(vals, axis=(-2, -1))                                  # (N,C,Ph,Pw)
    empty = (he <= hs)[:, :, None] | (we <= ws)[:, None, :]            # (N,Ph,Pw)
    return jnp.where(empty[:, None], 0.0, mx)


def _forward_ref(feature1, feature2, bbx, params, P, *, fold_fc=True):
    bbx = bbx.astype(jnp.float32)
    p1 = _roi_pool_ref(feature1, bbx, 1.0 / 8.0, P)
    p2 = _roi_pool_ref(feature2, bbx, 1.0 / 16.0, P)
    s = p1 + p2                                              # (N, C, P, P)
    N = s.shape[0]
    if fold_fc:
        x = s.reshape(N, -1).astype(jnp.bfloat16)            # PyTorch flatten order
        return (jnp.dot(x, params["w_fold_torch"], preferred_element_type=jnp.float32)
                + params["b_fold"][None])
    xcl = jnp.transpose(s, (0, 2, 3, 1)).reshape(N, -1).astype(jnp.bfloat16)
    o1 = jnp.dot(xcl, params["w1"], preferred_element_type=jnp.float32) + params["b1"][None]
    o2 = jnp.dot(o1.astype(jnp.bfloat16), params["w2"],
                 preferred_element_type=jnp.float32) + params["b2"][None]
    o3 = jnp.dot(o2.astype(jnp.bfloat16), params["w3"],
                 preferred_element_type=jnp.float32) + params["b3"][None]
    return o3


if __name__ == "__main__":
    # Small synthetic shapes (production uses C=512, hidden=4096).
    B, C, H, W = 2, 64, 16, 16        # feature1: (B, C, H, W), stride-8 map
    P = 7                             # roi_shape
    hidden_dim = 128
    num_classes = 5
    N = 6                             # number of ROIs

    key = jax.random.PRNGKey(0)
    k_f1, k_f2, k_bid, k_x1, k_y1, k_wb, k_hb, k_w = jax.random.split(key, 8)

    feature1 = jax.random.normal(k_f1, (B, C, H, W), jnp.float32)
    feature2 = jax.random.normal(k_f2, (B, C, H // 2, W // 2), jnp.float32)

    # bbx: (N, 5) = (batch_id, x1, y1, x2, y2) in input-image coords (~128x128)
    img_sz = H * 8.0
    bids = jax.random.randint(k_bid, (N,), 0, B).astype(jnp.float32)
    x1 = jax.random.uniform(k_x1, (N,), minval=0.0, maxval=0.5 * img_sz)
    y1 = jax.random.uniform(k_y1, (N,), minval=0.0, maxval=0.5 * img_sz)
    wb = jax.random.uniform(k_wb, (N,), minval=16.0, maxval=0.5 * img_sz)
    hb = jax.random.uniform(k_hb, (N,), minval=16.0, maxval=0.5 * img_sz)
    x2 = jnp.minimum(x1 + wb, img_sz - 1.0)
    y2 = jnp.minimum(y1 + hb, img_sz - 1.0)
    bbx = jnp.stack([bids, x1, y1, x2, y2], axis=1)

    params = init_params(k_w, P, C, hidden_dim, num_classes)

    # Folded FC path (default / fastest).
    quaternion = rotation_branch_forward(feature1, feature2, bbx, params,
                                         roi_shape=P)
    quaternion = jax.block_until_ready(quaternion)
    assert quaternion.shape == (N, 4 * num_classes), quaternion.shape
    assert quaternion.dtype == jnp.float32
    assert bool(jnp.all(jnp.isfinite(quaternion)))

    ref_fold = _forward_ref(feature1, feature2, bbx, params, P, fold_fc=True)
    scale = float(jnp.max(jnp.abs(ref_fold))) + 1e-6
    err = float(jnp.max(jnp.abs(quaternion - ref_fold)))
    assert err <= 1e-2 * scale + 1e-3, ("folded mismatch", err, scale)

    # Unfolded path exercises the general tiled-linear kernel (three matmuls).
    q_unfold = rotation_branch_forward(feature1, feature2, bbx, params,
                                       roi_shape=P, fold_fc=False)
    q_unfold = jax.block_until_ready(q_unfold)
    ref_unfold = _forward_ref(feature1, feature2, bbx, params, P, fold_fc=False)
    scale_u = float(jnp.max(jnp.abs(ref_unfold))) + 1e-6
    err_u = float(jnp.max(jnp.abs(q_unfold - ref_unfold)))
    assert err_u <= 2e-2 * scale_u + 1e-3, ("unfolded mismatch", err_u, scale_u)

    print("KERNEL_OK")
</pallas_src>

<mosaic_0001>
module attributes {stable_mosaic.version = 11 : i64} {
  func.func @roi_pool_kernel(%arg0: i32, %arg1: i32, %arg2: memref<6xi32, #tpu.memory_space<smem>>, %arg3: memref<42xi32, #tpu.memory_space<smem>>, %arg4: memref<42xi32, #tpu.memory_space<smem>>, %arg5: memref<42xi32, #tpu.memory_space<smem>>, %arg6: memref<42xi32, #tpu.memory_space<smem>>, %arg7: memref<1x16x16x64xbf16, #tpu.memory_space<vmem>>, %arg8: memref<1x49x64xf32, #tpu.memory_space<vmem>>, %arg9: memref<16x64xf32, #tpu.memory_space<vmem>>) attributes {dimension_semantics = [#tpu.dimension_semantics<parallel>, #tpu.dimension_semantics<parallel>], iteration_bounds = array<i64: 1, 6>, scalar_prefetch = 5 : i64, scratch_operands = 1 : i64, tpu.core_type = #tpu.core_type<tc>, window_params = [{transform_indices = @transform_0, window_bounds = array<i64: 1, 16, 16, 64>}, {transform_indices = @transform_1, window_bounds = array<i64: 1, 49, 64>}]} {
    %0 = tpu.iota {dimensions = array<i32: 0>} : vector<8x1xi32>
    %c7_i32 = arith.constant 7 : i32
    %1 = arith.muli %arg1, %c7_i32 : i32
    %c0_i32 = arith.constant 0 : i32
    %2 = arith.addi %1, %c0_i32 : i32
    %3 = arith.index_cast %2 : i32 to index
    %4 = memref.load %arg5[%3] : memref<42xi32, #tpu.memory_space<smem>>
    %c7_i32_0 = arith.constant 7 : i32
    %5 = arith.muli %arg1, %c7_i32_0 : i32
    %c0_i32_1 = arith.constant 0 : i32
    %6 = arith.addi %5, %c0_i32_1 : i32
    %7 = arith.index_cast %6 : i32 to index
    %8 = memref.load %arg6[%7] : memref<42xi32, #tpu.memory_space<smem>>
    %c8_i32 = arith.constant 8 : i32
    %9 = arith.minsi %4, %c8_i32 : i32
    %10 = vector.broadcast %9 : i32 to vector<8x1xi32>
    %11 = arith.addi %0, %10 : vector<8x1xi32>
    %12 = vector.broadcast %4 : i32 to vector<8x1xi32>
    %13 = arith.cmpi sge, %11, %12 : vector<8x1xi32>
    %14 = vector.broadcast %9 : i32 to vector<8x1xi32>
    %15 = arith.addi %0, %14 : vector<8x1xi32>
    %16 = vector.broadcast %8 : i32 to vector<8x1xi32>
    %17 = arith.cmpi slt, %15, %16 : vector<8x1xi32>
    %18 = arith.andi %13, %17 : vector<8x1xi1>
    %19 = arith.cmpi sle, %8, %4 : i32
    %c7_i32_2 = arith.constant 7 : i32
    %20 = arith.muli %arg1, %c7_i32_2 : i32
    %c1_i32 = arith.constant 1 : i32
    %21 = arith.addi %20, %c1_i32 : i32
    %22 = arith.index_cast %21 : i32 to index
    %23 = memref.load %arg5[%22] : memref<42xi32, #tpu.memory_space<smem>>
    %c7_i32_3 = arith.constant 7 : i32
    %24 = arith.muli %arg1, %c7_i32_3 : i32
    %c1_i32_4 = arith.constant 1 : i32
    %25 = arith.addi %24, %c1_i32_4 : i32
    %26 = arith.index_cast %25 : i32 to index
    %27 = memref.load %arg6[%26] : memref<42xi32, #tpu.memory_space<smem>>
    %c8_i32_5 = arith.constant 8 : i32
    %28 = arith.minsi %23, %c8_i32_5 : i32
    %29 = vector.broadcast %28 : i32 to vector<8x1xi32>
    %30 = arith.addi %0, %29 : vector<8x1xi32>
    %31 = vector.broadcast %23 : i32 to vector<8x1xi32>
    %32 = arith.cmpi sge, %30, %31 : vector<8x1xi32>
    %33 = vector.broadcast %28 : i32 to vector<8x1xi32>
    %34 = arith.addi %0, %33 : vector<8x1xi32>
    %35 = vector.broadcast %27 : i32 to vector<8x1xi32>
    %36 = arith.cmpi slt, %34, %35 : vector<8x1xi32>
    %37 = arith.andi %32, %36 : vector<8x1xi1>
    %38 = arith.cmpi sle, %27, %23 : i32
    %c7_i32_6 = arith.constant 7 : i32
    %39 = arith.muli %arg1, %c7_i32_6 : i32
    %c2_i32 = arith.constant 2 : i32
    %40 = arith.addi %39, %c2_i32 : i32
    %41 = arith.index_cast %40 : i32 to index
    %42 = memref.load %arg5[%41] : memref<42xi32, #tpu.memory_space<smem>>
    %c7_i32_7 = arith.constant 7 : i32
    %43 = arith.muli %arg1, %c7_i32_7 : i32
    %c2_i32_8 = arith.constant 2 : i32
    %44 = arith.addi %43, %c2_i32_8 : i32
    %45 = arith.index_cast %44 : i32 to index
    %46 = memref.load %arg6[%45] : memref<42xi32, #tpu.memory_space<smem>>
    %c8_i32_9 = arith.constant 8 : i32
    %47 = arith.minsi %42, %c8_i32_9 : i32
    %48 = vector.broadcast %47 : i32 to vector<8x1xi32>
    %49 = arith.addi %0, %48 : vector<8x1xi32>
    %50 = vector.broadcast %42 : i32 to vector<8x1xi32>
    %51 = arith.cmpi sge, %49, %50 : vector<8x1xi32>
    %52 = vector.broadcast %47 : i32 to vector<8x1xi32>
    %53 = arith.addi %0, %52 : vector<8x1xi32>
    %54 = vector.broadcast %46 : i32 to vector<8x1xi32>
    %55 = arith.cmpi slt, %53, %54 : vector<8x1xi32>
    %56 = arith.andi %51, %55 : vector<8x1xi1>
    %57 = arith.cmpi sle, %46, %42 : i32
    %c7_i32_10 = arith.constant 7 : i32
    %58 = arith.muli %arg1, %c7_i32_10 : i32
    %c3_i32 = arith.constant 3 : i32
    %59 = arith.addi %58, %c3_i32 : i32
    %60 = arith.index_cast %59 : i32 to index
    %61 = memref.load %arg5[%60] : memref<42xi32, #tpu.memory_space<smem>>
    %c7_i32_11 = arith.constant 7 : i32
    %62 = arith.muli %arg1, %c7_i32_11 : i32
    %c3_i32_12 = arith.constant 3 : i32
    %63 = arith.addi %62, %c3_i32_12 : i32
    %64 = arith.index_cast %63 : i32 to index
    %65 = memref.load %arg6[%64] : memref<42xi32, #tpu.memory_space<smem>>
    %c8_i32_13 = arith.constant 8 : i32
    %66 = arith.minsi %61, %c8_i32_13 : i32
    %67 = vector.broadcast %66 : i32 to vector<8x1xi32>
    %68 = arith.addi %0, %67 : vector<8x1xi32>
    %69 = vector.broadcast %61 : i32 to vector<8x1xi32>
    %70 = arith.cmpi sge, %68, %69 : vector<8x1xi32>
    %71 = vector.broadcast %66 : i32 to vector<8x1xi32>
    %72 = arith.addi %0, %71 : vector<8x1xi32>
    %73 = vector.broadcast %65 : i32 to vector<8x1xi32>
    %74 = arith.cmpi slt, %72, %73 : vector<8x1xi32>
    %75 = arith.andi %70, %74 : vector<8x1xi1>
    %76 = arith.cmpi sle, %65, %61 : i32
    %c7_i32_14 = arith.constant 7 : i32
    %77 = arith.muli %arg1, %c7_i32_14 : i32
    %c4_i32 = arith.constant 4 : i32
    %78 = arith.addi %77, %c4_i32 : i32
    %79 = arith.index_cast %78 : i32 to index
    %80 = memref.load %arg5[%79] : memref<42xi32, #tpu.memory_space<smem>>
    %c7_i32_15 = arith.constant 7 : i32
    %81 = arith.muli %arg1, %c7_i32_15 : i32
    %c4_i32_16 = arith.constant 4 : i32
    %82 = arith.addi %81, %c4_i32_16 : i32
    %83 = arith.index_cast %82 : i32 to index
    %84 = memref.load %arg6[%83] : memref<42xi32, #tpu.memory_space<smem>>
    %c8_i32_17 = arith.constant 8 : i32
    %85 = arith.minsi %80, %c8_i32_17 : i32
    %86 = vector.broadcast %85 : i32 to vector<8x1xi32>
    %87 = arith.addi %0, %86 : vector<8x1xi32>
    %88 = vector.broadcast %80 : i32 to vector<8x1xi32>
    %89 = arith.cmpi sge, %87, %88 : vector<8x1xi32>
    %90 = vector.broadcast %85 : i32 to vector<8x1xi32>
    %91 = arith.addi %0, %90 : vector<8x1xi32>
    %92 = vector.broadcast %84 : i32 to vector<8x1xi32>
    %93 = arith.cmpi slt, %91, %92 : vector<8x1xi32>
    %94 = arith.andi %89, %93 : vector<8x1xi1>
    %95 = arith.cmpi sle, %84, %80 : i32
    %c7_i32_18 = arith.constant 7 : i32
    %96 = arith.muli %arg1, %c7_i32_18 : i32
    %c5_i32 = arith.constant 5 : i32
    %97 = arith.addi %96, %c5_i32 : i32
    %98 = arith.index_cast %97 : i32 to index
    %99 = memref.load %arg5[%98] : memref<42xi32, #tpu.memory_space<smem>>
    %c7_i32_19 = arith.constant 7 : i32
    %100 = arith.muli %arg1, %c7_i32_19 : i32
    %c5_i32_20 = arith.constant 5 : i32
    %101 = arith.addi %100, %c5_i32_20 : i32
    %102 = arith.index_cast %101 : i32 to index
    %103 = memref.load %arg6[%102] : memref<42xi32, #tpu.memory_space<smem>>
    %c8_i32_21 = arith.constant 8 : i32
    %104 = arith.minsi %99, %c8_i32_21 : i32
    %105 = vector.broadcast %104 : i32 to vector<8x1xi32>
    %106 = arith.addi %0, %105 : vector<8x1xi32>
    %107 = vector.broadcast %99 : i32 to vector<8x1xi32>
    %108 = arith.cmpi sge, %106, %107 : vector<8x1xi32>
    %109 = vector.broadcast %104 : i32 to vector<8x1xi32>
    %110 = arith.addi %0, %109 : vector<8x1xi32>
    %111 = vector.broadcast %103 : i32 to vector<8x1xi32>
    %112 = arith.cmpi slt, %110, %111 : vector<8x1xi32>
    %113 = arith.andi %108, %112 : vector<8x1xi1>
    %114 = arith.cmpi sle, %103, %99 : i32
    %c7_i32_22 = arith.constant 7 : i32
    %115 = arith.muli %arg1, %c7_i32_22 : i32
    %c6_i32 = arith.constant 6 : i32
    %116 = arith.addi %115, %c6_i32 : i32
    %117 = arith.index_cast %116 : i32 to index
    %118 = memref.load %arg5[%117] : memref<42xi32, #tpu.memory_space<smem>>
    %c7_i32_23 = arith.constant 7 : i32
    %119 = arith.muli %arg1, %c7_i32_23 : i32
    %c6_i32_24 = arith.constant 6 : i32
    %120 = arith.addi %119, %c6_i32_24 : i32
    %121 = arith.index_cast %120 : i32 to index
    %122 = memref.load %arg6[%121] : memref<42xi32, #tpu.memory_space<smem>>
    %c8_i32_25 = arith.constant 8 : i32
    %123 = arith.minsi %118, %c8_i32_25 : i32
    %124 = vector.broadcast %123 : i32 to vector<8x1xi32>
    %125 = arith.addi %0, %124 : vector<8x1xi32>
    %126 = vector.broadcast %118 : i32 to vector<8x1xi32>
    %127 = arith.cmpi sge, %125, %126 : vector<8x1xi32>
    %128 = vector.broadcast %123 : i32 to vector<8x1xi32>
    %129 = arith.addi %0, %128 : vector<8x1xi32>
    %130 = vector.broadcast %122 : i32 to vector<8x1xi32>
    %131 = arith.cmpi slt, %129, %130 : vector<8x1xi32>
    %132 = arith.andi %127, %131 : vector<8x1xi1>
    %133 = arith.cmpi sle, %122, %118 : i32
    %c7_i32_26 = arith.constant 7 : i32
    %134 = arith.muli %arg1, %c7_i32_26 : i32
    %c0_i32_27 = arith.constant 0 : i32
    %135 = arith.addi %134, %c0_i32_27 : i32
    %136 = arith.index_cast %135 : i32 to index
    %137 = memref.load %arg3[%136] : memref<42xi32, #tpu.memory_space<smem>>
    %c7_i32_28 = arith.constant 7 : i32
    %138 = arith.muli %arg1, %c7_i32_28 : i32
    %c0_i32_29 = arith.constant 0 : i32
    %139 = arith.addi %138, %c0_i32_29 : i32
    %140 = arith.index_cast %139 : i32 to index
    %141 = memref.load %arg4[%140] : memref<42xi32, #tpu.memory_space<smem>>
    %142 = arith.cmpi sle, %141, %137 : i32
    %cst = arith.constant 0xFF800000 : f32
    %143 = vector.broadcast %cst : f32 to vector<16x64xf32>
    %144 = arith.subi %141, %137 : i32
    %145 = arith.addi %137, %144 : i32
    %c1_i32_30 = arith.constant 1 : i32
    %146 = scf.for %arg10 = %137 to %145 step %c1_i32_30 iter_args(%arg11 = %143) -> (vector<16x64xf32>)  : i32 {
      %c0_279 = arith.constant 0 : index
      %778 = arith.index_cast %arg10 : i32 to index
      %c0_280 = arith.constant 0 : index
      %c0_281 = arith.constant 0 : index
      %779 = vector.load %arg7[%c0_279, %778, %c0_280, %c0_281] : memref<1x16x16x64xbf16, #tpu.memory_space<vmem>>, vector<1x1x16x64xbf16>
      %780 = vector.shape_cast %779 : vector<1x1x16x64xbf16> to vector<16x64xbf16>
      %781 = arith.extf %780 : vector<16x64xbf16> to vector<16x64xf32>
      %782 = arith.maximumf %arg11, %781 : vector<16x64xf32>
      scf.yield %782 : vector<16x64xf32>
    }
    %c0 = arith.constant 0 : index
    %c0_31 = arith.constant 0 : index
    %147 = vector.load %arg9[%c0, %c0_31] : memref<16x64xf32, #tpu.memory_space<vmem>>, vector<16x64xf32>
    tpu.vector_store %arg9[%c0, %c0_31], %146 {strides = array<i32>} : memref<16x64xf32, #tpu.memory_space<vmem>>, vector<16x64xf32>,
    %148 = arith.index_cast %9 : i32 to index
    %c0_32 = arith.constant 0 : index
    %149 = vector.load %arg9[%148, %c0_32] : memref<16x64xf32, #tpu.memory_space<vmem>>, vector<8x64xf32>
    %cst_33 = arith.constant 0xFF800000 : f32
    %150 = vector.shape_cast %18 : vector<8x1xi1> to vector<8x1xi1>
    %151 = vector.broadcast %150 : vector<8x1xi1> to vector<8x64xi1>
    %152 = vector.broadcast %cst_33 : f32 to vector<8x64xf32>
    %153 = arith.select %151, %149, %152 : vector<8x64xi1>, vector<8x64xf32>
    %cst_34 = arith.constant dense<0xFF800000> : vector<64xf32>
    %154 = vector.multi_reduction <maximumf>, %153, %cst_34 [0] : vector<8x64xf32> to vector<64xf32>
    %155 = vector.shape_cast %154 : vector<64xf32> to vector<1x64xf32>
    %156 = arith.ori %142, %19 : i1
    %cst_35 = arith.constant 0.000000e+00 : f32
    %157 = vector.broadcast %cst_35 : f32 to vector<1x64xf32>
    %158 = arith.select %156, %157, %155 : vector<1x64xf32>
    %159 = arith.index_cast %28 : i32 to index
    %c0_36 = arith.constant 0 : index
    %160 = vector.load %arg9[%159, %c0_36] : memref<16x64xf32, #tpu.memory_space<vmem>>, vector<8x64xf32>
    %cst_37 = arith.constant 0xFF800000 : f32
    %161 = vector.shape_cast %37 : vector<8x1xi1> to vector<8x1xi1>
    %162 = vector.broadcast %161 : vector<8x1xi1> to vector<8x64xi1>
    %163 = vector.broadcast %cst_37 : f32 to vector<8x64xf32>
    %164 = arith.select %162, %160, %163 : vector<8x64xi1>, vector<8x64xf32>
    %cst_38 = arith.constant dense<0xFF800000> : vector<64xf32>
    %165 = vector.multi_reduction <maximumf>, %164, %cst_38 [0] : vector<8x64xf32> to vector<64xf32>
    %166 = vector.shape_cast %165 : vector<64xf32> to vector<1x64xf32>
    %167 = arith.ori %142, %38 : i1
    %cst_39 = arith.constant 0.000000e+00 : f32
    %168 = vector.broadcast %cst_39 : f32 to vector<1x64xf32>
    %169 = arith.select %167, %168, %166 : vector<1x64xf32>
    %170 = arith.index_cast %47 : i32 to index
    %c0_40 = arith.constant 0 : index
    %171 = vector.load %arg9[%170, %c0_40] : memref<16x64xf32, #tpu.memory_space<vmem>>, vector<8x64xf32>
    %cst_41 = arith.constant 0xFF800000 : f32
    %172 = vector.shape_cast %56 : vector<8x1xi1> to vector<8x1xi1>
    %173 = vector.broadcast %172 : vector<8x1xi1> to vector<8x64xi1>
    %174 = vector.broadcast %cst_41 : f32 to vector<8x64xf32>
    %175 = arith.select %173, %171, %174 : vector<8x64xi1>, vector<8x64xf32>
    %cst_42 = arith.constant dense<0xFF800000> : vector<64xf32>
    %176 = vector.multi_reduction <maximumf>, %175, %cst_42 [0] : vector<8x64xf32> to vector<64xf32>
    %177 = vector.shape_cast %176 : vector<64xf32> to vector<1x64xf32>
    %178 = arith.ori %142, %57 : i1
    %cst_43 = arith.constant 0.000000e+00 : f32
    %179 = vector.broadcast %cst_43 : f32 to vector<1x64xf32>
    %180 = arith.select %178, %179, %177 : vector<1x64xf32>
    %181 = arith.index_cast %66 : i32 to index
    %c0_44 = arith.constant 0 : index
    %182 = vector.load %arg9[%181, %c0_44] : memref<16x64xf32, #tpu.memory_space<vmem>>, vector<8x64xf32>
    %cst_45 = arith.constant 0xFF800000 : f32
    %183 = vector.shape_cast %75 : vector<8x1xi1> to vector<8x1xi1>
    %184 = vector.broadcast %183 : vector<8x1xi1> to vector<8x64xi1>
    %185 = vector.broadcast %cst_45 : f32 to vector<8x64xf32>
    %186 = arith.select %184, %182, %185 : vector<8x64xi1>, vector<8x64xf32>
    %cst_46 = arith.constant dense<0xFF800000> : vector<64xf32>
    %187 = vector.multi_reduction <maximumf>, %186, %cst_46 [0] : vector<8x64xf32> to vector<64xf32>
    %188 = vector.shape_cast %187 : vector<64xf32> to vector<1x64xf32>
    %189 = arith.ori %142, %76 : i1
    %cst_47 = arith.constant 0.000000e+00 : f32
    %190 = vector.broadcast %cst_47 : f32 to vector<1x64xf32>
    %191 = arith.select %189, %190, %188 : vector<1x64xf32>
    %192 = arith.index_cast %85 : i32 to index
    %c0_48 = arith.constant 0 : index
    %193 = vector.load %arg9[%192, %c0_48] : memref<16x64xf32, #tpu.memory_space<vmem>>, vector<8x64xf32>
    %cst_49 = arith.constant 0xFF800000 : f32
    %194 = vector.shape_cast %94 : vector<8x1xi1> to vector<8x1xi1>
    %195 = vector.broadcast %194 : vector<8x1xi1> to vector<8x64xi1>
    %196 = vector.broadcast %cst_49 : f32 to vector<8x64xf32>
    %197 = arith.select %195, %193, %196 : vector<8x64xi1>, vector<8x64xf32>
    %cst_50 = arith.constant dense<0xFF800000> : vector<64xf32>
    %198 = vector.multi_reduction <maximumf>, %197, %cst_50 [0] : vector<8x64xf32> to vector<64xf32>
    %199 = vector.shape_cast %198 : vector<64xf32> to vector<1x64xf32>
    %200 = arith.ori %142, %95 : i1
    %cst_51 = arith.constant 0.000000e+00 : f32
    %201 = vector.broadcast %cst_51 : f32 to vector<1x64xf32>
    %202 = arith.select %200, %201, %199 : vector<1x64xf32>
    %203 = arith.index_cast %104 : i32 to index
    %c0_52 = arith.constant 0 : index
    %204 = vector.load %arg9[%203, %c0_52] : memref<16x64xf32, #tpu.memory_space<vmem>>, vector<8x64xf32>
    %cst_53 = arith.constant 0xFF800000 : f32
    %205 = vector.shape_cast %113 : vector<8x1xi1> to vector<8x1xi1>
    %206 = vector.broadcast %205 : vector<8x1xi1> to vector<8x64xi1>
    %207 = vector.broadcast %cst_53 : f32 to vector<8x64xf32>
    %208 = arith.select %206, %204, %207 : vector<8x64xi1>, vector<8x64xf32>
    %cst_54 = arith.constant dense<0xFF800000> : vector<64xf32>
    %209 = vector.multi_reduction <maximumf>, %208, %cst_54 [0] : vector<8x64xf32> to vector<64xf32>
    %210 = vector.shape_cast %209 : vector<64xf32> to vector<1x64xf32>
    %211 = arith.ori %142, %114 : i1
    %cst_55 = arith.constant 0.000000e+00 : f32
    %212 = vector.broadcast %cst_55 : f32 to vector<1x64xf32>
    %213 = arith.select %211, %212, %210 : vector<1x64xf32>
    %214 = arith.index_cast %123 : i32 to index
    %c0_56 = arith.constant 0 : index
    %215 = vector.load %arg9[%214, %c0_56] : memref<16x64xf32, #tpu.memory_space<vmem>>, vector<8x64xf32>
    %cst_57 = arith.constant 0xFF800000 : f32
    %216 = vector.shape_cast %132 : vector<8x1xi1> to vector<8x1xi1>
    %217 = vector.broadcast %216 : vector<8x1xi1> to vector<8x64xi1>
    %218 = vector.broadcast %cst_57 : f32 to vector<8x64xf32>
    %219 = arith.select %217, %215, %218 : vector<8x64xi1>, vector<8x64xf32>
    %cst_58 = arith.constant dense<0xFF800000> : vector<64xf32>
    %220 = vector.multi_reduction <maximumf>, %219, %cst_58 [0] : vector<8x64xf32> to vector<64xf32>
    %221 = vector.shape_cast %220 : vector<64xf32> to vector<1x64xf32>
    %222 = arith.ori %142, %133 : i1
    %cst_59 = arith.constant 0.000000e+00 : f32
    %223 = vector.broadcast %cst_59 : f32 to vector<1x64xf32>
    %224 = arith.select %222, %223, %221 : vector<1x64xf32>
    %c7_i32_60 = arith.constant 7 : i32
    %225 = arith.muli %arg1, %c7_i32_60 : i32
    %c1_i32_61 = arith.constant 1 : i32
    %226 = arith.addi %225, %c1_i32_61 : i32
    %227 = arith.index_cast %226 : i32 to index
    %228 = memref.load %arg3[%227] : memref<42xi32, #tpu.memory_space<smem>>
    %c7_i32_62 = arith.constant 7 : i32
    %229 = arith.muli %arg1, %c7_i32_62 : i32
    %c1_i32_63 = arith.constant 1 : i32
    %230 = arith.addi %229, %c1_i32_63 : i32
    %231 = arith.index_cast %230 : i32 to index
    %232 = memref.load %arg4[%231] : memref<42xi32, #tpu.memory_space<smem>>
    %233 = arith.cmpi sle, %232, %228 : i32
    %cst_64 = arith.constant 0xFF800000 : f32
    %234 = vector.broadcast %cst_64 : f32 to vector<16x64xf32>
    %235 = arith.subi %232, %228 : i32
    %236 = arith.addi %228, %235 : i32
    %c1_i32_65 = arith.constant 1 : i32
    %237 = scf.for %arg10 = %228 to %236 step %c1_i32_65 iter_args(%arg11 = %234) -> (vector<16x64xf32>)  : i32 {
      %c0_279 = arith.constant 0 : index
      %778 = arith.index_cast %arg10 : i32 to index
      %c0_280 = arith.constant 0 : index
      %c0_281 = arith.constant 0 : index
      %779 = vector.load %arg7[%c0_279, %778, %c0_280, %c0_281] : memref<1x16x16x64xbf16, #tpu.memory_space<vmem>>, vector<1x1x16x64xbf16>
      %780 = vector.shape_cast %779 : vector<1x1x16x64xbf16> to vector<16x64xbf16>
      %781 = arith.extf %780 : vector<16x64xbf16> to vector<16x64xf32>
      %782 = arith.maximumf %arg11, %781 : vector<16x64xf32>
      scf.yield %782 : vector<16x64xf32>
    }
    %c0_66 = arith.constant 0 : index
    %c0_67 = arith.constant 0 : index
    %238 = vector.load %arg9[%c0_66, %c0_67] : memref<16x64xf32, #tpu.memory_space<vmem>>, vector<16x64xf32>
    tpu.vector_store %arg9[%c0_66, %c0_67], %237 {strides = array<i32>} : memref<16x64xf32, #tpu.memory_space<vmem>>, vector<16x64xf32>,
    %239 = arith.index_cast %9 : i32 to index
    %c0_68 = arith.constant 0 : index
    %240 = vector.load %arg9[%239, %c0_68] : memref<16x64xf32, #tpu.memory_space<vmem>>, vector<8x64xf32>
    %cst_69 = arith.constant 0xFF800000 : f32
    %241 = vector.shape_cast %18 : vector<8x1xi1> to vector<8x1xi1>
    %242 = vector.broadcast %241 : vector<8x1xi1> to vector<8x64xi1>
    %243 = vector.broadcast %cst_69 : f32 to vector<8x64xf32>
    %244 = arith.select %242, %240, %243 : vector<8x64xi1>, vector<8x64xf32>
    %cst_70 = arith.constant dense<0xFF800000> : vector<64xf32>
    %245 = vector.multi_reduction <maximumf>, %244, %cst_70 [0] : vector<8x64xf32> to vector<64xf32>
    %246 = vector.shape_cast %245 : vector<64xf32> to vector<1x64xf32>
    %247 = arith.ori %233, %19 : i1
    %cst_71 = arith.constant 0.000000e+00 : f32
    %248 = vector.broadcast %cst_71 : f32 to vector<1x64xf32>
    %249 = arith.select %247, %248, %246 : vector<1x64xf32>
    %250 = arith.index_cast %28 : i32 to index
    %c0_72 = arith.constant 0 : index
    %251 = vector.load %arg9[%250, %c0_72] : memref<16x64xf32, #tpu.memory_space<vmem>>, vector<8x64xf32>
    %cst_73 = arith.constant 0xFF800000 : f32
    %252 = vector.shape_cast %37 : vector<8x1xi1> to vector<8x1xi1>
    %253 = vector.broadcast %252 : vector<8x1xi1> to vector<8x64xi1>
    %254 = vector.broadcast %cst_73 : f32 to vector<8x64xf32>
    %255 = arith.select %253, %251, %254 : vector<8x64xi1>, vector<8x64xf32>
    %cst_74 = arith.constant dense<0xFF800000> : vector<64xf32>
    %256 = vector.multi_reduction <maximumf>, %255, %cst_74 [0] : vector<8x64xf32> to vector<64xf32>
    %257 = vector.shape_cast %256 : vector<64xf32> to vector<1x64xf32>
    %258 = arith.ori %233, %38 : i1
    %cst_75 = arith.constant 0.000000e+00 : f32
    %259 = vector.broadcast %cst_75 : f32 to vector<1x64xf32>
    %260 = arith.select %258, %259, %257 : vector<1x64xf32>
    %261 = arith.index_cast %47 : i32 to index
    %c0_76 = arith.constant 0 : index
    %262 = vector.load %arg9[%261, %c0_76] : memref<16x64xf32, #tpu.memory_space<vmem>>, vector<8x64xf32>
    %cst_77 = arith.constant 0xFF800000 : f32
    %263 = vector.shape_cast %56 : vector<8x1xi1> to vector<8x1xi1>
    %264 = vector.broadcast %263 : vector<8x1xi1> to vector<8x64xi1>
    %265 = vector.broadcast %cst_77 : f32 to vector<8x64xf32>
    %266 = arith.select %264, %262, %265 : vector<8x64xi1>, vector<8x64xf32>
    %cst_78 = arith.constant dense<0xFF800000> : vector<64xf32>
    %267 = vector.multi_reduction <maximumf>, %266, %cst_78 [0] : vector<8x64xf32> to vector<64xf32>
    %268 = vector.shape_cast %267 : vector<64xf32> to vector<1x64xf32>
    %269 = arith.ori %233, %57 : i1
    %cst_79 = arith.constant 0.000000e+00 : f32
    %270 = vector.broadcast %cst_79 : f32 to vector<1x64xf32>
    %271 = arith.select %269, %270, %268 : vector<1x64xf32>
    %272 = arith.index_cast %66 : i32 to index
    %c0_80 = arith.constant 0 : index
    %273 = vector.load %arg9[%272, %c0_80] : memref<16x64xf32, #tpu.memory_space<vmem>>, vector<8x64xf32>
    %cst_81 = arith.constant 0xFF800000 : f32
    %274 = vector.shape_cast %75 : vector<8x1xi1> to vector<8x1xi1>
    %275 = vector.broadcast %274 : vector<8x1xi1> to vector<8x64xi1>
    %276 = vector.broadcast %cst_81 : f32 to vector<8x64xf32>
    %277 = arith.select %275, %273, %276 : vector<8x64xi1>, vector<8x64xf32>
    %cst_82 = arith.constant dense<0xFF800000> : vector<64xf32>
    %278 = vector.multi_reduction <maximumf>, %277, %cst_82 [0] : vector<8x64xf32> to vector<64xf32>
    %279 = vector.shape_cast %278 : vector<64xf32> to vector<1x64xf32>
    %280 = arith.ori %233, %76 : i1
    %cst_83 = arith.constant 0.000000e+00 : f32
    %281 = vector.broadcast %cst_83 : f32 to vector<1x64xf32>
    %282 = arith.select %280, %281, %279 : vector<1x64xf32>
    %283 = arith.index_cast %85 : i32 to index
    %c0_84 = arith.constant 0 : index
    %284 = vector.load %arg9[%283, %c0_84] : memref<16x64xf32, #tpu.memory_space<vmem>>, vector<8x64xf32>
    %cst_85 = arith.constant 0xFF800000 : f32
    %285 = vector.shape_cast %94 : vector<8x1xi1> to vector<8x1xi1>
    %286 = vector.broadcast %285 : vector<8x1xi1> to vector<8x64xi1>
    %287 = vector.broadcast %cst_85 : f32 to vector<8x64xf32>
    %288 = arith.select %286, %284, %287 : vector<8x64xi1>, vector<8x64xf32>
    %cst_86 = arith.constant dense<0xFF800000> : vector<64xf32>
    %289 = vector.multi_reduction <maximumf>, %288, %cst_86 [0] : vector<8x64xf32> to vector<64xf32>
    %290 = vector.shape_cast %289 : vector<64xf32> to vector<1x64xf32>
    %291 = arith.ori %233, %95 : i1
    %cst_87 = arith.constant 0.000000e+00 : f32
    %292 = vector.broadcast %cst_87 : f32 to vector<1x64xf32>
    %293 = arith.select %291, %292, %290 : vector<1x64xf32>
    %294 = arith.index_cast %104 : i32 to index
    %c0_88 = arith.constant 0 : index
    %295 = vector.load %arg9[%294, %c0_88] : memref<16x64xf32, #tpu.memory_space<vmem>>, vector<8x64xf32>
    %cst_89 = arith.constant 0xFF800000 : f32
    %296 = vector.shape_cast %113 : vector<8x1xi1> to vector<8x1xi1>
    %297 = vector.broadcast %296 : vector<8x1xi1> to vector<8x64xi1>
    %298 = vector.broadcast %cst_89 : f32 to vector<8x64xf32>
    %299 = arith.select %297, %295, %298 : vector<8x64xi1>, vector<8x64xf32>
    %cst_90 = arith.constant dense<0xFF800000> : vector<64xf32>
    %300 = vector.multi_reduction <maximumf>, %299, %cst_90 [0] : vector<8x64xf32> to vector<64xf32>
    %301 = vector.shape_cast %300 : vector<64xf32> to vector<1x64xf32>
    %302 = arith.ori %233, %114 : i1
    %cst_91 = arith.constant 0.000000e+00 : f32
    %303 = vector.broadcast %cst_91 : f32 to vector<1x64xf32>
    %304 = arith.select %302, %303, %301 : vector<1x64xf32>
    %305 = arith.index_cast %123 : i32 to index
    %c0_92 = arith.constant 0 : index
    %306 = vector.load %arg9[%305, %c0_92] : memref<16x64xf32, #tpu.memory_space<vmem>>, vector<8x64xf32>
    %cst_93 = arith.constant 0xFF800000 : f32
    %307 = vector.shape_cast %132 : vector<8x1xi1> to vector<8x1xi1>
    %308 = vector.broadcast %307 : vector<8x1xi1> to vector<8x64xi1>
    %309 = vector.broadcast %cst_93 : f32 to vector<8x64xf32>
    %310 = arith.select %308, %306, %309 : vector<8x64xi1>, vector<8x64xf32>
    %cst_94 = arith.constant dense<0xFF800000> : vector<64xf32>
    %311 = vector.multi_reduction <maximumf>, %310, %cst_94 [0] : vector<8x64xf32> to vector<64xf32>
    %312 = vector.shape_cast %311 : vector<64xf32> to vector<1x64xf32>
    %313 = arith.ori %233, %133 : i1
    %cst_95 = arith.constant 0.000000e+00 : f32
    %314 = vector.broadcast %cst_95 : f32 to vector<1x64xf32>
    %315 = arith.select %313, %314, %312 : vector<1x64xf32>
    %c7_i32_96 = arith.constant 7 : i32
    %316 = arith.muli %arg1, %c7_i32_96 : i32
    %c2_i32_97 = arith.constant 2 : i32
    %317 = arith.addi %316, %c2_i32_97 : i32
    %318 = arith.index_cast %317 : i32 to index
    %319 = memref.load %arg3[%318] : memref<42xi32, #tpu.memory_space<smem>>
    %c7_i32_98 = arith.constant 7 : i32
    %320 = arith.muli %arg1, %c7_i32_98 : i32
    %c2_i32_99 = arith.constant 2 : i32
    %321 = arith.addi %320, %c2_i32_99 : i32
    %322 = arith.index_cast %321 : i32 to index
    %323 = memref.load %arg4[%322] : memref<42xi32, #tpu.memory_space<smem>>
    %324 = arith.cmpi sle, %323, %319 : i32
    %cst_100 = arith.constant 0xFF800000 : f32
    %325 = vector.broadcast %cst_100 : f32 to vector<16x64xf32>
    %326 = arith.subi %323, %319 : i32
    %327 = arith.addi %319, %326 : i32
    %c1_i32_101 = arith.constant 1 : i32
    %328 = scf.for %arg10 = %319 to %327 step %c1_i32_101 iter_args(%arg11 = %325) -> (vector<16x64xf32>)  : i32 {
      %c0_279 = arith.constant 0 : index
      %778 = arith.index_cast %arg10 : i32 to index
      %c0_280 = arith.constant 0 : index
      %c0_281 = arith.constant 0 : index
      %779 = vector.load %arg7[%c0_279, %778, %c0_280, %c0_281] : memref<1x16x16x64xbf16, #tpu.memory_space<vmem>>, vector<1x1x16x64xbf16>
      %780 = vector.shape_cast %779 : vector<1x1x16x64xbf16> to vector<16x64xbf16>
      %781 = arith.extf %780 : vector<16x64xbf16> to vector<16x64xf32>
      %782 = arith.maximumf %arg11, %781 : vector<16x64xf32>
      scf.yield %782 : vector<16x64xf32>
    }
    %c0_102 = arith.constant 0 : index
    %c0_103 = arith.constant 0 : index
    %329 = vector.load %arg9[%c0_102, %c0_103] : memref<16x64xf32, #tpu.memory_space<vmem>>, vector<16x64xf32>
    tpu.vector_store %arg9[%c0_102, %c0_103], %328 {strides = array<i32>} : memref<16x64xf32, #tpu.memory_space<vmem>>, vector<16x64xf32>,
    %330 = arith.index_cast %9 : i32 to index
    %c0_104 = arith.constant 0 : index
    %331 = vector.load %arg9[%330, %c0_104] : memref<16x64xf32, #tpu.memory_space<vmem>>, vector<8x64xf32>
    %cst_105 = arith.constant 0xFF800000 : f32
    %332 = vector.shape_cast %18 : vector<8x1xi1> to vector<8x1xi1>
    %333 = vector.broadcast %332 : vector<8x1xi1> to vector<8x64xi1>
    %334 = vector.broadcast %cst_105 : f32 to vector<8x64xf32>
    %335 = arith.select %333, %331, %334 : vector<8x64xi1>, vector<8x64xf32>
    %cst_106 = arith.constant dense<0xFF800000> : vector<64xf32>
    %336 = vector.multi_reduction <maximumf>, %335, %cst_106 [0] : vector<8x64xf32> to vector<64xf32>
    %337 = vector.shape_cast %336 : vector<64xf32> to vector<1x64xf32>
    %338 = arith.ori %324, %19 : i1
    %cst_107 = arith.constant 0.000000e+00 : f32
    %339 = vector.broadcast %cst_107 : f32 to vector<1x64xf32>
    %340 = arith.select %338, %339, %337 : vector<1x64xf32>
    %341 = arith.index_cast %28 : i32 to index
    %c0_108 = arith.constant 0 : index
    %342 = vector.load %arg9[%341, %c0_108] : memref<16x64xf32, #tpu.memory_space<vmem>>, vector<8x64xf32>
    %cst_109 = arith.constant 0xFF800000 : f32
    %343 = vector.shape_cast %37 : vector<8x1xi1> to vector<8x1xi1>
    %344 = vector.broadcast %343 : vector<8x1xi1> to vector<8x64xi1>
    %345 = vector.broadcast %cst_109 : f32 to vector<8x64xf32>
    %346 = arith.select %344, %342, %345 : vector<8x64xi1>, vector<8x64xf32>
    %cst_110 = arith.constant dense<0xFF800000> : vector<64xf32>
    %347 = vector.multi_reduction <maximumf>, %346, %cst_110 [0] : vector<8x64xf32> to vector<64xf32>
    %348 = vector.shape_cast %347 : vector<64xf32> to vector<1x64xf32>
    %349 = arith.ori %324, %38 : i1
    %cst_111 = arith.constant 0.000000e+00 : f32
    %350 = vector.broadcast %cst_111 : f32 to vector<1x64xf32>
    %351 = arith.select %349, %350, %348 : vector<1x64xf32>
    %352 = arith.index_cast %47 : i32 to index
    %c0_112 = arith.constant 0 : index
    %353 = vector.load %arg9[%352, %c0_112] : memref<16x64xf32, #tpu.memory_space<vmem>>, vector<8x64xf32>
    %cst_113 = arith.constant 0xFF800000 : f32
    %354 = vector.shape_cast %56 : vector<8x1xi1> to vector<8x1xi1>
    %355 = vector.broadcast %354 : vector<8x1xi1> to vector<8x64xi1>
    %356 = vector.broadcast %cst_113 : f32 to vector<8x64xf32>
    %357 = arith.select %355, %353, %356 : vector<8x64xi1>, vector<8x64xf32>
    %cst_114 = arith.constant dense<0xFF800000> : vector<64xf32>
    %358 = vector.multi_reduction <maximumf>, %357, %cst_114 [0] : vector<8x64xf32> to vector<64xf32>
    %359 = vector.shape_cast %358 : vector<64xf32> to vector<1x64xf32>
    %360 = arith.ori %324, %57 : i1
    %cst_115 = arith.constant 0.000000e+00 : f32
    %361 = vector.broadcast %cst_115 : f32 to vector<1x64xf32>
    %362 = arith.select %360, %361, %359 : vector<1x64xf32>
    %363 = arith.index_cast %66 : i32 to index
    %c0_116 = arith.constant 0 : index
    %364 = vector.load %arg9[%363, %c0_116] : memref<16x64xf32, #tpu.memory_space<vmem>>, vector<8x64xf32>
    %cst_117 = arith.constant 0xFF800000 : f32
    %365 = vector.shape_cast %75 : vector<8x1xi1> to vector<8x1xi1>
    %366 = vector.broadcast %365 : vector<8x1xi1> to vector<8x64xi1>
    %367 = vector.broadcast %cst_117 : f32 to vector<8x64xf32>
    %368 = arith.select %366, %364, %367 : vector<8x64xi1>, vector<8x64xf32>
    %cst_118 = arith.constant dense<0xFF800000> : vector<64xf32>
    %369 = vector.multi_reduction <maximumf>, %368, %cst_118 [0] : vector<8x64xf32> to vector<64xf32>
    %370 = vector.shape_cast %369 : vector<64xf32> to vector<1x64xf32>
    %371 = arith.ori %324, %76 : i1
    %cst_119 = arith.constant 0.000000e+00 : f32
    %372 = vector.broadcast %cst_119 : f32 to vector<1x64xf32>
    %373 = arith.select %371, %372, %370 : vector<1x64xf32>
    %374 = arith.index_cast %85 : i32 to index
    %c0_120 = arith.constant 0 : index
    %375 = vector.load %arg9[%374, %c0_120] : memref<16x64xf32, #tpu.memory_space<vmem>>, vector<8x64xf32>
    %cst_121 = arith.constant 0xFF800000 : f32
    %376 = vector.shape_cast %94 : vector<8x1xi1> to vector<8x1xi1>
    %377 = vector.broadcast %376 : vector<8x1xi1> to vector<8x64xi1>
    %378 = vector.broadcast %cst_121 : f32 to vector<8x64xf32>
    %379 = arith.select %377, %375, %378 : vector<8x64xi1>, vector<8x64xf32>
    %cst_122 = arith.constant dense<0xFF800000> : vector<64xf32>
    %380 = vector.multi_reduction <maximumf>, %379, %cst_122 [0] : vector<8x64xf32> to vector<64xf32>
    %381 = vector.shape_cast %380 : vector<64xf32> to vector<1x64xf32>
    %382 = arith.ori %324, %95 : i1
    %cst_123 = arith.constant 0.000000e+00 : f32
    %383 = vector.broadcast %cst_123 : f32 to vector<1x64xf32>
    %384 = arith.select %382, %383, %381 : vector<1x64xf32>
    %385 = arith.index_cast %104 : i32 to index
    %c0_124 = arith.constant 0 : index
    %386 = vector.load %arg9[%385, %c0_124] : memref<16x64xf32, #tpu.memory_space<vmem>>, vector<8x64xf32>
    %cst_125 = arith.constant 0xFF800000 : f32
    %387 = vector.shape_cast %113 : vector<8x1xi1> to vector<8x1xi1>
    %388 = vector.broadcast %387 : vector<8x1xi1> to vector<8x64xi1>
    %389 = vector.broadcast %cst_125 : f32 to vector<8x64xf32>
    %390 = arith.select %388, %386, %389 : vector<8x64xi1>, vector<8x64xf32>
    %cst_126 = arith.constant dense<0xFF800000> : vector<64xf32>
    %391 = vector.multi_reduction <maximumf>, %390, %cst_126 [0] : vector<8x64xf32> to vector<64xf32>
    %392 = vector.shape_cast %391 : vector<64xf32> to vector<1x64xf32>
    %393 = arith.ori %324, %114 : i1
    %cst_127 = arith.constant 0.000000e+00 : f32
    %394 = vector.broadcast %cst_127 : f32 to vector<1x64xf32>
    %395 = arith.select %393, %394, %392 : vector<1x64xf32>
    %396 = arith.index_cast %123 : i32 to index
    %c0_128 = arith.constant 0 : index
    %397 = vector.load %arg9[%396, %c0_128] : memref<16x64xf32, #tpu.memory_space<vmem>>, vector<8x64xf32>
    %cst_129 = arith.constant 0xFF800000 : f32
    %398 = vector.shape_cast %132 : vector<8x1xi1> to vector<8x1xi1>
    %399 = vector.broadcast %398 : vector<8x1xi1> to vector<8x64xi1>
    %400 = vector.broadcast %cst_129 : f32 to vector<8x64xf32>
    %401 = arith.select %399, %397, %400 : vector<8x64xi1>, vector<8x64xf32>
    %cst_130 = arith.constant dense<0xFF800000> : vector<64xf32>
    %402 = vector.multi_reduction <maximumf>, %401, %cst_130 [0] : vector<8x64xf32> to vector<64xf32>
    %403 = vector.shape_cast %402 : vector<64xf32> to vector<1x64xf32>
    %404 = arith.ori %324, %133 : i1
    %cst_131 = arith.constant 0.000000e+00 : f32
    %405 = vector.broadcast %cst_131 : f32 to vector<1x64xf32>
    %406 = arith.select %404, %405, %403 : vector<1x64xf32>
    %c7_i32_132 = arith.constant 7 : i32
    %407 = arith.muli %arg1, %c7_i32_132 : i32
    %c3_i32_133 = arith.constant 3 : i32
    %408 = arith.addi %407, %c3_i32_133 : i32
    %409 = arith.index_cast %408 : i32 to index
    %410 = memref.load %arg3[%409] : memref<42xi32, #tpu.memory_space<smem>>
    %c7_i32_134 = arith.constant 7 : i32
    %411 = arith.muli %arg1, %c7_i32_134 : i32
    %c3_i32_135 = arith.constant 3 : i32
    %412 = arith.addi %411, %c3_i32_135 : i32
    %413 = arith.index_cast %412 : i32 to index
    %414 = memref.load %arg4[%413] : memref<42xi32, #tpu.memory_space<smem>>
    %415 = arith.cmpi sle, %414, %410 : i32
    %cst_136 = arith.constant 0xFF800000 : f32
    %416 = vector.broadcast %cst_136 : f32 to vector<16x64xf32>
    %417 = arith.subi %414, %410 : i32
    %418 = arith.addi %410, %417 : i32
    %c1_i32_137 = arith.constant 1 : i32
    %419 = scf.for %arg10 = %410 to %418 step %c1_i32_137 iter_args(%arg11 = %416) -> (vector<16x64xf32>)  : i32 {
      %c0_279 = arith.constant 0 : index
      %778 = arith.index_cast %arg10 : i32 to index
      %c0_280 = arith.constant 0 : index
      %c0_281 = arith.constant 0 : index
      %779 = vector.load %arg7[%c0_279, %778, %c0_280, %c0_281] : memref<1x16x16x64xbf16, #tpu.memory_space<vmem>>, vector<1x1x16x64xbf16>
      %780 = vector.shape_cast %779 : vector<1x1x16x64xbf16> to vector<16x64xbf16>
      %781 = arith.extf %780 : vector<16x64xbf16> to vector<16x64xf32>
      %782 = arith.maximumf %arg11, %781 : vector<16x64xf32>
      scf.yield %782 : vector<16x64xf32>
    }
    %c0_138 = arith.constant 0 : index
    %c0_139 = arith.constant 0 : index
    %420 = vector.load %arg9[%c0_138, %c0_139] : memref<16x64xf32, #tpu.memory_space<vmem>>, vector<16x64xf32>
    tpu.vector_store %arg9[%c0_138, %c0_139], %419 {strides = array<i32>} : memref<16x64xf32, #tpu.memory_space<vmem>>, vector<16x64xf32>,
    %421 = arith.index_cast %9 : i32 to index
    %c0_140 = arith.constant 0 : index
    %422 = vector.load %arg9[%421, %c0_140] : memref<16x64xf32, #tpu.memory_space<vmem>>, vector<8x64xf32>
    %cst_141 = arith.constant 0xFF800000 : f32
    %423 = vector.shape_cast %18 : vector<8x1xi1> to vector<8x1xi1>
    %424 = vector.broadcast %423 : vector<8x1xi1> to vector<8x64xi1>
    %425 = vector.broadcast %cst_141 : f32 to vector<8x64xf32>
    %426 = arith.select %424, %422, %425 : vector<8x64xi1>, vector<8x64xf32>
    %cst_142 = arith.constant dense<0xFF800000> : vector<64xf32>
    %427 = vector.multi_reduction <maximumf>, %426, %cst_142 [0] : vector<8x64xf32> to vector<64xf32>
    %428 = vector.shape_cast %427 : vector<64xf32> to vector<1x64xf32>
    %429 = arith.ori %415, %19 : i1
    %cst_143 = arith.constant 0.000000e+00 : f32
    %430 = vector.broadcast %cst_143 : f32 to vector<1x64xf32>
    %431 = arith.select %429, %430, %428 : vector<1x64xf32>
    %432 = arith.index_cast %28 : i32 to index
    %c0_144 = arith.constant 0 : index
    %433 = vector.load %arg9[%432, %c0_144] : memref<16x64xf32, #tpu.memory_space<vmem>>, vector<8x64xf32>
    %cst_145 = arith.constant 0xFF800000 : f32
    %434 = vector.shape_cast %37 : vector<8x1xi1> to vector<8x1xi1>
    %435 = vector.broadcast %434 : vector<8x1xi1> to vector<8x64xi1>
    %436 = vector.broadcast %cst_145 : f32 to vector<8x64xf32>
    %437 = arith.select %435, %433, %436 : vector<8x64xi1>, vector<8x64xf32>
    %cst_146 = arith.constant dense<0xFF800000> : vector<64xf32>
    %438 = vector.multi_reduction <maximumf>, %437, %cst_146 [0] : vector<8x64xf32> to vector<64xf32>
    %439 = vector.shape_cast %438 : vector<64xf32> to vector<1x64xf32>
    %440 = arith.ori %415, %38 : i1
    %cst_147 = arith.constant 0.000000e+00 : f32
    %441 = vector.broadcast %cst_147 : f32 to vector<1x64xf32>
    %442 = arith.select %440, %441, %439 : vector<1x64xf32>
    %443 = arith.index_cast %47 : i32 to index
    %c0_148 = arith.constant 0 : index
    %444 = vector.load %arg9[%443, %c0_148] : memref<16x64xf32, #tpu.memory_space<vmem>>, vector<8x64xf32>
    %cst_149 = arith.constant 0xFF800000 : f32
    %445 = vector.shape_cast %56 : vector<8x1xi1> to vector<8x1xi1>
    %446 = vector.broadcast %445 : vector<8x1xi1> to vector<8x64xi1>
    %447 = vector.broadcast %cst_149 : f32 to vector<8x64xf32>
    %448 = arith.select %446, %444, %447 : vector<8x64xi1>, vector<8x64xf32>
    %cst_150 = arith.constant dense<0xFF800000> : vector<64xf32>
    %449 = vector.multi_reduction <maximumf>, %448, %cst_150 [0] : vector<8x64xf32> to vector<64xf32>
    %450 = vector.shape_cast %449 : vector<64xf32> to vector<1x64xf32>
    %451 = arith.ori %415, %57 : i1
    %cst_151 = arith.constant 0.000000e+00 : f32
    %452 = vector.broadcast %cst_151 : f32 to vector<1x64xf32>
    %453 = arith.select %451, %452, %450 : vector<1x64xf32>
    %454 = arith.index_cast %66 : i32 to index
    %c0_152 = arith.constant 0 : index
    %455 = vector.load %arg9[%454, %c0_152] : memref<16x64xf32, #tpu.memory_space<vmem>>, vector<8x64xf32>
    %cst_153 = arith.constant 0xFF800000 : f32
    %456 = vector.shape_cast %75 : vector<8x1xi1> to vector<8x1xi1>
    %457 = vector.broadcast %456 : vector<8x1xi1> to vector<8x64xi1>
    %458 = vector.broadcast %cst_153 : f32 to vector<8x64xf32>
    %459 = arith.select %457, %455, %458 : vector<8x64xi1>, vector<8x64xf32>
    %cst_154 = arith.constant dense<0xFF800000> : vector<64xf32>
    %460 = vector.multi_reduction <maximumf>, %459, %cst_154 [0] : vector<8x64xf32> to vector<64xf32>
    %461 = vector.shape_cast %460 : vector<64xf32> to vector<1x64xf32>
    %462 = arith.ori %415, %76 : i1
    %cst_155 = arith.constant 0.000000e+00 : f32
    %463 = vector.broadcast %cst_155 : f32 to vector<1x64xf32>
    %464 = arith.select %462, %463, %461 : vector<1x64xf32>
    %465 = arith.index_cast %85 : i32 to index
    %c0_156 = arith.constant 0 : index
    %466 = vector.load %arg9[%465, %c0_156] : memref<16x64xf32, #tpu.memory_space<vmem>>, vector<8x64xf32>
    %cst_157 = arith.constant 0xFF800000 : f32
    %467 = vector.shape_cast %94 : vector<8x1xi1> to vector<8x1xi1>
    %468 = vector.broadcast %467 : vector<8x1xi1> to vector<8x64xi1>
    %469 = vector.broadcast %cst_157 : f32 to vector<8x64xf32>
    %470 = arith.select %468, %466, %469 : vector<8x64xi1>, vector<8x64xf32>
    %cst_158 = arith.constant dense<0xFF800000> : vector<64xf32>
    %471 = vector.multi_reduction <maximumf>, %470, %cst_158 [0] : vector<8x64xf32> to vector<64xf32>
    %472 = vector.shape_cast %471 : vector<64xf32> to vector<1x64xf32>
    %473 = arith.ori %415, %95 : i1
    %cst_159 = arith.constant 0.000000e+00 : f32
    %474 = vector.broadcast %cst_159 : f32 to vector<1x64xf32>
    %475 = arith.select %473, %474, %472 : vector<1x64xf32>
    %476 = arith.index_cast %104 : i32 to index
    %c0_160 = arith.constant 0 : index
    %477 = vector.load %arg9[%476, %c0_160] : memref<16x64xf32, #tpu.memory_space<vmem>>, vector<8x64xf32>
    %cst_161 = arith.constant 0xFF800000 : f32
    %478 = vector.shape_cast %113 : vector<8x1xi1> to vector<8x1xi1>
    %479 = vector.broadcast %478 : vector<8x1xi1> to vector<8x64xi1>
    %480 = vector.broadcast %cst_161 : f32 to vector<8x64xf32>
    %481 = arith.select %479, %477, %480 : vector<8x64xi1>, vector<8x64xf32>
    %cst_162 = arith.constant dense<0xFF800000> : vector<64xf32>
    %482 = vector.multi_reduction <maximumf>, %481, %cst_162 [0] : vector<8x64xf32> to vector<64xf32>
    %483 = vector.shape_cast %482 : vector<64xf32> to vector<1x64xf32>
    %484 = arith.ori %415, %114 : i1
    %cst_163 = arith.constant 0.000000e+00 : f32
    %485 = vector.broadcast %cst_163 : f32 to vector<1x64xf32>
    %486 = arith.select %484, %485, %483 : vector<1x64xf32>
    %487 = arith.index_cast %123 : i32 to index
    %c0_164 = arith.constant 0 : index
    %488 = vector.load %arg9[%487, %c0_164] : memref<16x64xf32, #tpu.memory_space<vmem>>, vector<8x64xf32>
    %cst_165 = arith.constant 0xFF800000 : f32
    %489 = vector.shape_cast %132 : vector<8x1xi1> to vector<8x1xi1>
    %490 = vector.broadcast %489 : vector<8x1xi1> to vector<8x64xi1>
    %491 = vector.broadcast %cst_165 : f32 to vector<8x64xf32>
    %492 = arith.select %490, %488, %491 : vector<8x64xi1>, vector<8x64xf32>
    %cst_166 = arith.constant dense<0xFF800000> : vector<64xf32>
    %493 = vector.multi_reduction <maximumf>, %492, %cst_166 [0] : vector<8x64xf32> to vector<64xf32>
    %494 = vector.shape_cast %493 : vector<64xf32> to vector<1x64xf32>
    %495 = arith.ori %415, %133 : i1
    %cst_167 = arith.constant 0.000000e+00 : f32
    %496 = vector.broadcast %cst_167 : f32 to vector<1x64xf32>
    %497 = arith.select %495, %496, %494 : vector<1x64xf32>
    %c7_i32_168 = arith.constant 7 : i32
    %498 = arith.muli %arg1, %c7_i32_168 : i32
    %c4_i32_169 = arith.constant 4 : i32
    %499 = arith.addi %498, %c4_i32_169 : i32
    %500 = arith.index_cast %499 : i32 to index
    %501 = memref.load %arg3[%500] : memref<42xi32, #tpu.memory_space<smem>>
    %c7_i32_170 = arith.constant 7 : i32
    %502 = arith.muli %arg1, %c7_i32_170 : i32
    %c4_i32_171 = arith.constant 4 : i32
    %503 = arith.addi %502, %c4_i32_171 : i32
    %504 = arith.index_cast %503 : i32 to index
    %505 = memref.load %arg4[%504] : memref<42xi32, #tpu.memory_space<smem>>
    %506 = arith.cmpi sle, %505, %501 : i32
    %cst_172 = arith.constant 0xFF800000 : f32
    %507 = vector.broadcast %cst_172 : f32 to vector<16x64xf32>
    %508 = arith.subi %505, %501 : i32
    %509 = arith.addi %501, %508 : i32
    %c1_i32_173 = arith.constant 1 : i32
    %510 = scf.for %arg10 = %501 to %509 step %c1_i32_173 iter_args(%arg11 = %507) -> (vector<16x64xf32>)  : i32 {
      %c0_279 = arith.constant 0 : index
      %778 = arith.index_cast %arg10 : i32 to index
      %c0_280 = arith.constant 0 : index
      %c0_281 = arith.constant 0 : index
      %779 = vector.load %arg7[%c0_279, %778, %c0_280, %c0_281] : memref<1x16x16x64xbf16, #tpu.memory_space<vmem>>, vector<1x1x16x64xbf16>
      %780 = vector.shape_cast %779 : vector<1x1x16x64xbf16> to vector<16x64xbf16>
      %781 = arith.extf %780 : vector<16x64xbf16> to vector<16x64xf32>
      %782 = arith.maximumf %arg11, %781 : vector<16x64xf32>
      scf.yield %782 : vector<16x64xf32>
    }
    %c0_174 = arith.constant 0 : index
    %c0_175 = arith.constant 0 : index
    %511 = vector.load %arg9[%c0_174, %c0_175] : memref<16x64xf32, #tpu.memory_space<vmem>>, vector<16x64xf32>
    tpu.vector_store %arg9[%c0_174, %c0_175], %510 {strides = array<i32>} : memref<16x64xf32, #tpu.memory_space<vmem>>, vector<16x64xf32>,
    %512 = arith.index_cast %9 : i32 to index
    %c0_176 = arith.constant 0 : index
    %513 = vector.load %arg9[%512, %c0_176] : memref<16x64xf32, #tpu.memory_space<vmem>>, vector<8x64xf32>
    %cst_177 = arith.constant 0xFF800000 : f32
    %514 = vector.shape_cast %18 : vector<8x1xi1> to vector<8x1xi1>
    %515 = vector.broadcast %514 : vector<8x1xi1> to vector<8x64xi1>
    %516 = vector.broadcast %cst_177 : f32 to vector<8x64xf32>
    %517 = arith.select %515, %513, %516 : vector<8x64xi1>, vector<8x64xf32>
    %cst_178 = arith.constant dense<0xFF800000> : vector<64xf32>
    %518 = vector.multi_reduction <maximumf>, %517, %cst_178 [0] : vector<8x64xf32> to vector<64xf32>
    %519 = vector.shape_cast %518 : vector<64xf32> to vector<1x64xf32>
    %520 = arith.ori %506, %19 : i1
    %cst_179 = arith.constant 0.000000e+00 : f32
    %521 = vector.broadcast %cst_179 : f32 to vector<1x64xf32>
    %522 = arith.select %520, %521, %519 : vector<1x64xf32>
    %523 = arith.index_cast %28 : i32 to index
    %c0_180 = arith.constant 0 : index
    %524 = vector.load %arg9[%523, %c0_180] : memref<16x64xf32, #tpu.memory_space<vmem>>, vector<8x64xf32>
    %cst_181 = arith.constant 0xFF800000 : f32
    %525 = vector.shape_cast %37 : vector<8x1xi1> to vector<8x1xi1>
    %526 = vector.broadcast %525 : vector<8x1xi1> to vector<8x64xi1>
    %527 = vector.broadcast %cst_181 : f32 to vector<8x64xf32>
    %528 = arith.select %526, %524, %527 : vector<8x64xi1>, vector<8x64xf32>
    %cst_182 = arith.constant dense<0xFF800000> : vector<64xf32>
    %529 = vector.multi_reduction <maximumf>, %528, %cst_182 [0] : vector<8x64xf32> to vector<64xf32>
    %530 = vector.shape_cast %529 : vector<64xf32> to vector<1x64xf32>
    %531 = arith.ori %506, %38 : i1
    %cst_183 = arith.constant 0.000000e+00 : f32
    %532 = vector.broadcast %cst_183 : f32 to vector<1x64xf32>
    %533 = arith.select %531, %532, %530 : vector<1x64xf32>
    %534 = arith.index_cast %47 : i32 to index
    %c0_184 = arith.constant 0 : index
    %535 = vector.load %arg9[%534, %c0_184] : memref<16x64xf32, #tpu.memory_space<vmem>>, vector<8x64xf32>
    %cst_185 = arith.constant 0xFF800000 : f32
    %536 = vector.shape_cast %56 : vector<8x1xi1> to vector<8x1xi1>
    %537 = vector.broadcast %536 : vector<8x1xi1> to vector<8x64xi1>
    %538 = vector.broadcast %cst_185 : f32 to vector<8x64xf32>
    %539 = arith.select %537, %535, %538 : vector<8x64xi1>, vector<8x64xf32>
    %cst_186 = arith.constant dense<0xFF800000> : vector<64xf32>
    %540 = vector.multi_reduction <maximumf>, %539, %cst_186 [0] : vector<8x64xf32> to vector<64xf32>
    %541 = vector.shape_cast %540 : vector<64xf32> to vector<1x64xf32>
    %542 = arith.ori %506, %57 : i1
    %cst_187 = arith.constant 0.000000e+00 : f32
    %543 = vector.broadcast %cst_187 : f32 to vector<1x64xf32>
    %544 = arith.select %542, %543, %541 : vector<1x64xf32>
    %545 = arith.index_cast %66 : i32 to index
    %c0_188 = arith.constant 0 : index
    %546 = vector.load %arg9[%545, %c0_188] : memref<16x64xf32, #tpu.memory_space<vmem>>, vector<8x64xf32>
    %cst_189 = arith.constant 0xFF800000 : f32
    %547 = vector.shape_cast %75 : vector<8x1xi1> to vector<8x1xi1>
    %548 = vector.broadcast %547 : vector<8x1xi1> to vector<8x64xi1>
    %549 = vector.broadcast %cst_189 : f32 to vector<8x64xf32>
    %550 = arith.select %548, %546, %549 : vector<8x64xi1>, vector<8x64xf32>
    %cst_190 = arith.constant dense<0xFF800000> : vector<64xf32>
    %551 = vector.multi_reduction <maximumf>, %550, %cst_190 [0] : vector<8x64xf32> to vector<64xf32>
    %552 = vector.shape_cast %551 : vector<64xf32> to vector<1x64xf32>
    %553 = arith.ori %506, %76 : i1
    %cst_191 = arith.constant 0.000000e+00 : f32
    %554 = vector.broadcast %cst_191 : f32 to vector<1x64xf32>
    %555 = arith.select %553, %554, %552 : vector<1x64xf32>
    %556 = arith.index_cast %85 : i32 to index
    %c0_192 = arith.constant 0 : index
    %557 = vector.load %arg9[%556, %c0_192] : memref<16x64xf32, #tpu.memory_space<vmem>>, vector<8x64xf32>
    %cst_193 = arith.constant 0xFF800000 : f32
    %558 = vector.shape_cast %94 : vector<8x1xi1> to vector<8x1xi1>
    %559 = vector.broadcast %558 : vector<8x1xi1> to vector<8x64xi1>
    %560 = vector.broadcast %cst_193 : f32 to vector<8x64xf32>
    %561 = arith.select %559, %557, %560 : vector<8x64xi1>, vector<8x64xf32>
    %cst_194 = arith.constant dense<0xFF800000> : vector<64xf32>
    %562 = vector.multi_reduction <maximumf>, %561, %cst_194 [0] : vector<8x64xf32> to vector<64xf32>
    %563 = vector.shape_cast %562 : vector<64xf32> to vector<1x64xf32>
    %564 = arith.ori %506, %95 : i1
    %cst_195 = arith.constant 0.000000e+00 : f32
    %565 = vector.broadcast %cst_195 : f32 to vector<1x64xf32>
    %566 = arith.select %564, %565, %563 : vector<1x64xf32>
    %567 = arith.index_cast %104 : i32 to index
    %c0_196 = arith.constant 0 : index
    %568 = vector.load %arg9[%567, %c0_196] : memref<16x64xf32, #tpu.memory_space<vmem>>, vector<8x64xf32>
    %cst_197 = arith.constant 0xFF800000 : f32
    %569 = vector.shape_cast %113 : vector<8x1xi1> to vector<8x1xi1>
    %570 = vector.broadcast %569 : vector<8x1xi1> to vector<8x64xi1>
    %571 = vector.broadcast %cst_197 : f32 to vector<8x64xf32>
    %572 = arith.select %570, %568, %571 : vector<8x64xi1>, vector<8x64xf32>
    %cst_198 = arith.constant dense<0xFF800000> : vector<64xf32>
    %573 = vector.multi_reduction <maximumf>, %572, %cst_198 [0] : vector<8x64xf32> to vector<64xf32>
    %574 = vector.shape_cast %573 : vector<64xf32> to vector<1x64xf32>
    %575 = arith.ori %506, %114 : i1
    %cst_199 = arith.constant 0.000000e+00 : f32
    %576 = vector.broadcast %cst_199 : f32 to vector<1x64xf32>
    %577 = arith.select %575, %576, %574 : vector<1x64xf32>
    %578 = arith.index_cast %123 : i32 to index
    %c0_200 = arith.constant 0 : index
    %579 = vector.load %arg9[%578, %c0_200] : memref<16x64xf32, #tpu.memory_space<vmem>>, vector<8x64xf32>
    %cst_201 = arith.constant 0xFF800000 : f32
    %580 = vector.shape_cast %132 : vector<8x1xi1> to vector<8x1xi1>
    %581 = vector.broadcast %580 : vector<8x1xi1> to vector<8x64xi1>
    %582 = vector.broadcast %cst_201 : f32 to vector<8x64xf32>
    %583 = arith.select %581, %579, %582 : vector<8x64xi1>, vector<8x64xf32>
    %cst_202 = arith.constant dense<0xFF800000> : vector<64xf32>
    %584 = vector.multi_reduction <maximumf>, %583, %cst_202 [0] : vector<8x64xf32> to vector<64xf32>
    %585 = vector.shape_cast %584 : vector<64xf32> to vector<1x64xf32>
    %586 = arith.ori %506, %133 : i1
    %cst_203 = arith.constant 0.000000e+00 : f32
    %587 = vector.broadcast %cst_203 : f32 to vector<1x64xf32>
    %588 = arith.select %586, %587, %585 : vector<1x64xf32>
    %c7_i32_204 = arith.constant 7 : i32
    %589 = arith.muli %arg1, %c7_i32_204 : i32
    %c5_i32_205 = arith.constant 5 : i32
    %590 = arith.addi %589, %c5_i32_205 : i32
    %591 = arith.index_cast %590 : i32 to index
    %592 = memref.load %arg3[%591] : memref<42xi32, #tpu.memory_space<smem>>
    %c7_i32_206 = arith.constant 7 : i32
    %593 = arith.muli %arg1, %c7_i32_206 : i32
    %c5_i32_207 = arith.constant 5 : i32
    %594 = arith.addi %593, %c5_i32_207 : i32
    %595 = arith.index_cast %594 : i32 to index
    %596 = memref.load %arg4[%595] : memref<42xi32, #tpu.memory_space<smem>>
    %597 = arith.cmpi sle, %596, %592 : i32
    %cst_208 = arith.constant 0xFF800000 : f32
    %598 = vector.broadcast %cst_208 : f32 to vector<16x64xf32>
    %599 = arith.subi %596, %592 : i32
    %600 = arith.addi %592, %599 : i32
    %c1_i32_209 = arith.constant 1 : i32
    %601 = scf.for %arg10 = %592 to %600 step %c1_i32_209 iter_args(%arg11 = %598) -> (vector<16x64xf32>)  : i32 {
      %c0_279 = arith.constant 0 : index
      %778 = arith.index_cast %arg10 : i32 to index
      %c0_280 = arith.constant 0 : index
      %c0_281 = arith.constant 0 : index
      %779 = vector.load %arg7[%c0_279, %778, %c0_280, %c0_281] : memref<1x16x16x64xbf16, #tpu.memory_space<vmem>>, vector<1x1x16x64xbf16>
      %780 = vector.shape_cast %779 : vector<1x1x16x64xbf16> to vector<16x64xbf16>
      %781 = arith.extf %780 : vector<16x64xbf16> to vector<16x64xf32>
      %782 = arith.maximumf %arg11, %781 : vector<16x64xf32>
      scf.yield %782 : vector<16x64xf32>
    }
    %c0_210 = arith.constant 0 : index
    %c0_211 = arith.constant 0 : index
    %602 = vector.load %arg9[%c0_210, %c0_211] : memref<16x64xf32, #tpu.memory_space<vmem>>, vector<16x64xf32>
    tpu.vector_store %arg9[%c0_210, %c0_211], %601 {strides = array<i32>} : memref<16x64xf32, #tpu.memory_space<vmem>>, vector<16x64xf32>,
    %603 = arith.index_cast %9 : i32 to index
    %c0_212 = arith.constant 0 : index
    %604 = vector.load %arg9[%603, %c0_212] : memref<16x64xf32, #tpu.memory_space<vmem>>, vector<8x64xf32>
    %cst_213 = arith.constant 0xFF800000 : f32
    %605 = vector.shape_cast %18 : vector<8x1xi1> to vector<8x1xi1>
    %606 = vector.broadcast %605 : vector<8x1xi1> to vector<8x64xi1>
    %607 = vector.broadcast %cst_213 : f32 to vector<8x64xf32>
    %608 = arith.select %606, %604, %607 : vector<8x64xi1>, vector<8x64xf32>
    %cst_214 = arith.constant dense<0xFF800000> : vector<64xf32>
    %609 = vector.multi_reduction <maximumf>, %608, %cst_214 [0] : vector<8x64xf32> to vector<64xf32>
    %610 = vector.shape_cast %609 : vector<64xf32> to vector<1x64xf32>
    %611 = arith.ori %597, %19 : i1
    %cst_215 = arith.constant 0.000000e+00 : f32
    %612 = vector.broadcast %cst_215 : f32 to vector<1x64xf32>
    %613 = arith.select %611, %612, %610 : vector<1x64xf32>
    %614 = arith.index_cast %28 : i32 to index
    %c0_216 = arith.constant 0 : index
    %615 = vector.load %arg9[%614, %c0_216] : memref<16x64xf32, #tpu.memory_space<vmem>>, vector<8x64xf32>
    %cst_217 = arith.constant 0xFF800000 : f32
    %616 = vector.shape_cast %37 : vector<8x1xi1> to vector<8x1xi1>
    %617 = vector.broadcast %616 : vector<8x1xi1> to vector<8x64xi1>
    %618 = vector.broadcast %cst_217 : f32 to vector<8x64xf32>
    %619 = arith.select %617, %615, %618 : vector<8x64xi1>, vector<8x64xf32>
    %cst_218 = arith.constant dense<0xFF800000> : vector<64xf32>
    %620 = vector.multi_reduction <maximumf>, %619, %cst_218 [0] : vector<8x64xf32> to vector<64xf32>
    %621 = vector.shape_cast %620 : vector<64xf32> to vector<1x64xf32>
    %622 = arith.ori %597, %38 : i1
    %cst_219 = arith.constant 0.000000e+00 : f32
    %623 = vector.broadcast %cst_219 : f32 to vector<1x64xf32>
    %624 = arith.select %622, %623, %621 : vector<1x64xf32>
    %625 = arith.index_cast %47 : i32 to index
    %c0_220 = arith.constant 0 : index
    %626 = vector.load %arg9[%625, %c0_220] : memref<16x64xf32, #tpu.memory_space<vmem>>, vector<8x64xf32>
    %cst_221 = arith.constant 0xFF800000 : f32
    %627 = vector.shape_cast %56 : vector<8x1xi1> to vector<8x1xi1>
    %628 = vector.broadcast %627 : vector<8x1xi1> to vector<8x64xi1>
    %629 = vector.broadcast %cst_221 : f32 to vector<8x64xf32>
    %630 = arith.select %628, %626, %629 : vector<8x64xi1>, vector<8x64xf32>
    %cst_222 = arith.constant dense<0xFF800000> : vector<64xf32>
    %631 = vector.multi_reduction <maximumf>, %630, %cst_222 [0] : vector<8x64xf32> to vector<64xf32>
    %632 = vector.shape_cast %631 : vector<64xf32> to vector<1x64xf32>
    %633 = arith.ori %597, %57 : i1
    %cst_223 = arith.constant 0.000000e+00 : f32
    %634 = vector.broadcast %cst_223 : f32 to vector<1x64xf32>
    %635 = arith.select %633, %634, %632 : vector<1x64xf32>
    %636 = arith.index_cast %66 : i32 to index
    %c0_224 = arith.constant 0 : index
    %637 = vector.load %arg9[%636, %c0_224] : memref<16x64xf32, #tpu.memory_space<vmem>>, vector<8x64xf32>
    %cst_225 = arith.constant 0xFF800000 : f32
    %638 = vector.shape_cast %75 : vector<8x1xi1> to vector<8x1xi1>
    %639 = vector.broadcast %638 : vector<8x1xi1> to vector<8x64xi1>
    %640 = vector.broadcast %cst_225 : f32 to vector<8x64xf32>
    %641 = arith.select %639, %637, %640 : vector<8x64xi1>, vector<8x64xf32>
    %cst_226 = arith.constant dense<0xFF800000> : vector<64xf32>
    %642 = vector.multi_reduction <maximumf>, %641, %cst_226 [0] : vector<8x64xf32> to vector<64xf32>
    %643 = vector.shape_cast %642 : vector<64xf32> to vector<1x64xf32>
    %644 = arith.ori %597, %76 : i1
    %cst_227 = arith.constant 0.000000e+00 : f32
    %645 = vector.broadcast %cst_227 : f32 to vector<1x64xf32>
    %646 = arith.select %644, %645, %643 : vector<1x64xf32>
    %647 = arith.index_cast %85 : i32 to index
    %c0_228 = arith.constant 0 : index
    %648 = vector.load %arg9[%647, %c0_228] : memref<16x64xf32, #tpu.memory_space<vmem>>, vector<8x64xf32>
    %cst_229 = arith.constant 0xFF800000 : f32
    %649 = vector.shape_cast %94 : vector<8x1xi1> to vector<8x1xi1>
    %650 = vector.broadcast %649 : vector<8x1xi1> to vector<8x64xi1>
    %651 = vector.broadcast %cst_229 : f32 to vector<8x64xf32>
    %652 = arith.select %650, %648, %651 : vector<8x64xi1>, vector<8x64xf32>
    %cst_230 = arith.constant dense<0xFF800000> : vector<64xf32>
    %653 = vector.multi_reduction <maximumf>, %652, %cst_230 [0] : vector<8x64xf32> to vector<64xf32>
    %654 = vector.shape_cast %653 : vector<64xf32> to vector<1x64xf32>
    %655 = arith.ori %597, %95 : i1
    %cst_231 = arith.constant 0.000000e+00 : f32
    %656 = vector.broadcast %cst_231 : f32 to vector<1x64xf32>
    %657 = arith.select %655, %656, %654 : vector<1x64xf32>
    %658 = arith.index_cast %104 : i32 to index
    %c0_232 = arith.constant 0 : index
    %659 = vector.load %arg9[%658, %c0_232] : memref<16x64xf32, #tpu.memory_space<vmem>>, vector<8x64xf32>
    %cst_233 = arith.constant 0xFF800000 : f32
    %660 = vector.shape_cast %113 : vector<8x1xi1> to vector<8x1xi1>
    %661 = vector.broadcast %660 : vector<8x1xi1> to vector<8x64xi1>
    %662 = vector.broadcast %cst_233 : f32 to vector<8x64xf32>
    %663 = arith.select %661, %659, %662 : vector<8x64xi1>, vector<8x64xf32>
    %cst_234 = arith.constant dense<0xFF800000> : vector<64xf32>
    %664 = vector.multi_reduction <maximumf>, %663, %cst_234 [0] : vector<8x64xf32> to vector<64xf32>
    %665 = vector.shape_cast %664 : vector<64xf32> to vector<1x64xf32>
    %666 = arith.ori %597, %114 : i1
    %cst_235 = arith.constant 0.000000e+00 : f32
    %667 = vector.broadcast %cst_235 : f32 to vector<1x64xf32>
    %668 = arith.select %666, %667, %665 : vector<1x64xf32>
    %669 = arith.index_cast %123 : i32 to index
    %c0_236 = arith.constant 0 : index
    %670 = vector.load %arg9[%669, %c0_236] : memref<16x64xf32, #tpu.memory_space<vmem>>, vector<8x64xf32>
    %cst_237 = arith.constant 0xFF800000 : f32
    %671 = vector.shape_cast %132 : vector<8x1xi1> to vector<8x1xi1>
    %672 = vector.broadcast %671 : vector<8x1xi1> to vector<8x64xi1>
    %673 = vector.broadcast %cst_237 : f32 to vector<8x64xf32>
    %674 = arith.select %672, %670, %673 : vector<8x64xi1>, vector<8x64xf32>
    %cst_238 = arith.constant dense<0xFF800000> : vector<64xf32>
    %675 = vector.multi_reduction <maximumf>, %674, %cst_238 [0] : vector<8x64xf32> to vector<64xf32>
    %676 = vector.shape_cast %675 : vector<64xf32> to vector<1x64xf32>
    %677 = arith.ori %597, %133 : i1
    %cst_239 = arith.constant 0.000000e+00 : f32
    %678 = vector.broadcast %cst_239 : f32 to vector<1x64xf32>
    %679 = arith.select %677, %678, %676 : vector<1x64xf32>
    %c7_i32_240 = arith.constant 7 : i32
    %680 = arith.muli %arg1, %c7_i32_240 : i32
    %c6_i32_241 = arith.constant 6 : i32
    %681 = arith.addi %680, %c6_i32_241 : i32
    %682 = arith.index_cast %681 : i32 to index
    %683 = memref.load %arg3[%682] : memref<42xi32, #tpu.memory_space<smem>>
    %c7_i32_242 = arith.constant 7 : i32
    %684 = arith.muli %arg1, %c7_i32_242 : i32
    %c6_i32_243 = arith.constant 6 : i32
    %685 = arith.addi %684, %c6_i32_243 : i32
    %686 = arith.index_cast %685 : i32 to index
    %687 = memref.load %arg4[%686] : memref<42xi32, #tpu.memory_space<smem>>
    %688 = arith.cmpi sle, %687, %683 : i32
    %cst_244 = arith.constant 0xFF800000 : f32
    %689 = vector.broadcast %cst_244 : f32 to vector<16x64xf32>
    %690 = arith.subi %687, %683 : i32
    %691 = arith.addi %683, %690 : i32
    %c1_i32_245 = arith.constant 1 : i32
    %692 = scf.for %arg10 = %683 to %691 step %c1_i32_245 iter_args(%arg11 = %689) -> (vector<16x64xf32>)  : i32 {
      %c0_279 = arith.constant 0 : index
      %778 = arith.index_cast %arg10 : i32 to index
      %c0_280 = arith.constant 0 : index
      %c0_281 = arith.constant 0 : index
      %779 = vector.load %arg7[%c0_279, %778, %c0_280, %c0_281] : memref<1x16x16x64xbf16, #tpu.memory_space<vmem>>, vector<1x1x16x64xbf16>
      %780 = vector.shape_cast %779 : vector<1x1x16x64xbf16> to vector<16x64xbf16>
      %781 = arith.extf %780 : vector<16x64xbf16> to vector<16x64xf32>
      %782 = arith.maximumf %arg11, %781 : vector<16x64xf32>
      scf.yield %782 : vector<16x64xf32>
    }
    %c0_246 = arith.constant 0 : index
    %c0_247 = arith.constant 0 : index
    %693 = vector.load %arg9[%c0_246, %c0_247] : memref<16x64xf32, #tpu.memory_space<vmem>>, vector<16x64xf32>
    tpu.vector_store %arg9[%c0_246, %c0_247], %692 {strides = array<i32>} : memref<16x64xf32, #tpu.memory_space<vmem>>, vector<16x64xf32>,
    %694 = arith.index_cast %9 : i32 to index
    %c0_248 = arith.constant 0 : index
    %695 = vector.load %arg9[%694, %c0_248] : memref<16x64xf32, #tpu.memory_space<vmem>>, vector<8x64xf32>
    %cst_249 = arith.constant 0xFF800000 : f32
    %696 = vector.shape_cast %18 : vector<8x1xi1> to vector<8x1xi1>
    %697 = vector.broadcast %696 : vector<8x1xi1> to vector<8x64xi1>
    %698 = vector.broadcast %cst_249 : f32 to vector<8x64xf32>
    %699 = arith.select %697, %695, %698 : vector<8x64xi1>, vector<8x64xf32>
    %cst_250 = arith.constant dense<0xFF800000> : vector<64xf32>
    %700 = vector.multi_reduction <maximumf>, %699, %cst_250 [0] : vector<8x64xf32> to vector<64xf32>
    %701 = vector.shape_cast %700 : vector<64xf32> to vector<1x64xf32>
    %702 = arith.ori %688, %19 : i1
    %cst_251 = arith.constant 0.000000e+00 : f32
    %703 = vector.broadcast %cst_251 : f32 to vector<1x64xf32>
    %704 = arith.select %702, %703, %701 : vector<1x64xf32>
    %705 = arith.index_cast %28 : i32 to index
    %c0_252 = arith.constant 0 : index
    %706 = vector.load %arg9[%705, %c0_252] : memref<16x64xf32, #tpu.memory_space<vmem>>, vector<8x64xf32>
    %cst_253 = arith.constant 0xFF800000 : f32
    %707 = vector.shape_cast %37 : vector<8x1xi1> to vector<8x1xi1>
    %708 = vector.broadcast %707 : vector<8x1xi1> to vector<8x64xi1>
    %709 = vector.broadcast %cst_253 : f32 to vector<8x64xf32>
    %710 = arith.select %708, %706, %709 : vector<8x64xi1>, vector<8x64xf32>
    %cst_254 = arith.constant dense<0xFF800000> : vector<64xf32>
    %711 = vector.multi_reduction <maximumf>, %710, %cst_254 [0] : vector<8x64xf32> to vector<64xf32>
    %712 = vector.shape_cast %711 : vector<64xf32> to vector<1x64xf32>
    %713 = arith.ori %688, %38 : i1
    %cst_255 = arith.constant 0.000000e+00 : f32
    %714 = vector.broadcast %cst_255 : f32 to vector<1x64xf32>
    %715 = arith.select %713, %714, %712 : vector<1x64xf32>
    %716 = arith.index_cast %47 : i32 to index
    %c0_256 = arith.constant 0 : index
    %717 = vector.load %arg9[%716, %c0_256] : memref<16x64xf32, #tpu.memory_space<vmem>>, vector<8x64xf32>
    %cst_257 = arith.constant 0xFF800000 : f32
    %718 = vector.shape_cast %56 : vector<8x1xi1> to vector<8x1xi1>
    %719 = vector.broadcast %718 : vector<8x1xi1> to vector<8x64xi1>
    %720 = vector.broadcast %cst_257 : f32 to vector<8x64xf32>
    %721 = arith.select %719, %717, %720 : vector<8x64xi1>, vector<8x64xf32>
    %cst_258 = arith.constant dense<0xFF800000> : vector<64xf32>
    %722 = vector.multi_reduction <maximumf>, %721, %cst_258 [0] : vector<8x64xf32> to vector<64xf32>
    %723 = vector.shape_cast %722 : vector<64xf32> to vector<1x64xf32>
    %724 = arith.ori %688, %57 : i1
    %cst_259 = arith.constant 0.000000e+00 : f32
    %725 = vector.broadcast %cst_259 : f32 to vector<1x64xf32>
    %726 = arith.select %724, %725, %723 : vector<1x64xf32>
    %727 = arith.index_cast %66 : i32 to index
    %c0_260 = arith.constant 0 : index
    %728 = vector.load %arg9[%727, %c0_260] : memref<16x64xf32, #tpu.memory_space<vmem>>, vector<8x64xf32>
    %cst_261 = arith.constant 0xFF800000 : f32
    %729 = vector.shape_cast %75 : vector<8x1xi1> to vector<8x1xi1>
    %730 = vector.broadcast %729 : vector<8x1xi1> to vector<8x64xi1>
    %731 = vector.broadcast %cst_261 : f32 to vector<8x64xf32>
    %732 = arith.select %730, %728, %731 : vector<8x64xi1>, vector<8x64xf32>
    %cst_262 = arith.constant dense<0xFF800000> : vector<64xf32>
    %733 = vector.multi_reduction <maximumf>, %732, %cst_262 [0] : vector<8x64xf32> to vector<64xf32>
    %734 = vector.shape_cast %733 : vector<64xf32> to vector<1x64xf32>
    %735 = arith.ori %688, %76 : i1
    %cst_263 = arith.constant 0.000000e+00 : f32
    %736 = vector.broadcast %cst_263 : f32 to vector<1x64xf32>
    %737 = arith.select %735, %736, %734 : vector<1x64xf32>
    %738 = arith.index_cast %85 : i32 to index
    %c0_264 = arith.constant 0 : index
    %739 = vector.load %arg9[%738, %c0_264] : memref<16x64xf32, #tpu.memory_space<vmem>>, vector<8x64xf32>
    %cst_265 = arith.constant 0xFF800000 : f32
    %740 = vector.shape_cast %94 : vector<8x1xi1> to vector<8x1xi1>
    %741 = vector.broadcast %740 : vector<8x1xi1> to vector<8x64xi1>
    %742 = vector.broadcast %cst_265 : f32 to vector<8x64xf32>
    %743 = arith.select %741, %739, %742 : vector<8x64xi1>, vector<8x64xf32>
    %cst_266 = arith.constant dense<0xFF800000> : vector<64xf32>
    %744 = vector.multi_reduction <maximumf>, %743, %cst_266 [0] : vector<8x64xf32> to vector<64xf32>
    %745 = vector.shape_cast %744 : vector<64xf32> to vector<1x64xf32>
    %746 = arith.ori %688, %95 : i1
    %cst_267 = arith.constant 0.000000e+00 : f32
    %747 = vector.broadcast %cst_267 : f32 to vector<1x64xf32>
    %748 = arith.select %746, %747, %745 : vector<1x64xf32>
    %749 = arith.index_cast %104 : i32 to index
    %c0_268 = arith.constant 0 : index
    %750 = vector.load %arg9[%749, %c0_268] : memref<16x64xf32, #tpu.memory_space<vmem>>, vector<8x64xf32>
    %cst_269 = arith.constant 0xFF800000 : f32
    %751 = vector.shape_cast %113 : vector<8x1xi1> to vector<8x1xi1>
    %752 = vector.broadcast %751 : vector<8x1xi1> to vector<8x64xi1>
    %753 = vector.broadcast %cst_269 : f32 to vector<8x64xf32>
    %754 = arith.select %752, %750, %753 : vector<8x64xi1>, vector<8x64xf32>
    %cst_270 = arith.constant dense<0xFF800000> : vector<64xf32>
    %755 = vector.multi_reduction <maximumf>, %754, %cst_270 [0] : vector<8x64xf32> to vector<64xf32>
    %756 = vector.shape_cast %755 : vector<64xf32> to vector<1x64xf32>
    %757 = arith.ori %688, %114 : i1
    %cst_271 = arith.constant 0.000000e+00 : f32
    %758 = vector.broadcast %cst_271 : f32 to vector<1x64xf32>
    %759 = arith.select %757, %758, %756 : vector<1x64xf32>
    %760 = arith.index_cast %123 : i32 to index
    %c0_272 = arith.constant 0 : index
    %761 = vector.load %arg9[%760, %c0_272] : memref<16x64xf32, #tpu.memory_space<vmem>>, vector<8x64xf32>
    %cst_273 = arith.constant 0xFF800000 : f32
    %762 = vector.shape_cast %132 : vector<8x1xi1> to vector<8x1xi1>
    %763 = vector.broadcast %762 : vector<8x1xi1> to vector<8x64xi1>
    %764 = vector.broadcast %cst_273 : f32 to vector<8x64xf32>
    %765 = arith.select %763, %761, %764 : vector<8x64xi1>, vector<8x64xf32>
    %cst_274 = arith.constant dense<0xFF800000> : vector<64xf32>
    %766 = vector.multi_reduction <maximumf>, %765, %cst_274 [0] : vector<8x64xf32> to vector<64xf32>
    %767 = vector.shape_cast %766 : vector<64xf32> to vector<1x64xf32>
    %768 = arith.ori %688, %133 : i1
    %cst_275 = arith.constant 0.000000e+00 : f32
    %769 = vector.broadcast %cst_275 : f32 to vector<1x64xf32>
    %770 = arith.select %768, %769, %767 : vector<1x64xf32>
    %771 = tpu.concatenate %158, %169, %180, %191, %202, %213, %224, %249, %260, %271, %282, %293, %304, %315, %340, %351 in 0 : vector<1x64xf32>, vector<1x64xf32>, vector<1x64xf32>, vector<1x64xf32>, vector<1x64xf32>, vector<1x64xf32>, vector<1x64xf32>, vector<1x64xf32>, vector<1x64xf32>, vector<1x64xf32>, vector<1x64xf32>, vector<1x64xf32>, vector<1x64xf32>, vector<1x64xf32>, vector<1x64xf32>, vector<1x64xf32> -> vector<16x64xf32>
    %772 = tpu.concatenate %362, %373, %384, %395, %406, %431, %442, %453, %464, %475, %486, %497, %522, %533, %544, %555 in 0 : vector<1x64xf32>, vector<1x64xf32>, vector<1x64xf32>, vector<1x64xf32>, vector<1x64xf32>, vector<1x64xf32>, vector<1x64xf32>, vector<1x64xf32>, vector<1x64xf32>, vector<1x64xf32>, vector<1x64xf32>, vector<1x64xf32>, vector<1x64xf32>, vector<1x64xf32>, vector<1x64xf32>, vector<1x64xf32> -> vector<16x64xf32>
    %773 = tpu.concatenate %566, %577, %588, %613, %624, %635, %646, %657, %668, %679, %704, %715, %726, %737, %748, %759 in 0 : vector<1x64xf32>, vector<1x64xf32>, vector<1x64xf32>, vector<1x64xf32>, vector<1x64xf32>, vector<1x64xf32>, vector<1x64xf32>, vector<1x64xf32>, vector<1x64xf32>, vector<1x64xf32>, vector<1x64xf32>, vector<1x64xf32>, vector<1x64xf32>, vector<1x64xf32>, vector<1x64xf32>, vector<1x64xf32> -> vector<16x64xf32>
    %774 = tpu.concatenate %771, %772, %773, %770 in 0 : vector<16x64xf32>, vector<16x64xf32>, vector<16x64xf32>, vector<1x64xf32> -> vector<49x64xf32>
    %c0_276 = arith.constant 0 : index
    %c0_277 = arith.constant 0 : index
    %c0_278 = arith.constant 0 : index
    %775 = vector.load %arg8[%c0_276, %c0_277, %c0_278] : memref<1x49x64xf32, #tpu.memory_space<vmem>>, vector<1x49x64xf32>
    %776 = vector.shape_cast %775 : vector<1x49x64xf32> to vector<49x64xf32>
    %777 = vector.shape_cast %774 : vector<49x64xf32> to vector<1x49x64xf32>
    tpu.vector_store %arg8[%c0_276, %c0_277, %c0_278], %777 {strides = array<i32>} : memref<1x49x64xf32, #tpu.memory_space<vmem>>, vector<1x49x64xf32>,
    return
  }
  func.func @transform_0(%arg0: i32, %arg1: i32, %arg2: memref<6xi32, #tpu.memory_space<smem>>, %arg3: memref<42xi32, #tpu.memory_space<smem>>, %arg4: memref<42xi32, #tpu.memory_space<smem>>, %arg5: memref<42xi32, #tpu.memory_space<smem>>, %arg6: memref<42xi32, #tpu.memory_space<smem>>) -> (i32, i32, i32, i32) {
    %0 = arith.index_cast %arg1 : i32 to index
    %1 = memref.load %arg2[%0] : memref<6xi32, #tpu.memory_space<smem>>
    %c0_i32 = arith.constant 0 : i32
    %c0_i32_0 = arith.constant 0 : i32
    %c0_i32_1 = arith.constant 0 : i32
    return %1, %c0_i32, %c0_i32_0, %arg0 : i32, i32, i32, i32
  }
  func.func @transform_1(%arg0: i32, %arg1: i32, %arg2: memref<6xi32, #tpu.memory_space<smem>>, %arg3: memref<42xi32, #tpu.memory_space<smem>>, %arg4: memref<42xi32, #tpu.memory_space<smem>>, %arg5: memref<42xi32, #tpu.memory_space<smem>>, %arg6: memref<42xi32, #tpu.memory_space<smem>>) -> (i32, i32, i32) {
    %c0_i32 = arith.constant 0 : i32
    %c0_i32_0 = arith.constant 0 : i32
    return %arg1, %c0_i32, %arg0 : i32, i32, i32
  }
}

</mosaic_0001>

<bundles_post_ra>
// kernel: tpu_custom_call.1
= control target key start
LH: loop header
LB: loop body
LE: loop exit
PB: predicated region body
PF: predicated region fallthrough
CT: control target
= control target key end

     0   :  { %s4176_s0 = inlined_call_operand.hbm [shape: s32[6], index: 0, kind: input, shape index: {}]   ;;  %s4177_s5 = inlined_call_operand.hbm [shape: bf16[2,16,16,64], index: 5, kind: input, shape index: {}]   ;;  %s4178_s6 = inlined_call_operand.hbm [shape: f32[6,49,64], index: 6, kind: output, shape index: {}]   ;;  %s4179_s1 = inlined_call_operand.vmem [shape: s32[42], index: 1, kind: input, shape index: {}]   ;;  %s4180_s2 = inlined_call_operand.vmem [shape: s32[42], index: 2, kind: input, shape index: {}]   ;;  %s4181_s3 = inlined_call_operand.vmem [shape: s32[42], index: 3, kind: input, shape index: {}]   ;;  %s4182_s4 = inlined_call_operand.vmem [shape: s32[42], index: 4, kind: input, shape index: {}]  }
   0x1   :  { %4283 = sst [smem:[#allocation71_spill]] %s4177_s5  ;;  %s1834_s23 = scalar_lea.hbm %s4176_s0, 16 }
   0x2   :  { %4284 = sst [smem:[#allocation72_spill]] %s4178_s6  ;;  %p1835_p0 = scmp.ne.s32.totalorder %s4176_s0, %s1834_s23 }
   0x3   :  { %p1838_p1 = scmp.lt.u32.totalorder %s1834_s23, %s4176_s0 }
   0x5   :  { %p1840_p2 = pnand %p1838_p1, %p1835_p0 }
   0x7   :  { %1843 = shalt.err (!%p1840_p2)  }
   0x8   :  { %s2312_s28 = smov [#allocation4]   ;;  %s13_s9 = sshll.u32 %s4179_s1, 4  ;;  %s14_s9 = int_to_ptr.vmem [resolvable:$true] %s13_s9 }
   0x9   :  { %12 = dma.hbm_to_smem %s4176_s0, 16, %s2312_s28, [#allocation3] }
   0xa   :  { %s17_s12 = sshll.u32 %s4180_s2, 4  ;;  %s1844_s13 = scalar_lea.vmem %s14_s9, 16  ;;  %s18_s12 = int_to_ptr.vmem [resolvable:$true] %s17_s12 }
   0xb   :  { %p1845_p3 = scmp.ne.s32.totalorder %s14_s9, %s1844_s13  ;;  %p1849_p4 = scmp.lt.s32.totalorder %s14_s9, %s14_s9 }
   0xc   :  { %p1850_p5 = scmp.lt.s32.totalorder %s1844_s13, %s1844_s13 }
   0xe   :  { %p1851_p6 = por %p1850_p5, %p1849_p4 }
  0x10   :  { %p1852_p7 = pnand %p1851_p6, %p1845_p3 }
  0x12   :  { %1855 = shalt.err (!%p1852_p7)  }
  0x13   :  { %s2313_s14 = smov [#allocation5]   ;;  %s21_s16 = sshll.u32 %s4181_s3, 4  ;;  %s22_s16 = int_to_ptr.vmem [resolvable:$true] %s21_s16 }
  0x14   :  { %16 = dma.vmem_to_smem %s14_s9, 16, %s2313_s14, [#allocation3] }
  0x15   :  { %s1856_s1 = scalar_lea.vmem %s18_s12, 16  ;;  %p1861_p9 = scmp.lt.s32.totalorder %s18_s12, %s18_s12 }
  0x16   :  { %p1857_p8 = scmp.ne.s32.totalorder %s18_s12, %s1856_s1  ;;  %p1862_p10 = scmp.lt.s32.totalorder %s1856_s1, %s1856_s1 }
  0x18   :  { %p1863_p11 = por %p1862_p10, %p1861_p9 }
  0x1a   :  { %p1864_p12 = pnand %p1863_p11, %p1857_p8 }
  0x1c   :  { %1867 = shalt.err (!%p1864_p12)  }
  0x1d   :  { %s2314_s2 = smov [#allocation6]   ;;  %s1868_s17 = scalar_lea.vmem %s22_s16, 16 }
  0x1e   :  { %20 = dma.vmem_to_smem %s18_s12, 16, %s2314_s2, [#allocation3] }
  0x1f   :  { %p1869_p13 = scmp.ne.s32.totalorder %s22_s16, %s1868_s17  ;;  %p1873_p0 = scmp.lt.s32.totalorder %s22_s16, %s22_s16 }
  0x20   :  { %p1874_p1 = scmp.lt.s32.totalorder %s1868_s17, %s1868_s17 }
  0x22   :  { %p1875_p2 = por %p1874_p1, %p1873_p0 }
  0x24   :  { %p1876_p3 = pnand %p1875_p2, %p1869_p13 }
  0x26   :  { %1879 = shalt.err (!%p1876_p3)  }
  0x27   :  { %s2315_s18 = smov [#allocation7]   ;;  %s25_s20 = sshll.u32 %s4182_s4, 4  ;;  %s26_s20 = int_to_ptr.vmem [resolvable:$true] %s25_s20 }
  0x28   :  { %24 = dma.vmem_to_smem %s22_s16, 16, %s2315_s18, [#allocation3] }
  0x29   :  { %s1880_s21 = scalar_lea.vmem %s26_s20, 16  ;;  %p1885_p5 = scmp.lt.s32.totalorder %s26_s20, %s26_s20 }
  0x2a   :  { %p1881_p4 = scmp.ne.s32.totalorder %s26_s20, %s1880_s21  ;;  %p1886_p6 = scmp.lt.s32.totalorder %s1880_s21, %s1880_s21 }
  0x2c   :  { %p1887_p7 = por %p1886_p6, %p1885_p5 }
  0x2e   :  { %p1888_p8 = pnand %p1887_p7, %p1881_p4 }
  0x30   :  { %1891 = shalt.err (!%p1888_p8)  }
  0x31   :  { %s2316_s22 = smov [#allocation8]  }
  0x32   :  { %28 = dma.vmem_to_smem %s26_s20, 16, %s2316_s22, [#allocation3] }
  0x33   :  { %2126 = dma.done.wait [#allocation3], 80 }
  0x34   :  { %2127 = vsyncadd [#allocation3], 4294967216 }
  0x35   :  { %30 = sfence }
  0x36   :  { %31 = vsyncpa [#allocation10], 0 }
  0x37   :  { %33 = vsyncpa [#allocation10 + $0x1], 0 }
  0x38   :  { %34 = vsyncpa [#allocation11], 0 }
  0x39   :  { %36 = vsyncpa [#allocation11 + $0x1], 0  ;;  %s2382_s23 = smov 0   ;;  %s2384_s4 = smov 0  }
  0x3a   :  { %s2386_s24 = smov 0   ;;  %s2388_s25 = smov 0  }
  0x3b   :  { %s2390_s26 = smov 0   ;;  %s2392_s27 = smov 0  }
  0x3c   :  { %s2394_s28 = smov 0   ;;  %s2396_s29 = smov 0  }
  0x3d   :  { %s2398_s30 = smov 0  }
  0x3e LB: > { %4285 = sst [smem:[#allocation18_spill]] %s2138_s23  ;;  %s1391_s7 = sadd.s32 4294967295, %s2170_s30   ;;  %s2170_s30 = sphi %s2398_s30, %s42_s30   ;;  %s2166_s29 = sphi %s2396_s29, %s4647_s29   ;;  %s2162_s28 = sphi %s2394_s28, %s4646_s28   ;;  %s2158_s27 = sphi %s2392_s27, %s4645_s27   ;;  %s2154_s26 = sphi %s2390_s26, %s4644_s26   ;;  %s2150_s25 = sphi %s2388_s25, %s4643_s25   ;;  %s2146_s24 = sphi %s2386_s24, %s4642_s24   ;;  %s2142_s4 = sphi %s2384_s4, %s4641_s4   ;;  %s2138_s23 = sphi %s2382_s23, %s4640_s23  }
  0x3f   : > { %4286 = sst [smem:[#allocation19_spill]] %s2142_s4  ;;  %s1392_s8 = sadd.s32 4294967294, %s2170_s30  }
  0x40   : > { %4287 = sst [smem:[#allocation20_spill]] %s2146_s24  ;;  %s51_s9 = sadd.s32 1, %s2166_s29 }
  0x41   : > { %4288 = sst [smem:[#allocation21_spill]] %s2154_s26  ;;  %p52_p9 = scmp.ge.s32.totalorder %s51_s9, 6 }
  0x42   : > { %4289 = sst [smem:[#allocation22_spill]] %s2158_s27  ;;  %s65_s11 = sadd.s32 1, %s2158_s27 }
  0x43   : > { %4290 = sst [smem:[#allocation23_spill]] %s2166_s29  ;;  %p72_p10 = scmp.ne.s32.totalorder %s2158_s27, %s2154_s26 }
  0x44   : > { %4291 = sst [smem:[#allocation24_spill]] %s2170_s30  ;;  %p73_p11 = scmp.eq.s32.totalorder %s2170_s30, 0 }
  0x45   : > { %s58_s10 = sld [smem:[#allocation4 + %s2166_s29]]  ;;  %s4649_s9 = smov (%p52_p9, %s51_s9), 0 }
  0x46   : > { %4292 = sst [smem:[#allocation25_spill]] %s4649_s9  ;;  %p2435_p12 = por %p73_p11, %p72_p10 }
  0x47   : > { %p78_p13 = scmp.ne.s32.totalorder %s2154_s26, %s2150_s25  ;;  %s59_s13 = sld [smem:[#allocation4 + %s4649_s9]] }
  0x48   : > { %p79_p0 = scmp.eq.s32.totalorder %s1391_s7, 0  ;;  %s88_s14 = ssub.s32 %s2166_s29, %s4649_s9 }
  0x49   : > { %s93_s0 = sadd.s32 1, %s2146_s24  ;;  %p91_p2 = scmp.eq.s32.totalorder %s88_s14, 0 }
  0x4a   : > { %p2444_p1 = por %p79_p0, %p78_p13  ;;  %p103_p3 = scmp.ne.s32.totalorder %s2146_s24, %s2142_s4 }
  0x4b   : > { %p104_p4 = scmp.eq.s32.totalorder %s1391_s7, 5  ;;  %p109_p6 = scmp.ne.s32.totalorder %s2142_s4, %s2138_s23 }
  0x4c   : > { %s4294_s15 = scalar_select %p2444_p1, 1, 0 }
  0x4d   : > { %s2451_s16 = scalar_select %p91_p2, %s2146_s24, %s93_s0  }
  0x4e   : > { %p2453_p5 = por %p104_p4, %p103_p3  ;;  %s60_s2 = ssub.s32 %s58_s10, %s59_s13 }
  0x4f   : > { %4295 = sst [smem:[#allocation26_spill]] %s2451_s16  ;;  %p110_p7 = scmp.eq.s32.totalorder %s1392_s8, 5 }
  0x50   : > { %s4296_s1 = scalar_select %p2453_p5, 1, 0 }
  0x51   : > { %p63_p8 = scmp.eq.s32.totalorder %s60_s2, 0  ;;  %p2459_p9 = por %p110_p7, %p109_p6 }
  0x52   : > { %4297 = sst [smem:[#allocation27_spill]] %s4296_s1  ;;  %p1471_p10 = scmp.lt.s32.totalorder %s2170_s30, 6 }
  0x53   : > { %s4298_s17 = scalar_select %p2459_p9, 1, 0 }
  0x54   : > { %s2465_s18 = scalar_select %p63_p8, %s2158_s27, %s65_s11  }
  0x55   : > { %4299 = sst [smem:[#allocation28_spill]] %s4298_s17  ;;  %s130_s3 = sand.u32 1, %s2158_s27  }
  0x56   : > { %4300 = sst [smem:[#allocation29_spill]] %s2465_s18  ;;  %p2470_p11 = pnand %p1471_p10, %p2435_p12 }
  0x57   : > { %s1395_s20 = sshll.u32 %s130_s3, 7  ;;  %p1398_p13 = scmp.ge.s32.totalorder %s2170_s30, 1 }
  0x58   : > { %s1455_s21 = scalar_select %p2435_p12, [#allocation4], [#allocation13] }
  0x59   : > { %s1456_s22 = scalar_select %p2435_p12, %s2166_s29, 0 }
  0x5a   : > { %s4651_s21 = smov (!%p1471_p10, %s1455_s21), [#allocation14]  ;;  %s134_s7 = scalar_lea.vmem [#allocation9], %s1395_s20 }
  0x5b   : > { %s4653_s22 = smov (!%p1471_p10, %s1456_s22), 0  ;;  %s143_s8 = sshll.u32 %s134_s7, 4  ;;  %s2485_s8 = int_to_ptr.vmem [resolvable:$true] %s143_s8 }
  0x5c   : > { %s135_s25 = sld [smem:[%s4651_s21 + %s4653_s22]]  ;;  %p151_p0 = scmp.lt.s32.totalorder %s2170_s30, 7 }
  0x5d   : > { %s4303_s5 = sld [smem:[#allocation71_spill]]  ;;  %s2492_s0 = scalar_lea.sflag [#allocation10], %s130_s3 }
  0x5e   : > { %p2481_p2 = pnand %p1398_p13, %p151_p0  ;;  %p1894_p3 = pneg %p2470_p11 }
  0x62   : > { %s1417_s11 = sshll.u32 %s135_s25, 11 }
  0x63   : > { %s2490_s12 = scalar_lea.hbm %s4303_s5, %s1417_s11  ;;  %s1897_s22 = scalar_lea.hbm %s4303_s5, 4096 }
  0x64   : > { %s1892_s2 = scalar_lea.hbm %s2490_s12, 2048  ;;  %p1898_p7 = scmp.lt.u32.totalorder %s2490_s12, %s4303_s5 }
  0x65   : > { %p1893_p12 = scmp.ne.s32.totalorder %s2490_s12, %s1892_s2  ;;  %p1899_p8 = scmp.lt.u32.totalorder %s1897_s22, %s1892_s2 }
  0x66   : > { %p1901_p13 = scmp.lt.u32.totalorder %s1892_s2, %s2490_s12 }
  0x67   : > { %p1895_p4 = pnand %p1894_p3, %p1893_p12  ;;  %p1900_p10 = por %p1899_p8, %p1898_p7 }
  0x69   : > { %p1896_p6 = pneg %p1895_p4  ;;  %p1902_p0 = por %p1901_p13, %p1900_p10 }
  0x6b   : > { %p1903_p9 = pnand %p1902_p0, %p1896_p6 }
  0x6d   : > { %1906 = shalt.err (!%p1903_p9)
}
  0x6e   : > { %s1907_s3 = scalar_lea.vmem %s2485_s8, 2048  ;;  %s2317_s11 = smov [#allocation9]  }
  0x6f   : > { %p1908_p12 = scmp.ne.s32.totalorder %s2485_s8, %s1907_s3  ;;  %s1912_s13 = sshll.u32 %s2317_s11, 4  ;;  %s1913_s13 = int_to_ptr.vmem [resolvable:$false] %s1912_s13 }
  0x70   : > { %s1914_s14 = scalar_lea.vmem %s1913_s13, 4096  ;;  %p1915_p1 = scmp.lt.s32.totalorder %s2485_s8, %s1913_s13 }
  0x71   : > { %p1910_p4 = pnand %p1908_p12, %p1894_p3  ;;  %p1916_p7 = scmp.lt.s32.totalorder %s1914_s14, %s1907_s3 }
  0x73   : > { %p1911_p5 = pneg %p1910_p4  ;;  %p1917_p8 = por %p1916_p7, %p1915_p1 }
  0x75   : > { %p1918_p10 = pnand %p1917_p8, %p1911_p5 }
  0x77   : > { %1921 = shalt.err (!%p1918_p10)
}
  0x78   : > { %s2318_s2 = smov 64   ;;  %s2319_s20 = smov 4  }
  0x79   : > { %1466 = dma.hbm_to_vmem [thread:$0]  (!%p2470_p11), %s2490_s12, 2048, %s2485_s8, %s2492_s0, %s2318_s2, %s2318_s2, %s2319_s20  }
  0x7a   : > { %155 = sbr.rel (%p2481_p2) target bundleno = 526 (0x20e), region = 24 }
  0x81   : > { %s157_s21 = sand.u32 1, %s2154_s26   ;;  %p4304_p1 = scmp.ne.s32.totalorder %s4294_s15, 0 }
  0x82   : > { %s1399_s22 = sshll.u32 %s157_s21, 7  ;;  %s158_s25 = scalar_lea.sflag [#allocation10], %s157_s21 }
  0x83   : > { %s2523_s7 = scalar_lea.vmem [#allocation9], %s1399_s22 }
  0x84   : > { %2129 = dma.done.wait (%p4304_p1), %s158_s25, 2048  }
  0x85   : > { %2131 = vsyncadd (%p4304_p1), %s158_s25, 4294965248  ;;  %s4185_s19 = sand.u32 1, %s2142_s4   ;;  %s2531_s8 = smul.u32 7, %s2162_s28  ;;  %v181_v0 = vlaneseq  ;;  %v4309_v9 = vmov 0  ;;  %v4312_v16 = vmov 0  ;;  %v4315_v19 = vmov 0 }
  0x86   : > { %s2535_s10 = smul.u32 56, %s4185_s19  ;;  %v4319_v21 = vmov 0  ;;  %v4325_v29 = vmov 0  ;;  %v4328_v35 = vmov 0  ;;  %v2184_v37 = vmov -inf  }
  0x87   : > { %s184_s12 = sld [smem:[#allocation7 + %s2531_s8]]  ;;  %s2540_s15 = sadd.s32 1, %s2531_s8  ;;  %v2570_v1 = vshrl.u32 %v181_v0, 7  ;;  %v2188_v38 = vmov -inf  }
  0x88   : > { %s185_s0 = sld [smem:[#allocation8 + %s2531_s8]]  ;;  %s2549_s13 = sadd.s32 2, %s2531_s8 }
  0x89   : > { %s2543_s3 = sld [smem:[#allocation7 + %s2540_s15]]  ;;  %s2552_s14 = sadd.s32 3, %s2531_s8 }
  0x8a   : > { %s2546_s11 = sld [smem:[#allocation8 + %s2540_s15]]  ;;  %s2573_s19 = sadd.s32 4, %s2531_s8 }
  0x8b   : > { %s2555_s2 = sld [smem:[#allocation7 + %s2549_s13]]  ;;  %s2576_s5 = sadd.s32 5, %s2531_s8 }
  0x8c   : > { %s2558_s20 = sld [smem:[#allocation8 + %s2549_s13]] }
  0x8d   : > { %s2561_s21 = sld [smem:[#allocation7 + %s2552_s14]]  ;;  %p186_p5 = scmp.lt.s32.totalorder %s184_s12, 8  ;;  %v190_v3 = vstv %s184_s12 }
  0x8e   : > { %s2564_s22 = sld [smem:[#allocation8 + %s2552_s14]]  ;;  %p2566_p9 = scmp.le.s32.totalorder %s185_s0, %s184_s12  ;;  %v192_v4 = vstv %s185_s0 }
  0x8f   : > { %s2578_s9 = scalar_select %p186_p5, %s184_s12, 8  ;;  %v203_v6 = vstv %s2543_s3 }
  0x90   : > { %p199_p11 = scmp.lt.s32.totalorder %s2543_s3, 8  ;;  %p2583_p2 = scmp.le.s32.totalorder %s2546_s11, %s2543_s3  ;;  %v205_v8 = vstv %s2546_s11 }
  0x91   : > { %v188_v2 = vstv %s2578_s9  ;;  %p212_p3 = scmp.lt.s32.totalorder %s2555_s2, 8  ;;  %v216_v12 = vstv %s2555_s2  ;;  %s2621_s0 = sld [smem:[#allocation7 + %s2573_s19]] }
  0x92   : > { %p2591_p6 = scmp.le.s32.totalorder %s2558_s20, %s2555_s2  ;;  %v189_v5 = vadd.s32 %v188_v2, %v2570_v1  ;;  %v218_v13 = vstv %s2558_s20  ;;  %s2632_s16 = sld [smem:[#allocation7 + %s2576_s5]] }
  0x93   : > { %s2597_s27 = scalar_select %p199_p11, %s2543_s3, 8  ;;  %v229_v15 = vstv %s2561_s21 }
  0x94   : > { %s2601_s26 = scalar_select %p212_p3, %s2555_s2, 8  ;;  %vm191_vm0 = vcmp.ge.s32.totalorder %v189_v5, %v190_v3  ;;  %vm193_vm1 = vcmp.lt.s32.totalorder %v189_v5, %v192_v4  ;;  %v231_v18 = vstv %s2564_s22 }
  0x95   : > { %v201_v7 = vstv %s2597_s27  ;;  %p225_p13 = scmp.lt.s32.totalorder %s2561_s21, 8  ;;  %p2608_p0 = scmp.le.s32.totalorder %s2564_s22, %s2561_s21  ;;  %vm2612_vm2 = vmand %vm191_vm0, %vm193_vm1 }
  0x96   : > { %v4310_v9 = vsel %vm2612_vm2, 4294967295, %v4309_v9  ;;  %v202_v10 = vadd.s32 %v201_v7, %v2570_v1  ;;  %v214_v11 = vstv %s2601_s26  ;;  %s2624_s3 = sld [smem:[#allocation8 + %s2573_s19]]  ;;  %s2644_s20 = sadd.s32 6, %s2531_s8 }
  0x97   : > { %4311 = vst [vmem:[#allocation30_spill] sm:$0xff] %v4310_v9  ;;  %v215_v14 = vadd.s32 %v214_v11, %v2570_v1  ;;  %s2628_s11 = scalar_select %p225_p13, %s2561_s21, 8  ;;  %v242_v23 = vstv %s2621_s0 }
  0x98   : > { %vm204_vm3 = vcmp.ge.s32.totalorder %v202_v10, %v203_v6  ;;  %vm206_vm4 = vcmp.lt.s32.totalorder %v202_v10, %v205_v8  ;;  %s2641_s2 = sld [smem:[#allocation8 + %s2576_s5]]  ;;  %p238_p12 = scmp.lt.s32.totalorder %s2621_s0, 8  ;;  %v255_v26 = vstv %s2632_s16 }
  0x99   : > { %vm2634_vm5 = vmand %vm204_vm3, %vm206_vm4  ;;  %vm217_vm6 = vcmp.ge.s32.totalorder %v215_v14, %v216_v12  ;;  %vm219_vm7 = vcmp.lt.s32.totalorder %v215_v14, %v218_v13  ;;  %v227_v17 = vstv %s2628_s11  ;;  %s2652_s21 = sld [smem:[#allocation7 + %s2644_s20]]  ;;  %p251_p7 = scmp.lt.s32.totalorder %s2632_s16, 8 }
  0x9a   : > { %v4313_v16 = vsel %vm2634_vm5, 4294967295, %v4312_v16  ;;  %vm2646_vm8 = vmand %vm217_vm6, %vm219_vm7  ;;  %v228_v20 = vadd.s32 %v227_v17, %v2570_v1  ;;  %s2655_s22 = sld [smem:[#allocation8 + %s2644_s20]] }
  0x9b   : > { %4314 = vst [vmem:[#allocation31_spill] sm:$0xff] %v4313_v16  ;;  %v4316_v19 = vsel %vm2646_vm8, 4294967295, %v4315_v19  ;;  %s2658_s24 = sld [smem:[#allocation5 + %s2531_s8]]  }
  0x9c   : > { %4317 = vst [vmem:[#allocation32_spill] sm:$0xff] %v4316_v19  ;;  %s2661_s17 = sld [smem:[#allocation6 + %s2531_s8]]  ;;  %vm230_vm9 = vcmp.ge.s32.totalorder %v228_v20, %v229_v15  ;;  %vm232_vm10 = vcmp.lt.s32.totalorder %v228_v20, %v231_v18  ;;  %p2666_p4 = scmp.le.s32.totalorder %s2624_s3, %s2621_s0  ;;  %v244_v24 = vstv %s2624_s3 }
  0x9d   : > { %vm2670_vm11 = vmand %vm230_vm9, %vm232_vm10  ;;  %s2675_s30 = scalar_select %p238_p12, %s2621_s0, 8 }
  0x9e   : > { %v4320_v21 = vsel %vm2670_vm11, 4294967295, %v4319_v21  ;;  %p2680_p8 = scmp.le.s32.totalorder %s2641_s2, %s2632_s16  ;;  %v257_v28 = vstv %s2641_s2 }
  0x9f   : > { %4321 = vst [vmem:[#allocation33_spill] sm:$0xff] %v4320_v21  ;;  %v240_v22 = vstv %s2675_s30  ;;  %p264_p10 = scmp.lt.s32.totalorder %s2652_s21, 8  ;;  %v268_v32 = vstv %s2652_s21 }
  0xa0   : > { %p2690_p1 = scmp.le.s32.totalorder %s2655_s22, %s2652_s21  ;;  %v241_v25 = vadd.s32 %v240_v22, %v2570_v1  ;;  %v270_v33 = vstv %s2655_s22 }
  0xa1   : > { %s2696_s1 = scalar_select %p251_p7, %s2632_s16, 8 }
  0xa2   : > { %s2700_s4 = scalar_select %p264_p10, %s2652_s21, 8  ;;  %vm243_vm12 = vcmp.ge.s32.totalorder %v241_v25, %v242_v23  ;;  %vm245_vm13 = vcmp.lt.s32.totalorder %v241_v25, %v244_v24 }
  0xa3   : > { %v253_v27 = vstv %s2696_s1  ;;  %p2706_p5 = scmp.le.s32.totalorder %s2661_s17, %s2658_s24  ;;  %vm2710_vm14 = vmand %vm243_vm12, %vm245_vm13  ;;  %s2728_s16 = scalar_lea.vmem [#allocation12], %s2535_s10 }
  0xa4   : > { %v4326_v29 = vsel %vm2710_vm14, 4294967295, %v4325_v29  ;;  %v254_v30 = vadd.s32 %v253_v27, %v2570_v1  ;;  %v266_v31 = vstv %s2700_s4  ;;  %p1283_p11 = scmp.ge.s32.totalorder %s2658_s24, %s2661_s17 }
  0xa5   : > { %4327 = vst [vmem:[#allocation34_spill] sm:$0xff] %v4326_v29  ;;  %v267_v34 = vadd.s32 %v266_v31, %v2570_v1  ;;  %v2172_v39 = vmov (!%p1283_p11), -inf   ;;  %v2176_v40 = vmov (!%p1283_p11), -inf   ;;  %s2180_s3 = smov (!%p1283_p11), %s2658_s24  }
  0xa6   : > { %vm256_vm15 = vcmp.ge.s32.totalorder %v254_v30, %v255_v26  ;;  %vm258_vm0 = vcmp.lt.s32.totalorder %v254_v30, %v257_v28  ;;  %1286 = sbr.rel (%p1283_p11) target bundleno = 183 (0xb7), region = 126 }
  0xa7   : > { %vm2719_vm1 = vmand %vm256_vm15, %vm258_vm0  ;;  %vm269_vm3 = vcmp.ge.s32.totalorder %v267_v34, %v268_v32  ;;  %vm271_vm4 = vcmp.lt.s32.totalorder %v267_v34, %v270_v33 }
  0xa8   : > { %v4329_v35 = vsel %vm2719_vm1, 4294967295, %v4328_v35  ;;  %vm2723_vm6 = vmand %vm269_vm3, %vm271_vm4 }
  0xa9   : > { %4330 = vst [vmem:[#allocation35_spill] sm:$0xff] %v4329_v35 }
  0xad LB: >> { %s1418_s2 = sshll.u32 %s2182_s3, 3  ;;  %s280_s3 = sadd.s32 1, %s2182_s3   ;;  %s2182_s3 = sphi %s2180_s3, %s280_s3   ;;  %v2178_v40 = vphi %v2176_v40, %v2177_v40   ;;  %v2174_v39 = vphi %v2172_v39, %v2173_v39  }
  0xae   : >> { %s287_s21 = scalar_lea.vmem %s2523_s7, %s1418_s2 [#allocation9]  ;;  %p279_p3 = scmp.ge.s32.totalorder %s280_s3, %s2661_s17 }
  0xaf   : >> { %v1426_v41 = vld [vmem:[%s287_s21] sm:$0xff]  }
  0xb0   : >> { %v1427_v42 = vunpack.c.l.bf16 %v1426_v41  ;;  %v1428_v43 = vunpack.c.h.bf16 %v1426_v41  ;;  %282 = sbr.rel (!%p279_p3) target bundleno = 173 (0xad), region = 132 }
  0xb2   : >> { %v292_v44 = vmax.f32 %v2178_v40, %v1427_v42   ;;  %v293_v45 = vmax.f32 %v2174_v39, %v1428_v43  }
  0xb4   : >> { %v2173_v39 = vmov %v293_v45   ;;  %v2177_v40 = vmov %v292_v44   ;;  %v2185_v37 = vmov (%p279_p3), %v293_v45   ;;  %v2189_v38 = vmov (%p279_p3), %v292_v44  }
  0xb7 PF: > { %vm4202_vm7 = vcmask 523264   ;;  %p309_p13 = por %p2706_p5, %p2566_p9  ;;  %p326_p12 = por %p2706_p5, %p2583_p2  ;;  %v4339_v42 = vmov 0  ;;  %v2190_v38 = vphi %v2188_v38, %v2189_v38   ;;  %v2186_v37 = vphi %v2184_v37, %v2185_v37  }
  0xb8   : > { %295 = vst.msk [vmem:[#allocation2] sm:$0xff] %vm4202_vm7, %v2190_v38  ;;  %296 = vst.msk [vmem:[#allocation2 + $0x8] sm:$0xff] %vm4202_vm7, %v2186_v37  ;;  %p343_p7 = por %p2706_p5, %p2591_p6  ;;  %s2754_s22 = scalar_lea.vmem [#allocation2], %s2578_s9 }
  0xb9   : > { %s310_s24 = scalar_select %p309_p13, 1, 0 }
  0xba   : > { %s2745_s17 = scalar_select %p326_p12, 1, 0 }
  0xbb   : > { %s2751_s10 = scalar_select %p343_p7, 1, 0  ;;  %v311_v46 = vstv %s310_s24 }
  0xbc   : > { %s2758_s3 = scalar_lea.vmem [#allocation2], %s2597_s27  ;;  %v328_v49 = vstv %s2745_s17  ;;  %s2763_s2 = scalar_lea.vmem [#allocation2], %s2601_s26  ;;  %vm2795_vm9 = vcmp.eq.s32.totalorder %v311_v46, 1 }
  0xbd   : > { %p360_p10 = por %p2706_p5, %p2608_p0  ;;  %v345_v54 = vstv %s2751_s10  ;;  %s2778_s27 = scalar_lea.vmem [#allocation2], %s2628_s11  ;;  %vm2812_vm10 = vcmp.eq.s32.totalorder %v328_v49, 1 }
  0xbe   : > { %s2782_s26 = scalar_lea.vmem [#allocation2], %s2675_s30  ;;  %p377_p11 = por %p2706_p5, %p2666_p4  ;;  %vm2827_vm12 = vcmp.eq.s32.totalorder %v345_v54, 1 }
  0xbf   : > { %v298_v47 = vld [vmem:[%s2754_s22] sm:$0xff]  ;;  %s2804_s30 = scalar_select %p360_p10, 1, 0 }
  0xc0   : > { %v315_v48 = vld [vmem:[%s2758_s3] sm:$0xff]  ;;  %v301_v51 = vsel %vm2612_vm2, %v298_v47, -inf  ;;  %s2809_s9 = scalar_lea.vmem [#allocation2], %s2696_s1  ;;  %s2824_s21 = scalar_lea.vmem [#allocation2], %s2700_s4 }
  0xc1   : > { %v332_v50 = vld [vmem:[%s2763_s2] sm:$0xff]  ;;  %v318_v52 = vsel %vm2634_vm5, %v315_v48, -inf  ;;  %v302_v57 = vsel %vm4202_vm7, %v301_v51, -inf  ;;  %s2821_s11 = scalar_select %p377_p11, 1, 0  ;;  %v362_v23 = vstv %s2804_s30 }
  0xc2   : > { %v335_v53 = vsel %vm2646_vm8, %v332_v50, -inf  ;;  %v349_v55 = vld [vmem:[%s2778_s27] sm:$0xff]  ;;  %v319_v58 = vsel %vm4202_vm7, %v318_v52, -inf  ;;  %v303_v61 = vrot.slane %v302_v57, 4  ;;  %s2835_s1 = sld [smem:[#allocation5 + %s2540_s15]]   ;;  %p394_p3 = por %p2706_p5, %p2680_p8  ;;  %vm2859_vm13 = vcmp.eq.s32.totalorder %v362_v23, 1 }
  0xc3   : > { %v366_v56 = vld [vmem:[%s2782_s26] sm:$0xff]  ;;  %v336_v59 = vsel %vm4202_vm7, %v335_v53, -inf  ;;  %v352_v60 = vsel %vm2670_vm11, %v349_v55, -inf  ;;  %v320_v62 = vrot.slane %v319_v58, 4  ;;  %s2838_s24 = sld [smem:[#allocation6 + %s2540_s15]]  ;;  %v379_v32 = vstv %s2821_s11  ;;  %p411_p13 = por %p2706_p5, %p2690_p1 }
  0xc4   : > { %v337_v63 = vrot.slane %v336_v59, 4  ;;  %v353_v0 = vsel %vm4202_vm7, %v352_v60, -inf  ;;  %v369_v3 = vsel %vm2710_vm14, %v366_v56, -inf  ;;  %v383_v4 = vld [vmem:[%s2809_s9] sm:$0xff]  ;;  %v304_v5 = vmax.f32 %v302_v57, %v303_v61  ;;  %s395_s4 = scalar_select %p394_p3, 1, 0 }
  0xc5   : > { %v354_v2 = vrot.slane %v353_v0, 4  ;;  %v321_v6 = vmax.f32 %v319_v58, %v320_v62  ;;  %v400_v10 = vld [vmem:[%s2824_s21] sm:$0xff]  ;;  %v370_v13 = vsel %vm4202_vm7, %v369_v3, -inf  ;;  %v386_v14 = vsel %vm2719_vm1, %v383_v4, -inf  ;;  %s412_s17 = scalar_select %p411_p13, 1, 0 }
  0xc6   : > { %v338_v8 = vmax.f32 %v336_v59, %v337_v63  ;;  %v305_v15 = vrot.slane %v304_v5, 2  ;;  %v371_v20 = vrot.slane %v370_v13, 4  ;;  %v387_v24 = vsel %vm4202_vm7, %v386_v14, -inf }
  0xc7   : > { %v355_v12 = vmax.f32 %v353_v0, %v354_v2  ;;  %v322_v17 = vrot.slane %v321_v6, 2  ;;  %v403_v25 = vsel %vm2723_vm6, %v400_v10, -inf  ;;  %v388_v33 = vrot.slane %v387_v24, 4 }
  0xc8   : > { %v339_v18 = vrot.slane %v338_v8, 2  ;;  %v306_v26 = vmax.f32 %v304_v5, %v305_v15  ;;  %v372_v30 = vmax.f32 %v370_v13, %v371_v20  ;;  %v404_v34 = vsel %vm4202_vm7, %v403_v25, -inf }
  0xc9   : > { %v356_v22 = vrot.slane %v355_v12, 2  ;;  %v323_v27 = vmax.f32 %v321_v6, %v322_v17  ;;  %v4340_v42 = vsel %vm2859_vm13, 4294967295, %v4339_v42  ;;  %v389_v43 = vmax.f32 %v387_v24, %v388_v33  ;;  %p2865_p12 = scmp.le.s32.totalorder %s2838_s24, %s2835_s1  ;;  %p1294_p5 = scmp.ge.s32.totalorder %s2835_s1, %s2838_s24 }
  0xca   : > { %v340_v28 = vmax.f32 %v338_v8, %v339_v18  ;;  %v307_v37 = vrot.slane %v306_v26, 1  ;;  %v373_v40 = vrot.slane %v372_v30, 2  ;;  %v405_v44 = vrot.slane %v404_v34, 4  ;;  %s2200_s0 = smov (!%p1294_p5), %s2835_s1  }
  0xcb   : > { %v357_v31 = vmax.f32 %v355_v12, %v356_v22  ;;  %v324_v38 = vrot.slane %v323_v27, 1  ;;  %vm2877_vm15 = vcmp.eq.s32.totalorder %v379_v32, 1  ;;  %v4342_v50 = vmov 0 }
  0xcc   : > { %v341_v39 = vrot.slane %v340_v28, 1  ;;  %v2869_v45 = vmax.f32 %v306_v26, %v307_v37  ;;  %v374_v48 = vmax.f32 %v372_v30, %v373_v40  ;;  %v4343_v50 = vsel %vm2877_vm15, 4294967295, %v4342_v50 }
  0xcd   : > { %v358_v41 = vrot.slane %v357_v31, 1  ;;  %v2871_v46 = vmax.f32 %v323_v27, %v324_v38  ;;  %v390_v51 = vrot.slane %v389_v43, 2  ;;  %v406_v52 = vmax.f32 %v404_v34, %v405_v44 }
  0xce   : > { %v2873_v47 = vmax.f32 %v340_v28, %v341_v39  ;;  %v375_v56 = vrot.slane %v374_v48, 1  ;;  %v396_v59 = vstv %s395_s4  ;;  %v413_v0 = vstv %s412_s17 }
  0xcf   : > { %v2875_v49 = vmax.f32 %v357_v31, %v358_v41  ;;  %v391_v58 = vmax.f32 %v389_v43, %v390_v51  ;;  %v407_v60 = vrot.slane %v406_v52, 2  ;;  %vm2903_vm0 = vcmp.eq.s32.totalorder %v396_v59, 1 }
  0xd0   : > { %v2898_v61 = vmax.f32 %v374_v48, %v375_v56  ;;  %v4344_v3 = vmov 0  ;;  %vm2909_vm3 = vcmp.eq.s32.totalorder %v413_v0, 1  ;;  %v4348_v6 = vmov 0 }
  0xd1   : > { %v392_v62 = vrot.slane %v391_v58, 1  ;;  %v408_v63 = vmax.f32 %v406_v52, %v407_v60  ;;  %v4345_v3 = vsel %vm2903_vm0, 4294967295, %v4344_v3  ;;  %v4349_v6 = vsel %vm2909_vm3, 4294967295, %v4348_v6  ;;  %1297 = sbr.rel (%p1294_p5) target bundleno = 226 (0xe2), region = 137 }
  0xd2   : > { %4346 = vst [vmem:[#allocation36_spill] sm:$0xff] %v4345_v3  ;;  %4350 = vst [vmem:[#allocation38_spill] sm:$0xff] %v4349_v6  ;;  %v2204_v13 = vmov -inf   ;;  %v2208_v14 = vmov -inf   ;;  %v2192_v15 = vmov (!%p1294_p5), -inf   ;;  %v2196_v17 = vmov (!%p1294_p5), -inf  }
  0xd3   : > { %v2907_v4 = vmax.f32 %v391_v58, %v392_v62  ;;  %v409_v5 = vrot.slane %v408_v63, 1 }
  0xd5   : > { %4347 = vst [vmem:[#allocation37_spill] sm:$0xff] %v2907_v4  ;;  %v2916_v10 = vmax.f32 %v408_v63, %v409_v5 }
  0xd7   : > { %4351 = vst [vmem:[#allocation39_spill] sm:$0xff] %v2916_v10 }
  0xd8 LB: >> { %s1419_s10 = sshll.u32 %s2202_s0, 3  ;;  %s422_s0 = sadd.s32 1, %s2202_s0   ;;  %s2202_s0 = sphi %s2200_s0, %s422_s0   ;;  %v2198_v17 = vphi %v2196_v17, %v2197_v17   ;;  %v2194_v15 = vphi %v2192_v15, %v2193_v15  }
  0xd9   : >> { %s429_s30 = scalar_lea.vmem %s2523_s7, %s1419_s10 [#allocation9]  ;;  %p421_p7 = scmp.ge.s32.totalorder %s422_s0, %s2838_s24 }
  0xda   : >> { %v1430_v18 = vld [vmem:[%s429_s30] sm:$0xff]  }
  0xdb   : >> { %v1431_v20 = vunpack.c.l.bf16 %v1430_v18  ;;  %v1432_v22 = vunpack.c.h.bf16 %v1430_v18  ;;  %424 = sbr.rel (!%p421_p7) target bundleno = 216 (0xd8), region = 143 }
  0xdd   : >> { %v434_v23 = vmax.f32 %v2198_v17, %v1431_v20   ;;  %v435_v24 = vmax.f32 %v2194_v15, %v1432_v22  }
  0xdf   : >> { %v2193_v15 = vmov %v435_v24   ;;  %v2197_v17 = vmov %v434_v23   ;;  %v2205_v13 = vmov (%p421_p7), %v435_v24   ;;  %v2209_v14 = vmov (%p421_p7), %v434_v23  }
  0xe2 PF: > { %436 = vst.msk [vmem:[#allocation2] sm:$0xff] %vm4202_vm7, %v2210_v14  ;;  %437 = vst.msk [vmem:[#allocation2 + $0x8] sm:$0xff] %vm4202_vm7, %v2206_v13  ;;  %p447_p10 = por %p2865_p12, %p2566_p9  ;;  %p461_p11 = por %p2865_p12, %p2583_p2  ;;  %v4352_v58 = vmov 0  ;;  %v4355_v59 = vmov 0  ;;  %v4357_v18 = vmov 0  ;;  %v2210_v14 = vphi %v2208_v14, %v2209_v14   ;;  %v2206_v13 = vphi %v2204_v13, %v2205_v13  }
  0xe3   : > { %p475_p3 = por %p2865_p12, %p2591_p6  ;;  %p489_p13 = por %p2865_p12, %p2608_p0 }
  0xe4   : > { %s448_s11 = scalar_select %p447_p10, 1, 0 }
  0xe5   : > { %s462_s1 = scalar_select %p461_p11, 1, 0 }
  0xe6   : > { %s2944_s24 = scalar_select %p475_p3, 1, 0  ;;  %v449_v25 = vstv %s448_s11 }
  0xe7   : > { %v463_v28 = vstv %s462_s1  ;;  %s2949_s4 = scalar_select %p489_p13, 1, 0  ;;  %vm2971_vm4 = vcmp.eq.s32.totalorder %v449_v25, 1 }
  0xe8   : > { %v477_v34 = vstv %s2944_s24  ;;  %p503_p5 = por %p2865_p12, %p2666_p4  ;;  %v4353_v58 = vsel %vm2971_vm4, 4294967295, %v4352_v58  ;;  %vm2975_vm3 = vcmp.eq.s32.totalorder %v463_v28, 1  ;;  %p517_p7 = por %p2865_p12, %p2680_p8 }
  0xe9   : > { %v438_v26 = vld [vmem:[%s2754_s22] sm:$0xff]  ;;  %4354 = vst [vmem:[#allocation40_spill] sm:$0xff] %v4353_v58  ;;  %v4356_v59 = vsel %vm2975_vm3, 4294967295, %v4355_v59  ;;  %v491_v62 = vstv %s2949_s4  ;;  %s2989_s17 = sld [smem:[#allocation5 + %s2549_s13]]   ;;  %vm3000_vm0 = vcmp.eq.s32.totalorder %v477_v34, 1  ;;  %p531_p10 = por %p2865_p12, %p2690_p1 }
  0xea   : > { %v452_v27 = vld [vmem:[%s2758_s3] sm:$0xff]  ;;  %v439_v31 = vsel %vm2612_vm2, %v438_v26, -inf  ;;  %s2997_s0 = scalar_select %p503_p5, 1, 0  ;;  %v4358_v18 = vsel %vm3000_vm0, 4294967295, %v4357_v18  ;;  %vm3008_vm15 = vcmp.eq.s32.totalorder %v491_v62, 1 }
  0xeb   : > { %v466_v30 = vld [vmem:[%s2763_s2] sm:$0xff]  ;;  %v453_v32 = vsel %vm2634_vm5, %v452_v27, -inf  ;;  %v440_v39 = vsel %vm4202_vm7, %v439_v31, -inf  ;;  %s3006_s10 = sld [smem:[#allocation6 + %s2549_s13]] }
  0xec   : > { %v467_v33 = vsel %vm2646_vm8, %v466_v30, -inf  ;;  %v480_v37 = vld [vmem:[%s2778_s27] sm:$0xff]  ;;  %v454_v40 = vsel %vm4202_vm7, %v453_v32, -inf  ;;  %v441_v44 = vrot.slane %v440_v39, 4  ;;  %v4359_v30 = vmov 0 }
  0xed   : > { %v494_v38 = vld [vmem:[%s2782_s26] sm:$0xff]  ;;  %v468_v41 = vsel %vm4202_vm7, %v467_v33, -inf  ;;  %v481_v43 = vsel %vm2670_vm11, %v480_v37, -inf  ;;  %v455_v48 = vrot.slane %v454_v40, 4  ;;  %v4360_v30 = vsel %vm3008_vm15, 4294967295, %v4359_v30 }
  0xee   : > { %v469_v51 = vrot.slane %v468_v41, 4  ;;  %v482_v52 = vsel %vm4202_vm7, %v481_v43, -inf  ;;  %v508_v56 = vld [vmem:[%s2809_s9] sm:$0xff]  ;;  %v495_v63 = vsel %vm2710_vm14, %v494_v38, -inf  ;;  %v442_v5 = vmax.f32 %v440_v39, %v441_v44  ;;  %s3017_s30 = scalar_select %p517_p7, 1, 0 }
  0xef   : > { %v483_v60 = vrot.slane %v482_v52, 4  ;;  %v509_v0 = vsel %vm2719_vm1, %v508_v56, -inf  ;;  %v456_v13 = vmax.f32 %v454_v40, %v455_v48  ;;  %v496_v15 = vsel %vm4202_vm7, %v495_v63, -inf  ;;  %v522_v17 = vld [vmem:[%s2824_s21] sm:$0xff]  ;;  %s532_s11 = scalar_select %p531_p10, 1, 0 }
  0xf0   : > { %v470_v14 = vmax.f32 %v468_v41, %v469_v51  ;;  %v497_v22 = vrot.slane %v496_v15, 4  ;;  %v510_v23 = vsel %vm4202_vm7, %v509_v0, -inf  ;;  %v443_v24 = vrot.slane %v442_v5, 2 }
  0xf1   : > { %v484_v20 = vmax.f32 %v482_v52, %v483_v60  ;;  %v457_v25 = vrot.slane %v456_v13, 2  ;;  %v511_v27 = vrot.slane %v510_v23, 4  ;;  %v523_v32 = vsel %vm2723_vm6, %v522_v17, -inf  ;;  %p3030_p11 = scmp.le.s32.totalorder %s3006_s10, %s2989_s17  ;;  %p1305_p12 = scmp.ge.s32.totalorder %s2989_s17, %s3006_s10 }
  0xf2   : > { %v471_v26 = vrot.slane %v470_v14, 2  ;;  %v498_v31 = vmax.f32 %v496_v15, %v497_v22  ;;  %v444_v33 = vmax.f32 %v442_v5, %v443_v24  ;;  %v505_v41 = vstv %s2997_s0  ;;  %s2220_s15 = smov (!%p1305_p12), %s2989_s17  }
  0xf3   : > { %v485_v28 = vrot.slane %v484_v20, 2  ;;  %v458_v34 = vmax.f32 %v456_v13, %v457_v25  ;;  %v512_v38 = vmax.f32 %v510_v23, %v511_v27  ;;  %v524_v43 = vsel %vm4202_vm7, %v523_v32, -inf }
  0xf4   : > { %v472_v37 = vmax.f32 %v470_v14, %v471_v26  ;;  %v499_v40 = vrot.slane %v498_v31, 2  ;;  %v445_v44 = vrot.slane %v444_v33, 1  ;;  %v519_v62 = vstv %s3017_s30 }
  0xf5   : > { %v486_v39 = vmax.f32 %v484_v20, %v485_v28  ;;  %v459_v48 = vrot.slane %v458_v34, 1  ;;  %v513_v52 = vrot.slane %v512_v38, 2  ;;  %v525_v63 = vrot.slane %v524_v43, 4 }
  0xf6   : > { %v473_v51 = vrot.slane %v472_v37, 1  ;;  %v500_v60 = vmax.f32 %v498_v31, %v499_v40  ;;  %v3034_v0 = vmax.f32 %v444_v33, %v445_v44  ;;  %vm3042_vm7 = vcmp.eq.s32.totalorder %v505_v41, 1 }
  0xf7   : > { %v487_v56 = vrot.slane %v486_v39, 1  ;;  %v3036_v5 = vmax.f32 %v458_v34, %v459_v48  ;;  %v514_v14 = vmax.f32 %v512_v38, %v513_v52  ;;  %v4363_v20 = vmov 0 }
  0xf8   : > { %4362 = vst [vmem:[#allocation41_spill] sm:$0xff] %v3034_v0  ;;  %v3038_v13 = vmax.f32 %v472_v37, %v473_v51  ;;  %v501_v17 = vrot.slane %v500_v60, 1  ;;  %v4364_v20 = vsel %vm3042_vm7, 4294967295, %v4363_v20  ;;  %v526_v22 = vmax.f32 %v524_v43, %v525_v63 }
  0xf9   : > { %v3040_v15 = vmax.f32 %v486_v39, %v487_v56  ;;  %v515_v26 = vrot.slane %v514_v14, 1  ;;  %vm3065_vm13 = vcmp.eq.s32.totalorder %v519_v62, 1  ;;  %v4365_v31 = vmov 0 }
  0xfa   : > { %v3063_v28 = vmax.f32 %v500_v60, %v501_v17  ;;  %v4366_v31 = vsel %vm3065_vm13, 4294967295, %v4365_v31  ;;  %v527_v32 = vrot.slane %v526_v22, 2  ;;  %v533_v38 = vstv %s532_s11 }
  0xfb   : > { %4367 = vst [vmem:[#allocation42_spill] sm:$0xff] %v4366_v31  ;;  %v3069_v33 = vmax.f32 %v514_v14, %v515_v26  ;;  %vm3077_vm4 = vcmp.eq.s32.totalorder %v533_v38, 1  ;;  %v4369_v41 = vmov 0  ;;  %v2224_v48 = vmov -inf  }
  0xfc   : > { %v528_v37 = vmax.f32 %v526_v22, %v527_v32  ;;  %v4370_v41 = vsel %vm3077_vm4, 4294967295, %v4369_v41  ;;  %v2228_v51 = vmov -inf   ;;  %1308 = sbr.rel (%p1305_p12) target bundleno = 269 (0x10d), region = 148  ;;  %v2212_v52 = vmov (!%p1305_p12), -inf  }
  0xfd   : > { %4368 = vst [vmem:[#allocation43_spill] sm:$0xff] %v3069_v33  ;;  %4371 = vst [vmem:[#allocation44_spill] sm:$0xff] %v4370_v41  ;;  %v2216_v56 = vmov (!%p1305_p12), -inf  }
  0xfe   : > { %v529_v40 = vrot.slane %v528_v37, 1 }
 0x100   : > { %v3081_v43 = vmax.f32 %v528_v37, %v529_v40 }
 0x102   : > { %4372 = vst [vmem:[#allocation45_spill] sm:$0xff] %v3081_v43 }
 0x103 LB: >> { %s1420_s1 = sshll.u32 %s2222_s15, 3  ;;  %s542_s15 = sadd.s32 1, %s2222_s15   ;;  %s2222_s15 = sphi %s2220_s15, %s542_s15   ;;  %v2218_v56 = vphi %v2216_v56, %v2217_v56   ;;  %v2214_v52 = vphi %v2212_v52, %v2213_v52  }
 0x104   : >> { %s549_s24 = scalar_lea.vmem %s2523_s7, %s1420_s1 [#allocation9]  ;;  %p541_p3 = scmp.ge.s32.totalorder %s542_s15, %s3006_s10 }
 0x105   : >> { %v1434_v60 = vld [vmem:[%s549_s24] sm:$0xff]  }
 0x106   : >> { %v1435_v62 = vunpack.c.l.bf16 %v1434_v60  ;;  %v1436_v63 = vunpack.c.h.bf16 %v1434_v60  ;;  %544 = sbr.rel (!%p541_p3) target bundleno = 259 (0x103), region = 154 }
 0x108   : >> { %v554_v14 = vmax.f32 %v2218_v56, %v1435_v62   ;;  %v555_v17 = vmax.f32 %v2214_v52, %v1436_v63  }
 0x10a   : >> { %v2213_v52 = vmov %v555_v17   ;;  %v2217_v56 = vmov %v554_v14   ;;  %v2225_v48 = vmov (%p541_p3), %v555_v17   ;;  %v2229_v51 = vmov (%p541_p3), %v554_v14  }
 0x10d PF: > { %vm4373_vm4 = vcmask 523264   ;;  %p567_p13 = por %p3030_p11, %p2566_p9  ;;  %p581_p5 = por %p3030_p11, %p2583_p2  ;;  %v4378_v12 = vmov 0  ;;  %v2230_v51 = vphi %v2228_v51, %v2229_v51   ;;  %v2226_v48 = vphi %v2224_v48, %v2225_v48  }
 0x10e   : > { %556 = vst.msk [vmem:[#allocation2] sm:$0xff] %vm4373_vm4, %v2230_v51  ;;  %vm4374_vm13 = vmmov %vm4373_vm4  ;;  %p595_p7 = por %p3030_p11, %p2591_p6  ;;  %p609_p10 = por %p3030_p11, %p2608_p0 }
 0x10f   : > { %557 = vst.msk [vmem:[#allocation2 + $0x8] sm:$0xff] %vm4374_vm13, %v2226_v48  ;;  %s568_s4 = scalar_select %p567_p13, 1, 0  ;;  %vm4375_vm13 = vmmov %vm4373_vm4 }
 0x110   : > { %s582_s17 = scalar_select %p581_p5, 1, 0  ;;  %vm4376_vm7 = vmmov %vm4373_vm4 }
 0x111   : > { %s3109_s0 = scalar_select %p595_p7, 1, 0  ;;  %v569_v22 = vstv %s568_s4  ;;  %vm4377_vm15 = vmmov %vm4373_vm4 }
 0x112   : > { %v583_v37 = vstv %s582_s17  ;;  %s3114_s10 = scalar_select %p609_p10, 1, 0  ;;  %vm3136_vm3 = vcmp.eq.s32.totalorder %v569_v22, 1 }
 0x113   : > { %v597_v52 = vstv %s3109_s0  ;;  %p623_p12 = por %p3030_p11, %p2666_p4  ;;  %v4379_v12 = vsel %vm3136_vm3, 4294967295, %v4378_v12  ;;  %p637_p3 = por %p3030_p11, %p2680_p8 }
 0x114   : > { %4380 = vst [vmem:[#allocation46_spill] sm:$0xff] %v4379_v12  ;;  %s3154_s30 = sld [smem:[#allocation5 + %s2552_s14]]   ;;  %p651_p13 = por %p3030_p11, %p2690_p1 }
 0x115   : > { %s3162_s11 = scalar_select %p623_p12, 1, 0 }
 0x116   : > { %v558_v26 = vld [vmem:[%s2754_s22] sm:$0xff]  ;;  %s3171_s15 = sld [smem:[#allocation6 + %s2552_s14]] }
 0x117   : > { %v572_v32 = vld [vmem:[%s2758_s3] sm:$0xff]  ;;  %v559_v40 = vsel %vm2612_vm2, %v558_v26, -inf  ;;  %s3182_s1 = scalar_select %p637_p3, 1, 0  ;;  %v625_v25 = vstv %s3162_s11 }
 0x118   : > { %v586_v38 = vld [vmem:[%s2763_s2] sm:$0xff]  ;;  %v573_v48 = vsel %vm2634_vm5, %v572_v32, -inf  ;;  %v560_v62 = vsel %vm4375_vm13, %v559_v40, -inf  ;;  %vm3140_vm13 = vcmp.eq.s32.totalorder %v583_v37, 1  ;;  %v4381_v40 = vmov 0 }
 0x119   : > { %v587_v51 = vsel %vm2646_vm8, %v586_v38, -inf  ;;  %v600_v56 = vld [vmem:[%s2778_s27] sm:$0xff]  ;;  %v574_v63 = vsel %vm4373_vm4, %v573_v48, -inf  ;;  %v561_v26 = vrot.slane %v560_v62, 4  ;;  %v4382_v40 = vsel %vm3140_vm13, 4294967295, %v4381_v40 }
 0x11a   : > { %v614_v60 = vld [vmem:[%s2782_s26] sm:$0xff]  ;;  %v588_v14 = vsel %vm4376_vm7, %v587_v51, -inf  ;;  %v601_v17 = vsel %vm2670_vm11, %v600_v56, -inf  ;;  %v575_v32 = vrot.slane %v574_v63, 4  ;;  %4383 = vst [vmem:[#allocation47_spill] sm:$0xff] %v4382_v40  ;;  %v611_v51 = vstv %s3114_s10  ;;  %vm4384_vm7 = vmmov %vm4373_vm4 }
 0x11b   : > { %v589_v38 = vrot.slane %v588_v14, 4  ;;  %v602_v23 = vsel %vm4377_vm15, %v601_v17, -inf  ;;  %v628_v44 = vld [vmem:[%s2809_s9] sm:$0xff]  ;;  %v615_v56 = vsel %vm2710_vm14, %v614_v60, -inf  ;;  %v562_v22 = vmax.f32 %v560_v62, %v561_v26  ;;  %s652_s24 = scalar_select %p651_p13, 1, 0 }
 0x11c   : > { %v603_v48 = vrot.slane %v602_v23, 4  ;;  %v629_v39 = vsel %vm2719_vm1, %v628_v44, -inf  ;;  %v576_v17 = vmax.f32 %v574_v63, %v575_v32  ;;  %v616_v8 = vsel %vm4384_vm7, %v615_v56, -inf  ;;  %v642_v60 = vld [vmem:[%s2824_s21] sm:$0xff]  ;;  %p3195_p5 = scmp.le.s32.totalorder %s3171_s15, %s3154_s30  ;;  %p1316_p11 = scmp.ge.s32.totalorder %s3154_s30, %s3171_s15 }
 0x11d   : > { %v590_v37 = vmax.f32 %v588_v14, %v589_v38  ;;  %vm3165_vm15 = vcmp.eq.s32.totalorder %v597_v52, 1  ;;  %v4385_v44 = vmov 0  ;;  %v617_v2 = vrot.slane %v616_v8, 4  ;;  %s2240_s13 = smov (!%p1316_p11), %s3154_s30  }
 0x11e   : > { %v4386_v44 = vsel %vm3165_vm15, 4294967295, %v4385_v44  ;;  %v604_v34 = vmax.f32 %v602_v23, %v603_v48  ;;  %v630_v62 = vsel %vm4373_vm4, %v629_v39, -inf  ;;  %v563_v63 = vrot.slane %v562_v22, 2 }
 0x11f   : > { %v577_v14 = vrot.slane %v576_v17, 2  ;;  %v591_v26 = vrot.slane %v590_v37, 2  ;;  %v631_v32 = vrot.slane %v630_v62, 4  ;;  %vm3173_vm7 = vcmp.eq.s32.totalorder %v611_v51, 1 }
 0x120   : > { %v605_v38 = vrot.slane %v604_v34, 2  ;;  %v4387_v56 = vmov 0  ;;  %v618_v52 = vmax.f32 %v616_v8, %v617_v2  ;;  %v643_v23 = vsel %vm2723_vm6, %v642_v60, -inf }
 0x121   : > { %v4388_v56 = vsel %vm3173_vm7, 4294967295, %v4387_v56  ;;  %v564_v39 = vmax.f32 %v562_v22, %v563_v63  ;;  %v578_v48 = vmax.f32 %v576_v17, %v577_v14  ;;  %v592_v27 = vmax.f32 %v590_v37, %v591_v26 }
 0x122   : > { %v632_v57 = vmax.f32 %v630_v62, %v631_v32  ;;  %v606_v51 = vmax.f32 %v604_v34, %v605_v38  ;;  %v619_v24 = vrot.slane %v618_v52, 2  ;;  %v644_v2 = vsel %vm4373_vm4, %v643_v23, -inf }
 0x123   : > { %v565_v8 = vrot.slane %v564_v39, 1  ;;  %v579_v55 = vrot.slane %v578_v48, 1  ;;  %v593_v60 = vrot.slane %v592_v27, 1  ;;  %v639_v63 = vstv %s3182_s1 }
 0x124   : > { %v633_v53 = vrot.slane %v632_v57, 2  ;;  %v607_v22 = vrot.slane %v606_v51, 1  ;;  %v620_v17 = vmax.f32 %v618_v52, %v619_v24  ;;  %v645_v14 = vrot.slane %v644_v2, 4 }
 0x125   : > { %v3199_v34 = vmax.f32 %v564_v39, %v565_v8  ;;  %v3201_v37 = vmax.f32 %v578_v48, %v579_v55  ;;  %v3203_v62 = vmax.f32 %v592_v27, %v593_v60  ;;  %vm3207_vm4 = vcmp.eq.s32.totalorder %v625_v25, 1 }
 0x126   : > { %v634_v26 = vmax.f32 %v632_v57, %v633_v53  ;;  %v3205_v32 = vmax.f32 %v606_v51, %v607_v22  ;;  %v621_v38 = vrot.slane %v620_v17, 1  ;;  %v4392_v23 = vmov 0 }
 0x127   : > { %4390 = vst [vmem:[#allocation48_spill] sm:$0xff] %v3199_v34  ;;  %4391 = vst [vmem:[#allocation49_spill] sm:$0xff] %v3201_v37  ;;  %v4393_v23 = vsel %vm3207_vm4, 4294967295, %v4392_v23  ;;  %v646_v24 = vmax.f32 %v644_v2, %v645_v14  ;;  %vm3230_vm0 = vcmp.eq.s32.totalorder %v639_v63, 1  ;;  %v4394_v39 = vmov 0 }
 0x128   : > { %v635_v25 = vrot.slane %v634_v26, 1  ;;  %v3228_v52 = vmax.f32 %v620_v17, %v621_v38  ;;  %v4395_v39 = vsel %vm3230_vm0, 4294967295, %v4394_v39  ;;  %v653_v60 = vstv %s652_s24 }
 0x129   : > { %v647_v48 = vrot.slane %v646_v24, 2  ;;  %vm3242_vm13 = vcmp.eq.s32.totalorder %v653_v60, 1  ;;  %v4397_v17 = vmov 0  ;;  %v2244_v38 = vmov -inf  }
 0x12a   : > { %v3234_v51 = vmax.f32 %v634_v26, %v635_v25  ;;  %v4398_v17 = vsel %vm3242_vm13, 4294967295, %v4397_v17  ;;  %v2232_v25 = vmov (!%p1316_p11), -inf  }
 0x12b   : > { %v648_v8 = vmax.f32 %v646_v24, %v647_v48  ;;  %4399 = vst [vmem:[#allocation51_spill] sm:$0xff] %v4398_v17  ;;  %v2248_v24 = vmov -inf   ;;  %1319 = sbr.rel (%p1316_p11) target bundleno = 316 (0x13c), region = 159  ;;  %v2236_v48 = vmov (!%p1316_p11), -inf  }
 0x12c   : > { %4396 = vst [vmem:[#allocation50_spill] sm:$0xff] %v3234_v51 }
 0x12d   : > { %v649_v14 = vrot.slane %v648_v8, 1 }
 0x12f   : > { %v3246_v63 = vmax.f32 %v648_v8, %v649_v14 }
 0x131   : > { %4400 = vst [vmem:[#allocation52_spill] sm:$0xff] %v3246_v63 }
 0x132 LB: >> { %s1421_s4 = sshll.u32 %s2242_s13, 3  ;;  %s662_s13 = sadd.s32 1, %s2242_s13   ;;  %s2242_s13 = sphi %s2240_s13, %s662_s13   ;;  %v2238_v48 = vphi %v2236_v48, %v2237_v48   ;;  %v2234_v25 = vphi %v2232_v25, %v2233_v25  }
 0x133   : >> { %s669_s17 = scalar_lea.vmem %s2523_s7, %s1421_s4 [#allocation9]  ;;  %p661_p7 = scmp.ge.s32.totalorder %s662_s13, %s3171_s15 }
 0x134   : >> { %v1438_v8 = vld [vmem:[%s669_s17] sm:$0xff]  }
 0x135   : >> { %v1439_v60 = vunpack.c.l.bf16 %v1438_v8  ;;  %v1440_v14 = vunpack.c.h.bf16 %v1438_v8  ;;  %664 = sbr.rel (!%p661_p7) target bundleno = 306 (0x132), region = 165 }
 0x137   : >> { %v674_v53 = vmax.f32 %v2238_v48, %v1439_v60   ;;  %v675_v55 = vmax.f32 %v2234_v25, %v1440_v14  }
 0x139   : >> { %v2233_v25 = vmov %v675_v55   ;;  %v2237_v48 = vmov %v674_v53   ;;  %v2245_v38 = vmov (%p661_p7), %v675_v55   ;;  %v2249_v24 = vmov (%p661_p7), %v674_v53  }
 0x13c PF: > { %vm4401_vm3 = vcmask 523264   ;;  %p687_p10 = por %p3195_p5, %p2566_p9  ;;  %p701_p12 = por %p3195_p5, %p2583_p2  ;;  %v4406_v34 = vmov 0  ;;  %v2250_v24 = vphi %v2248_v24, %v2249_v24   ;;  %v2246_v38 = vphi %v2244_v38, %v2245_v38  }
 0x13d   : > { %676 = vst.msk [vmem:[#allocation2] sm:$0xff] %vm4401_vm3, %v2250_v24  ;;  %vm4402_vm13 = vmmov %vm4401_vm3  ;;  %p715_p3 = por %p3195_p5, %p2591_p6  ;;  %p729_p13 = por %p3195_p5, %p2608_p0 }
 0x13e   : > { %677 = vst.msk [vmem:[#allocation2 + $0x8] sm:$0xff] %vm4402_vm13, %v2246_v38  ;;  %s688_s0 = scalar_select %p687_p10, 1, 0  ;;  %vm4403_vm13 = vmmov %vm4401_vm3 }
 0x13f   : > { %s702_s10 = scalar_select %p701_p12, 1, 0  ;;  %vm4404_vm0 = vmmov %vm4401_vm3 }
 0x140   : > { %s3274_s30 = scalar_select %p715_p3, 1, 0  ;;  %v689_v55 = vstv %s688_s0  ;;  %vm4405_vm4 = vmmov %vm4404_vm0 }
 0x141   : > { %v703_v24 = vstv %s702_s10  ;;  %s3279_s11 = scalar_select %p729_p13, 1, 0  ;;  %vm3301_vm15 = vcmp.eq.s32.totalorder %v689_v55, 1 }
 0x142   : > { %v717_v14 = vstv %s3274_s30  ;;  %p743_p11 = por %p3195_p5, %p2666_p4  ;;  %v4407_v34 = vsel %vm3301_vm15, 4294967295, %v4406_v34  ;;  %p757_p7 = por %p3195_p5, %p2680_p8 }
 0x143   : > { %4408 = vst [vmem:[#allocation53_spill] sm:$0xff] %v4407_v34  ;;  %s3319_s15 = sld [smem:[#allocation5 + %s2573_s19]]   ;;  %p771_p10 = por %p3195_p5, %p2690_p1 }
 0x144   : > { %s3327_s1 = scalar_select %p743_p11, 1, 0 }
 0x145   : > { %v678_v53 = vld [vmem:[%s2754_s22] sm:$0xff]  ;;  %s3336_s24 = sld [smem:[#allocation6 + %s2573_s19]] }
 0x146   : > { %v692_v38 = vld [vmem:[%s2758_s3] sm:$0xff]  ;;  %v679_v48 = vsel %vm2612_vm2, %v678_v53, -inf  ;;  %s3347_s13 = scalar_select %p757_p7, 1, 0  ;;  %v745_v63 = vstv %s3327_s1 }
 0x147   : > { %v706_v25 = vld [vmem:[%s2763_s2] sm:$0xff]  ;;  %v693_v8 = vsel %vm2634_vm5, %v692_v38, -inf  ;;  %v680_v2 = vsel %vm4401_vm3, %v679_v48, -inf  ;;  %vm3305_vm3 = vcmp.eq.s32.totalorder %v703_v24, 1  ;;  %v4409_v48 = vmov 0 }
 0x148   : > { %v707_v60 = vsel %vm2646_vm8, %v706_v25, -inf  ;;  %v720_v26 = vld [vmem:[%s2778_s27] sm:$0xff]  ;;  %v694_v53 = vsel %vm4403_vm13, %v693_v8, -inf  ;;  %v681_v25 = vrot.slane %v680_v2, 4  ;;  %v4410_v48 = vsel %vm3305_vm3, 4294967295, %v4409_v48  ;;  %vm4415_vm13 = vmmov %vm4404_vm0 }
 0x149   : > { %v734_v22 = vld [vmem:[%s2782_s26] sm:$0xff]  ;;  %v708_v57 = vsel %vm4404_vm0, %v707_v60, -inf  ;;  %v721_v38 = vsel %vm2670_vm11, %v720_v26, -inf  ;;  %v695_v27 = vrot.slane %v694_v53, 4  ;;  %4411 = vst [vmem:[#allocation54_spill] sm:$0xff] %v4410_v48  ;;  %v731_v26 = vstv %s3279_s11 }
 0x14a   : > { %v709_v54 = vrot.slane %v708_v57, 4  ;;  %v722_v37 = vsel %vm4405_vm4, %v721_v38, -inf  ;;  %v748_v40 = vld [vmem:[%s2809_s9] sm:$0xff]  ;;  %v735_v60 = vsel %vm2710_vm14, %v734_v22, -inf  ;;  %v682_v55 = vmax.f32 %v680_v2, %v681_v25  ;;  %s772_s4 = scalar_select %p771_p10, 1, 0 }
 0x14b   : > { %v723_v8 = vrot.slane %v722_v37, 4  ;;  %v749_v12 = vsel %vm2719_vm1, %v748_v40, -inf  ;;  %v696_v38 = vmax.f32 %v694_v53, %v695_v27  ;;  %v736_v0 = vsel %vm4404_vm0, %v735_v60, -inf  ;;  %v762_v22 = vld [vmem:[%s2824_s21] sm:$0xff]  ;;  %p3360_p12 = scmp.le.s32.totalorder %s3336_s24, %s3319_s15  ;;  %p1327_p5 = scmp.ge.s32.totalorder %s3319_s15, %s3336_s24 }
 0x14c   : > { %v710_v24 = vmax.f32 %v708_v57, %v709_v54  ;;  %vm3330_vm4 = vcmp.eq.s32.totalorder %v717_v14, 1  ;;  %v4412_v40 = vmov 0  ;;  %v737_v43 = vrot.slane %v736_v0, 4  ;;  %s2260_s14 = smov (!%p1327_p5), %s3319_s15  }
 0x14d   : > { %v4413_v40 = vsel %vm3330_vm4, 4294967295, %v4412_v40  ;;  %v724_v58 = vmax.f32 %v722_v37, %v723_v8  ;;  %v750_v2 = vsel %vm4415_vm13, %v749_v12, -inf  ;;  %v683_v54 = vrot.slane %v682_v55, 2 }
 0x14e   : > { %4414 = vst [vmem:[#allocation55_spill] sm:$0xff] %v4413_v40  ;;  %v697_v57 = vrot.slane %v696_v38, 2  ;;  %v711_v27 = vrot.slane %v710_v24, 2  ;;  %v751_v53 = vrot.slane %v750_v2, 4  ;;  %vm3338_vm0 = vcmp.eq.s32.totalorder %v731_v26, 1 }
 0x14f   : > { %v725_v25 = vrot.slane %v724_v58, 2  ;;  %v4416_v60 = vmov 0  ;;  %v738_v14 = vmax.f32 %v736_v0, %v737_v43  ;;  %v763_v12 = vsel %vm2723_vm6, %v762_v22, -inf }
 0x150   : > { %v4417_v60 = vsel %vm3338_vm0, 4294967295, %v4416_v60  ;;  %v684_v37 = vmax.f32 %v682_v55, %v683_v54  ;;  %v698_v8 = vmax.f32 %v696_v38, %v697_v57  ;;  %v712_v41 = vmax.f32 %v710_v24, %v711_v27 }
 0x151   : > { %v752_v10 = vmax.f32 %v750_v2, %v751_v53  ;;  %v726_v26 = vmax.f32 %v724_v58, %v725_v25  ;;  %v739_v6 = vrot.slane %v738_v14, 2  ;;  %v764_v0 = vsel %vm4415_vm13, %v763_v12, -inf }
 0x152   : > { %v685_v43 = vrot.slane %v684_v37, 1  ;;  %v699_v17 = vrot.slane %v698_v8, 1  ;;  %v713_v22 = vrot.slane %v712_v41, 1  ;;  %v759_v54 = vstv %s3347_s13 }
 0x153   : > { %v753_v33 = vrot.slane %v752_v10, 2  ;;  %v727_v55 = vrot.slane %v726_v26, 1  ;;  %v740_v38 = vmax.f32 %v738_v14, %v739_v6  ;;  %v765_v57 = vrot.slane %v764_v0, 4 }
 0x154   : > { %v3364_v58 = vmax.f32 %v684_v37, %v685_v43  ;;  %v3366_v24 = vmax.f32 %v698_v8, %v699_v17  ;;  %v3368_v2 = vmax.f32 %v712_v41, %v713_v22  ;;  %vm3372_vm13 = vcmp.eq.s32.totalorder %v745_v63, 1 }
 0x155   : > { %v754_v27 = vmax.f32 %v752_v10, %v753_v33  ;;  %v3370_v53 = vmax.f32 %v726_v26, %v727_v55  ;;  %v741_v25 = vrot.slane %v740_v38, 1  ;;  %v4422_v12 = vmov 0 }
 0x156   : > { %4419 = vst [vmem:[#allocation56_spill] sm:$0xff] %v3364_v58  ;;  %4420 = vst [vmem:[#allocation57_spill] sm:$0xff] %v3366_v24  ;;  %v4423_v12 = vsel %vm3372_vm13, 4294967295, %v4422_v12  ;;  %v766_v6 = vmax.f32 %v764_v0, %v765_v57  ;;  %vm3395_vm7 = vcmp.eq.s32.totalorder %v759_v54, 1  ;;  %v4424_v37 = vmov 0 }
 0x157   : > { %4421 = vst [vmem:[#allocation58_spill] sm:$0xff] %v3368_v2  ;;  %v755_v41 = vrot.slane %v754_v27, 1  ;;  %v3393_v14 = vmax.f32 %v740_v38, %v741_v25  ;;  %v4425_v37 = vsel %vm3395_vm7, 4294967295, %v4424_v37  ;;  %v773_v22 = vstv %s772_s4 }
 0x158   : > { %4426 = vst [vmem:[#allocation59_spill] sm:$0xff] %v4425_v37  ;;  %v767_v8 = vrot.slane %v766_v6, 2  ;;  %vm3407_vm4 = vcmp.eq.s32.totalorder %v773_v22, 1  ;;  %v4428_v38 = vmov 0  ;;  %v2264_v25 = vmov -inf  }
 0x159   : > { %v3399_v26 = vmax.f32 %v754_v27, %v755_v41  ;;  %v4429_v38 = vsel %vm3407_vm4, 4294967295, %v4428_v38  ;;  %v2252_v41 = vmov (!%p1327_p5), -inf  }
 0x15a   : > { %v768_v43 = vmax.f32 %v766_v6, %v767_v8  ;;  %4430 = vst [vmem:[#allocation61_spill] sm:$0xff] %v4429_v38  ;;  %v2268_v6 = vmov -inf   ;;  %1330 = sbr.rel (%p1327_p5) target bundleno = 363 (0x16b), region = 170  ;;  %v2256_v8 = vmov (!%p1327_p5), -inf  }
 0x15b   : > { %4427 = vst [vmem:[#allocation60_spill] sm:$0xff] %v3399_v26 }
 0x15c   : > { %v769_v57 = vrot.slane %v768_v43, 1 }
 0x15e   : > { %v3411_v54 = vmax.f32 %v768_v43, %v769_v57 }
 0x160   : > { %4431 = vst [vmem:[#allocation62_spill] sm:$0xff] %v3411_v54 }
 0x161 LB: >> { %s1422_s17 = sshll.u32 %s2262_s14, 3  ;;  %s782_s14 = sadd.s32 1, %s2262_s14   ;;  %s2262_s14 = sphi %s2260_s14, %s782_s14   ;;  %v2258_v8 = vphi %v2256_v8, %v2257_v8   ;;  %v2254_v41 = vphi %v2252_v41, %v2253_v41  }
 0x162   : >> { %s789_s0 = scalar_lea.vmem %s2523_s7, %s1422_s17 [#allocation9]  ;;  %p781_p3 = scmp.ge.s32.totalorder %s782_s14, %s3336_s24 }
 0x163   : >> { %v1442_v43 = vld [vmem:[%s789_s0] sm:$0xff]  }
 0x164   : >> { %v1443_v22 = vunpack.c.l.bf16 %v1442_v43  ;;  %v1444_v57 = vunpack.c.h.bf16 %v1442_v43  ;;  %784 = sbr.rel (!%p781_p3) target bundleno = 353 (0x161), region = 176 }
 0x166   : >> { %v794_v33 = vmax.f32 %v2258_v8, %v1443_v22   ;;  %v795_v27 = vmax.f32 %v2254_v41, %v1444_v57  }
 0x168   : >> { %v2253_v41 = vmov %v795_v27   ;;  %v2257_v8 = vmov %v794_v33   ;;  %v2265_v25 = vmov (%p781_p3), %v795_v27   ;;  %v2269_v6 = vmov (%p781_p3), %v794_v33  }
 0x16b PF: > { %vm4432_vm4 = vcmask 523264   ;;  %p807_p13 = por %p3360_p12, %p2566_p9  ;;  %p821_p11 = por %p3360_p12, %p2583_p2  ;;  %v2270_v6 = vphi %v2268_v6, %v2269_v6   ;;  %v2266_v25 = vphi %v2264_v25, %v2265_v25  }
 0x16c   : > { %796 = vst.msk [vmem:[#allocation2] sm:$0xff] %vm4432_vm4, %v2270_v6  ;;  %vm4433_vm3 = vmmov %vm4432_vm4  ;;  %p835_p7 = por %p3360_p12, %p2591_p6  ;;  %p849_p10 = por %p3360_p12, %p2608_p0 }
 0x16d   : > { %797 = vst.msk [vmem:[#allocation2 + $0x8] sm:$0xff] %vm4433_vm3, %v2266_v25  ;;  %s808_s10 = scalar_select %p807_p13, 1, 0  ;;  %vm4434_vm4 = vmmov %vm4433_vm3 }
 0x16e   : > { %s822_s30 = scalar_select %p821_p11, 1, 0  ;;  %vm4435_vm7 = vmmov %vm4433_vm3 }
 0x16f   : > { %s3439_s11 = scalar_select %p835_p7, 1, 0  ;;  %v809_v33 = vstv %s808_s10  ;;  %vm4436_vm15 = vmmov %vm4433_vm3 }
 0x170   : > { %v823_v6 = vstv %s822_s30  ;;  %s3444_s15 = scalar_select %p849_p10, 1, 0  ;;  %vm3466_vm0 = vcmp.eq.s32.totalorder %v809_v33, 1 }
 0x171   : > { %v837_v57 = vstv %s3439_s11  ;;  %p863_p5 = por %p3360_p12, %p2666_p4  ;;  %p877_p3 = por %p3360_p12, %p2680_p8 }
 0x172   : > { %s3484_s1 = sld [smem:[#allocation5 + %s2576_s5]]   ;;  %p891_p13 = por %p3360_p12, %p2690_p1 }
 0x173   : > { %s3492_s24 = scalar_select %p863_p5, 1, 0 }
 0x174   : > { %v798_v27 = vld [vmem:[%s2754_s22] sm:$0xff]  ;;  %s3501_s13 = sld [smem:[#allocation6 + %s2576_s5]] }
 0x175   : > { %v812_v25 = vld [vmem:[%s2758_s3] sm:$0xff]  ;;  %v799_v8 = vsel %vm2612_vm2, %v798_v27, -inf  ;;  %s3512_s4 = scalar_select %p877_p3, 1, 0  ;;  %v865_v4 = vstv %s3492_s24 }
 0x176   : > { %v826_v41 = vld [vmem:[%s2763_s2] sm:$0xff]  ;;  %v813_v43 = vsel %vm2634_vm5, %v812_v25, -inf  ;;  %v800_v17 = vsel %vm4433_vm3, %v799_v8, -inf  ;;  %vm3470_vm3 = vcmp.eq.s32.totalorder %v823_v6, 1  ;;  %s892_s14 = scalar_select %p891_p13, 1, 0 }
 0x177   : > { %v827_v22 = vsel %vm2646_vm8, %v826_v41, -inf  ;;  %v840_v10 = vld [vmem:[%s2778_s27] sm:$0xff]  ;;  %v814_v27 = vsel %vm4434_vm4, %v813_v43, -inf  ;;  %v801_v41 = vrot.slane %v800_v17, 4 }
 0x178   : > { %v854_v55 = vld [vmem:[%s2782_s26] sm:$0xff]  ;;  %v828_v63 = vsel %vm4435_vm7, %v827_v22, -inf  ;;  %v841_v25 = vsel %vm2670_vm11, %v840_v10, -inf  ;;  %v815_v0 = vrot.slane %v814_v27, 4  ;;  %v851_v10 = vstv %s3444_s15 }
 0x179   : > { %v829_v2 = vrot.slane %v828_v63, 4  ;;  %v842_v40 = vsel %vm4436_vm15, %v841_v25, -inf  ;;  %v868_v54 = vld [vmem:[%s2809_s9] sm:$0xff]  ;;  %v855_v22 = vsel %vm2710_vm14, %v854_v55, -inf  ;;  %v802_v33 = vmax.f32 %v800_v17, %v801_v41  ;;  %vm4441_vm15 = vmmov %vm4434_vm4 }
 0x17a   : > { %v843_v43 = vrot.slane %v842_v40, 4  ;;  %v869_v24 = vsel %vm2719_vm1, %v868_v54, -inf  ;;  %v816_v25 = vmax.f32 %v814_v27, %v815_v0  ;;  %v856_v48 = vsel %vm4441_vm15, %v855_v22, -inf  ;;  %v882_v55 = vld [vmem:[%s2824_s21] sm:$0xff]  ;;  %p3525_p11 = scmp.le.s32.totalorder %s3501_s13, %s3484_s1  ;;  %p1338_p12 = scmp.ge.s32.totalorder %s3484_s1, %s3501_s13 }
 0x17b   : > { %v830_v6 = vmax.f32 %v828_v63, %v829_v2  ;;  %vm3495_vm7 = vcmp.eq.s32.totalorder %v837_v57, 1  ;;  %v4442_v54 = vmov 0  ;;  %v857_v37 = vrot.slane %v856_v48, 4  ;;  %s2280_s19 = smov (!%p1338_p12), %s3484_s1  }
 0x17c   : > { %v4443_v54 = vsel %vm3495_vm7, 4294967295, %v4442_v54  ;;  %v844_v26 = vmax.f32 %v842_v40, %v843_v43  ;;  %v870_v17 = vsel %vm4434_vm4, %v869_v24, -inf  ;;  %v803_v2 = vrot.slane %v802_v33, 2 }
 0x17d   : > { %4444 = vst [vmem:[#allocation63_spill] sm:$0xff] %v4443_v54  ;;  %v817_v63 = vrot.slane %v816_v25, 2  ;;  %v831_v0 = vrot.slane %v830_v6, 2  ;;  %v871_v27 = vrot.slane %v870_v17, 4  ;;  %vm3503_vm15 = vcmp.eq.s32.totalorder %v851_v10, 1 }
 0x17e   : > { %v845_v41 = vrot.slane %v844_v26, 2  ;;  %v4445_v22 = vmov 0  ;;  %v858_v57 = vmax.f32 %v856_v48, %v857_v37  ;;  %v883_v40 = vsel %vm2723_vm6, %v882_v55, -inf }
 0x17f   : > { %v4446_v22 = vsel %vm3503_vm15, 4294967295, %v4445_v22  ;;  %v804_v24 = vmax.f32 %v802_v33, %v803_v2  ;;  %v818_v43 = vmax.f32 %v816_v25, %v817_v63  ;;  %v832_v58 = vmax.f32 %v830_v6, %v831_v0 }
 0x180   : > { %4447 = vst [vmem:[#allocation64_spill] sm:$0xff] %v4446_v22  ;;  %v872_v34 = vmax.f32 %v870_v17, %v871_v27  ;;  %v846_v10 = vmax.f32 %v844_v26, %v845_v41  ;;  %v859_v31 = vrot.slane %v858_v57, 2  ;;  %v884_v48 = vsel %vm4434_vm4, %v883_v40, -inf }
 0x181   : > { %v805_v37 = vrot.slane %v804_v24, 1  ;;  %v819_v3 = vrot.slane %v818_v43, 1  ;;  %v833_v55 = vrot.slane %v832_v58, 1  ;;  %v879_v2 = vstv %s3512_s4 }
 0x182   : > { %v873_v51 = vrot.slane %v872_v34, 2  ;;  %v847_v33 = vrot.slane %v846_v10, 1  ;;  %v860_v25 = vmax.f32 %v858_v57, %v859_v31  ;;  %v885_v63 = vrot.slane %v884_v48, 4 }
 0x183   : > { %v3529_v26 = vmax.f32 %v804_v24, %v805_v37  ;;  %v3531_v6 = vmax.f32 %v818_v43, %v819_v3  ;;  %v3533_v17 = vmax.f32 %v832_v58, %v833_v55  ;;  %vm3537_vm4 = vcmp.eq.s32.totalorder %v865_v4, 1 }
 0x184   : > { %v874_v0 = vmax.f32 %v872_v34, %v873_v51  ;;  %v3535_v27 = vmax.f32 %v846_v10, %v847_v33  ;;  %v861_v41 = vrot.slane %v860_v25, 1  ;;  %v4451_v40 = vmov 0 }
 0x185   : > { %4449 = vst [vmem:[#allocation65_spill] sm:$0xff] %v3533_v17  ;;  %v4452_v40 = vsel %vm3537_vm4, 4294967295, %v4451_v40  ;;  %v886_v31 = vmax.f32 %v884_v48, %v885_v63  ;;  %vm3560_vm13 = vcmp.eq.s32.totalorder %v879_v2, 1  ;;  %v893_v55 = vstv %s892_s14 }
 0x186   : > { %4450 = vst [vmem:[#allocation66_spill] sm:$0xff] %v3535_v27  ;;  %4453 = vst [vmem:[#allocation67_spill] sm:$0xff] %v4452_v40  ;;  %v875_v51 = vrot.slane %v874_v0, 1  ;;  %v3558_v57 = vmax.f32 %v860_v25, %v861_v41  ;;  %vm3572_vm15 = vcmp.eq.s32.totalorder %v893_v55, 1  ;;  %v4457_v25 = vmov 0 }
 0x187   : > { %v887_v43 = vrot.slane %v886_v31, 2  ;;  %v4458_v25 = vsel %vm3572_vm15, 4294967295, %v4457_v25  ;;  %v2284_v41 = vmov -inf  }
 0x188   : > { %4454 = vst [vmem:[#allocation68_spill] sm:$0xff] %v3558_v57  ;;  %v3564_v10 = vmax.f32 %v874_v0, %v875_v51  ;;  %4459 = vst [vmem:[#allocation69_spill] sm:$0xff] %v4458_v25  ;;  %v2272_v51 = vmov (!%p1338_p12), -inf  }
 0x189   : > { %v888_v37 = vmax.f32 %v886_v31, %v887_v43  ;;  %v2288_v31 = vmov -inf   ;;  %1341 = sbr.rel (%p1338_p12) target bundleno = 410 (0x19a), region = 181  ;;  %v2276_v43 = vmov (!%p1338_p12), -inf  }
 0x18b   : > { %v889_v63 = vrot.slane %v888_v37, 1 }
 0x18d   : > { %v3576_v2 = vmax.f32 %v888_v37, %v889_v63 }
 0x18f   : > { %4460 = vst [vmem:[#allocation70_spill] sm:$0xff] %v3576_v2 }
 0x190 LB: >> { %s1423_s17 = sshll.u32 %s2282_s19, 3  ;;  %s902_s19 = sadd.s32 1, %s2282_s19   ;;  %s2282_s19 = sphi %s2280_s19, %s902_s19   ;;  %v2278_v43 = vphi %v2276_v43, %v2277_v43   ;;  %v2274_v51 = vphi %v2272_v51, %v2273_v51  }
 0x191   : >> { %s909_s0 = scalar_lea.vmem %s2523_s7, %s1423_s17 [#allocation9]  ;;  %p901_p7 = scmp.ge.s32.totalorder %s902_s19, %s3501_s13 }
 0x192   : >> { %v1446_v37 = vld [vmem:[%s909_s0] sm:$0xff]  }
 0x193   : >> { %v1447_v55 = vunpack.c.l.bf16 %v1446_v37  ;;  %v1448_v63 = vunpack.c.h.bf16 %v1446_v37  ;;  %904 = sbr.rel (!%p901_p7) target bundleno = 400 (0x190), region = 187 }
 0x195   : >> { %v914_v58 = vmax.f32 %v2278_v43, %v1447_v55   ;;  %v915_v0 = vmax.f32 %v2274_v51, %v1448_v63  }
 0x197   : >> { %v2273_v51 = vmov %v915_v0   ;;  %v2277_v43 = vmov %v914_v58   ;;  %v2285_v41 = vmov (%p901_p7), %v915_v0   ;;  %v2289_v31 = vmov (%p901_p7), %v914_v58  }
 0x19a PF: > { %vm4461_vm15 = vcmask 523264   ;;  %p927_p10 = por %p3525_p11, %p2566_p9  ;;  %p941_p5 = por %p3525_p11, %p2583_p2  ;;  %v2290_v31 = vphi %v2288_v31, %v2289_v31   ;;  %v2286_v41 = vphi %v2284_v41, %v2285_v41  }
 0x19b   : > { %916 = vst.msk [vmem:[#allocation2] sm:$0xff] %vm4461_vm15, %v2290_v31  ;;  %vm4462_vm7 = vmmov %vm4461_vm15  ;;  %p955_p3 = por %p3525_p11, %p2591_p6  ;;  %p969_p13 = por %p3525_p11, %p2608_p0 }
 0x19c   : > { %917 = vst.msk [vmem:[#allocation2 + $0x8] sm:$0xff] %vm4462_vm7, %v2286_v41  ;;  %s928_s10 = scalar_select %p927_p10, 1, 0  ;;  %vm4463_vm15 = vmmov %vm4462_vm7 }
 0x19d   : > { %s942_s30 = scalar_select %p941_p5, 1, 0 }
 0x19e   : > { %s3604_s11 = scalar_select %p955_p3, 1, 0  ;;  %v929_v58 = vstv %s928_s10 }
 0x19f   : > { %v943_v31 = vstv %s942_s30  ;;  %s3609_s15 = scalar_select %p969_p13, 1, 0 }
 0x1a0   : > { %v957_v63 = vstv %s3604_s11  ;;  %p983_p12 = por %p3525_p11, %p2666_p4  ;;  %p997_p7 = por %p3525_p11, %p2680_p8 }
 0x1a1   : > { %s3649_s1 = sld [smem:[#allocation5 + %s2644_s20]]   ;;  %p1011_p10 = por %p3525_p11, %p2690_p1 }
 0x1a2   : > { %s3657_s24 = scalar_select %p983_p12, 1, 0 }
 0x1a3   : > { %v918_v0 = vld [vmem:[%s2754_s22] sm:$0xff]  ;;  %s3666_s13 = sld [smem:[#allocation6 + %s2644_s20]] }
 0x1a4   : > { %v932_v41 = vld [vmem:[%s2758_s3] sm:$0xff]  ;;  %v919_v43 = vsel %vm2612_vm2, %v918_v0, -inf  ;;  %vm4464_vm2 = vmmov %vm4462_vm7  ;;  %s3677_s4 = scalar_select %p997_p7, 1, 0  ;;  %v985_v9 = vstv %s3657_s24 }
 0x1a5   : > { %v946_v51 = vld [vmem:[%s2763_s2] sm:$0xff]  ;;  %v933_v37 = vsel %vm2634_vm5, %v932_v41, -inf  ;;  %v920_v33 = vsel %vm4462_vm7, %v919_v43, -inf  ;;  %vm3631_vm5 = vcmp.eq.s32.totalorder %v929_v58, 1  ;;  %vm3635_vm7 = vcmp.eq.s32.totalorder %v943_v31, 1 }
 0x1a6   : > { %v947_v55 = vsel %vm2646_vm8, %v946_v51, -inf  ;;  %v960_v4 = vld [vmem:[%s2778_s27] sm:$0xff]  ;;  %v934_v0 = vsel %vm4463_vm15, %v933_v37, -inf  ;;  %v921_v51 = vrot.slane %v920_v33, 4  ;;  %vm4465_vm8 = vmmov %vm4464_vm2  ;;  %s1012_s14 = scalar_select %p1011_p10, 1, 0 }
 0x1a7   : > { %v974_v48 = vld [vmem:[%s2782_s26] sm:$0xff]  ;;  %v948_v34 = vsel %vm4464_vm2, %v947_v55, -inf  ;;  %v961_v41 = vsel %vm2670_vm11, %v960_v4, -inf  ;;  %v935_v3 = vrot.slane %v934_v0, 4  ;;  %v971_v4 = vstv %s3609_s15  ;;  %vm4472_vm15 = vmmov %vm4464_vm2 }
 0x1a8   : > { %v949_v19 = vrot.slane %v948_v34, 4  ;;  %v962_v16 = vsel %vm4465_vm8, %v961_v41, -inf  ;;  %v988_v27 = vld [vmem:[%s2809_s9] sm:$0xff]  ;;  %v975_v55 = vsel %vm2710_vm14, %v974_v48, -inf  ;;  %v922_v58 = vmax.f32 %v920_v33, %v921_v51 }
 0x1a9   : > { %v963_v37 = vrot.slane %v962_v16, 4  ;;  %v989_v21 = vsel %vm2719_vm1, %v988_v27, -inf  ;;  %v936_v41 = vmax.f32 %v934_v0, %v935_v3  ;;  %v976_v2 = vsel %vm4464_vm2, %v975_v55, -inf  ;;  %v1002_v48 = vld [vmem:[%s2824_s21] sm:$0xff]  ;;  %p3690_p5 = scmp.le.s32.totalorder %s3666_s13, %s3649_s1  ;;  %p1349_p11 = scmp.ge.s32.totalorder %s3649_s1, %s3666_s13 }
 0x1aa   : > { %v950_v31 = vmax.f32 %v948_v34, %v949_v19  ;;  %vm3660_vm8 = vcmp.eq.s32.totalorder %v957_v63, 1  ;;  %v977_v29 = vrot.slane %v976_v2, 4  ;;  %v990_v33 = vsel %vm4472_vm15, %v989_v21, -inf  ;;  %s2300_s5 = smov (!%p1349_p11), %s3649_s1  }
 0x1ab   : > { %v964_v35 = vmax.f32 %v962_v16, %v963_v37  ;;  %v923_v19 = vrot.slane %v922_v58, 2  ;;  %v937_v3 = vrot.slane %v936_v41, 2  ;;  %v991_v0 = vrot.slane %v990_v33, 4 }
 0x1ac   : > { %v951_v34 = vrot.slane %v950_v31, 2  ;;  %vm3668_vm2 = vcmp.eq.s32.totalorder %v971_v4, 1  ;;  %v978_v63 = vmax.f32 %v976_v2, %v977_v29  ;;  %v1003_v16 = vsel %vm2723_vm6, %v1002_v48, -inf }
 0x1ad   : > { %v965_v51 = vrot.slane %v964_v35, 2  ;;  %v924_v21 = vmax.f32 %v922_v58, %v923_v19  ;;  %v938_v37 = vmax.f32 %v936_v41, %v937_v3  ;;  %v992_v17 = vmax.f32 %v990_v33, %v991_v0 }
 0x1ae   : > { %v952_v25 = vmax.f32 %v950_v31, %v951_v34  ;;  %v979_v54 = vrot.slane %v978_v63, 2  ;;  %v1004_v29 = vsel %vm4472_vm15, %v1003_v16, -inf  ;;  %v999_v19 = vstv %s3677_s4 }
 0x1af   : > { %v966_v4 = vmax.f32 %v964_v35, %v965_v51  ;;  %v925_v2 = vrot.slane %v924_v21, 1  ;;  %v939_v57 = vrot.slane %v938_v37, 1  ;;  %v993_v40 = vrot.slane %v992_v17, 2 }
 0x1b0   : > { %v953_v48 = vrot.slane %v952_v25, 1  ;;  %v980_v41 = vmax.f32 %v978_v63, %v979_v54  ;;  %v1005_v3 = vrot.slane %v1004_v29, 4  ;;  %vm3702_vm15 = vcmp.eq.s32.totalorder %v985_v9, 1 }
 0x1b1   : > { %v967_v58 = vrot.slane %v966_v4, 1  ;;  %v3694_v35 = vmax.f32 %v924_v21, %v925_v2  ;;  %v3696_v31 = vmax.f32 %v938_v37, %v939_v57  ;;  %v994_v34 = vmax.f32 %v992_v17, %v993_v40 }
 0x1b2   : > { %v3698_v33 = vmax.f32 %v952_v25, %v953_v48  ;;  %v981_v51 = vrot.slane %v980_v41, 1  ;;  %v1006_v54 = vmax.f32 %v1004_v29, %v1005_v3  ;;  %vm3725_vm1 = vcmp.eq.s32.totalorder %v999_v19, 1 }
 0x1b3   : > { %v3700_v0 = vmax.f32 %v966_v4, %v967_v58  ;;  %v931_v57 = vsel %vm3631_vm5, 0.0, %v3694_v35  ;;  %v945_v17 = vsel %vm3635_vm7, 0.0, %v3696_v31  ;;  %v995_v40 = vrot.slane %v994_v34, 1 }
 0x1b4   : > { %v959_v9 = vsel %vm3660_vm8, 0.0, %v3698_v33  ;;  %v3723_v63 = vmax.f32 %v980_v41, %v981_v51  ;;  %v4478_v21 = vmov 0  ;;  %v1007_v37 = vrot.slane %v1006_v54, 2  ;;  %1352 = sbr.rel (%p1349_p11) target bundleno = 453 (0x1c5), region = 192 }
 0x1b5   : > { %v973_v25 = vsel %vm3668_vm2, 0.0, %v3700_v0  ;;  %v4479_v21 = vsel %vm3725_vm1, 4294967295, %v4478_v21  ;;  %v3729_v4 = vmax.f32 %v994_v34, %v995_v40  ;;  %v1013_v48 = vstv %s1012_s14 }
 0x1b6   : > { %v987_v29 = vsel %vm3702_vm15, 0.0, %v3723_v63  ;;  %v1008_v2 = vmax.f32 %v1006_v54, %v1007_v37  ;;  %vm3737_vm14 = vcmp.eq.s32.totalorder %v1013_v48, 1  ;;  %v4480_v41 = vmov 0 }
 0x1b7   : > { %v4481_v41 = vsel %vm3737_vm14, 4294967295, %v4480_v41  ;;  %v2304_v51 = vmov -inf   ;;  %v2308_v54 = vmov -inf   ;;  %v2292_v40 = vmov (!%p1349_p11), -inf  }
 0x1b8   : > { %v1009_v3 = vrot.slane %v1008_v2, 1  ;;  %v2296_v37 = vmov (!%p1349_p11), -inf  }
 0x1ba   : > { %v3741_v19 = vmax.f32 %v1008_v2, %v1009_v3 }
 0x1bb LB: >> { %s1424_s19 = sshll.u32 %s2302_s5, 3  ;;  %s1022_s5 = sadd.s32 1, %s2302_s5   ;;  %s2302_s5 = sphi %s2300_s5, %s1022_s5   ;;  %v2298_v37 = vphi %v2296_v37, %v2297_v37   ;;  %v2294_v40 = vphi %v2292_v40, %v2293_v40  }
 0x1bc   : >> { %s1029_s17 = scalar_lea.vmem %s2523_s7, %s1424_s19 [#allocation9]  ;;  %p1021_p3 = scmp.ge.s32.totalorder %s1022_s5, %s3666_s13 }
 0x1bd   : >> { %v1450_v2 = vld [vmem:[%s1029_s17] sm:$0xff]  }
 0x1be   : >> { %v1451_v48 = vunpack.c.l.bf16 %v1450_v2  ;;  %v1452_v3 = vunpack.c.h.bf16 %v1450_v2  ;;  %1024 = sbr.rel (!%p1021_p3) target bundleno = 443 (0x1bb), region = 198 }
 0x1c0   : >> { %v1034_v58 = vmax.f32 %v2298_v37, %v1451_v48   ;;  %v1035_v34 = vmax.f32 %v2294_v40, %v1452_v3  }
 0x1c2   : >> { %v2293_v40 = vmov %v1035_v34   ;;  %v2297_v37 = vmov %v1034_v58   ;;  %v2305_v51 = vmov (%p1021_p3), %v1035_v34   ;;  %v2309_v54 = vmov (%p1021_p3), %v1034_v58  }
 0x1c5 PF: > { %vm4482_vm1 = vcmask 523264   ;;  %vm4281_vm11 = vcmask 1040384   ;;  %vm1138_vm15 = vcmask 1041408   ;;  %vm1140_vm2 = vcmask 1042432   ;;  %p1131_p13 = por %p3690_p5, %p2690_p1  ;;  %v4521_v2 = vld [vmem:[#allocation51_spill] sm:$0xff]  ;;  %v4523_v48 = vld [vmem:[#allocation52_spill] sm:$0xff]  ;;  %p1047_p12 = por %p3690_p5, %p2566_p9  ;;  %v2310_v54 = vphi %v2308_v54, %v2309_v54   ;;  %v2306_v51 = vphi %v2304_v51, %v2305_v51  }
 0x1c6   : > { %1036 = vst.msk [vmem:[#allocation2] sm:$0xff] %vm4482_vm1, %v2310_v54  ;;  %vm4483_vm14 = vmmov %vm4482_vm1  ;;  %v4484_v40 = vsel %vm2812_vm10, 0.0, %v2871_v46  ;;  %v4485_v34 = vsel %vm2795_vm9, 0.0, %v2869_v45  ;;  %vm4282_vm8 = vcmask 1043456   ;;  %vm4487_vm1 = vnez %v4358_v18  ;;  %p1061_p7 = por %p3690_p5, %p2583_p2  ;;  %v4583_v24 = vld [vmem:[#allocation65_spill] sm:$0xff]  ;;  %p1075_p9 = por %p3690_p5, %p2591_p6 }
 0x1c7   : > { %1037 = vst.msk [vmem:[#allocation2 + $0x8] sm:$0xff] %vm4483_vm14, %v2306_v51  ;;  %v1137_v58 = vsel %vm4281_vm11, %v4485_v34, %v4484_v40  ;;  %v4486_v51 = vsel %vm2827_vm12, 0.0, %v2873_v47  ;;  %vm1146_vm14 = vcmask 1045504   ;;  %v4488_v7 = vsel %vm4487_vm1, 0.0, %v3038_v13  ;;  %v4525_v34 = vld [vmem:[#allocation38_spill] sm:$0xff]  ;;  %p1089_p2 = por %p3690_p5, %p2608_p0  ;;  %p1103_p1 = por %p3690_p5, %p2666_p4 }
 0x1c8   : > { %v1139_v54 = vsel %vm1138_vm15, %v1137_v58, %v4486_v51  ;;  %vm4489_vm10 = vnez %v4356_v59  ;;  %vm4491_vm9 = vnez %v4388_v56  ;;  %vm4493_vm7 = vnez %v4386_v44  ;;  %v4527_v58 = vld [vmem:[#allocation39_spill] sm:$0xff]  ;;  %s3918_s7 = scalar_select %p1131_p13, 1, 0 }
 0x1c9   : > { %v4490_v1 = vsel %vm4489_vm10, 0.0, %v3036_v5  ;;  %v4492_v46 = vsel %vm4491_vm9, 0.0, %v3205_v32  ;;  %v4494_v11 = vsel %vm4493_vm7, 0.0, %v3203_v62  ;;  %vm4495_vm12 = vnez %v4340_v42  ;;  %s3967_s6 = scalar_select %p1047_p12, 1, 0 }
 0x1ca   : > { %v1150_v45 = vsel %vm4281_vm11, %v4490_v1, %v4488_v7  ;;  %v1157_v47 = vsel %vm4281_vm11, %v4494_v11, %v4492_v46  ;;  %v4496_v18 = vsel %vm4495_vm12, 0.0, %v2875_v49  ;;  %vm4497_vm1 = vnez %v4360_v30  ;;  %v4529_v7 = vld [vmem:[#allocation44_spill] sm:$0xff]  ;;  %v4531_v1 = vld [vmem:[#allocation45_spill] sm:$0xff]  ;;  %s3995_s25 = scalar_select %p1061_p7, 1, 0 }
 0x1cb   : > { %v1141_v59 = vsel %vm1140_vm2, %v1139_v54, %v4496_v18  ;;  %v4498_v5 = vsel %vm4497_vm1, 0.0, %v3040_v15  ;;  %vm4499_vm10 = vnez %v4393_v23  ;;  %vm4501_vm7 = vnez %v4423_v12  ;;  %v4517_v12 = vld [vmem:[#allocation42_spill] sm:$0xff]  ;;  %v4533_v11 = vld [vmem:[#allocation53_spill] sm:$0xff]  ;;  %s4029_s29 = scalar_select %p1075_p9, 1, 0 }
 0x1cc   : > { %v1151_v13 = vsel %vm1138_vm15, %v1150_v45, %v4498_v5  ;;  %v4500_v44 = vsel %vm4499_vm10, 0.0, %v3228_v52  ;;  %v4502_v42 = vsel %vm4501_vm7, 0.0, %v3393_v14  ;;  %vm4503_vm9 = vnez %v4417_v60  ;;  %v4510_v52 = vld [vmem:[#allocation50_spill] sm:$0xff]  ;;  %v4519_v14 = vld [vmem:[#allocation43_spill] sm:$0xff]  ;;  %s4054_s18 = scalar_select %p1089_p2, 1, 0 }
 0x1cd   : > { %v1158_v56 = vsel %vm1138_vm15, %v1157_v47, %v4500_v44  ;;  %v4504_v49 = vsel %vm4503_vm9, 0.0, %v3370_v53  ;;  %vm4505_vm12 = vnez %v4343_v50  ;;  %vm1148_vm1 = vcmask 1046528   ;;  %v4514_v53 = vld [vmem:[#allocation37_spill] sm:$0xff]  ;;  %v4535_v47 = vld [vmem:[#allocation56_spill] sm:$0xff]  ;;  %v4538_v5 = vld [vmem:[#allocation59_spill] sm:$0xff]  ;;  %p1117_p6 = por %p3690_p5, %p2680_p8  ;;  %s4629_s8 = sld [smem:[#allocation19_spill]] }
 0x1ce   : > { %v1164_v30 = vsel %vm4281_vm11, %v4504_v49, %v4502_v42  ;;  %v4506_v15 = vsel %vm4505_vm12, 0.0, %v2898_v61  ;;  %vm4507_vm10 = vnez %v4364_v20  ;;  %vm4509_vm7 = vnez %v4395_v39  ;;  %v4512_v61 = vld [vmem:[#allocation36_spill] sm:$0xff]  ;;  %v1122_v42 = vld [vmem:[%s2824_s21] sm:$0xff]  ;;  %s4065_s12 = scalar_select %p1103_p1, 1, 0 }
 0x1cf   : > { %v1143_v62 = vsel %vm4282_vm8, %v1141_v59, %v4506_v15  ;;  %v4508_v32 = vsel %vm4507_vm10, 0.0, %v3063_v28  ;;  %v4511_v60 = vsel %vm4509_vm7, 0.0, %v4510_v52  ;;  %vm4513_vm9 = vnez %v4512_v61  ;;  %v4542_v49 = vld [vmem:[#allocation40_spill] sm:$0xff]  ;;  %v4544_v15 = vld [vmem:[#allocation41_spill] sm:$0xff]  ;;  %v4550_v61 = vld [vmem:[#allocation54_spill] sm:$0xff]  ;;  %s2320_s30 = smov [#allocation12]  }
 0x1d0   : > { %v1152_v23 = vsel %vm1140_vm2, %v1151_v13, %v4508_v32  ;;  %v1159_v50 = vsel %vm1140_vm2, %v1158_v56, %v4511_v60  ;;  %v4515_v20 = vsel %vm4513_vm9, 0.0, %v4514_v53  ;;  %vm4516_vm12 = vcmask 1044480   ;;  %v4540_v13 = vld [vmem:[#allocation60_spill] sm:$0xff]  ;;  %v4552_v53 = vld [vmem:[#allocation57_spill] sm:$0xff]  ;;  %v1094_v63 = vld [vmem:[%s2782_s26] sm:$0xff]  ;;  %s1926_s11 = sshll.u32 %s2320_s30, 4  ;;  %s1927_s11 = int_to_ptr.vmem [resolvable:$false] %s1926_s11 }
 0x1d1   : > { %v1145_v28 = vsel %vm4516_vm12, %v1143_v62, %v4515_v20  ;;  %vm4518_vm10 = vnez %v4517_v12  ;;  %vm4522_vm7 = vnez %v4521_v2  ;;  %vm4526_vm11 = vnez %v4525_v34  ;;  %v4548_v52 = vld [vmem:[#allocation48_spill] sm:$0xff]  ;;  %v4556_v12 = vld [vmem:[#allocation62_spill] sm:$0xff]  ;;  %s1118_s23 = scalar_select %p1117_p6, 1, 0 }
 0x1d2   : > { %v4520_v39 = vsel %vm4518_vm10, 0.0, %v4519_v14  ;;  %v4524_v3 = vsel %vm4522_vm7, 0.0, %v4523_v48  ;;  %v4528_v51 = vsel %vm4526_vm11, 0.0, %v4527_v58  ;;  %vm4530_vm9 = vnez %v4529_v7  ;;  %vm4537_vm7 = vmmov %vm4516_vm12  ;;  %v4559_v48 = vld [vmem:[#allocation47_spill] sm:$0xff]  ;;  %s1928_s15 = scalar_lea.vmem %s1927_s11, 1792 }
 0x1d3   : > { %v1153_v37 = vsel %vm4282_vm8, %v1152_v23, %v4520_v39  ;;  %v1160_v40 = vsel %vm4282_vm8, %v1159_v50, %v4524_v3  ;;  %v1147_v54 = vsel %vm1146_vm14, %v1145_v28, %v4528_v51  ;;  %v4532_v45 = vsel %vm4530_vm9, 0.0, %v4531_v1  ;;  %v4546_v23 = vld [vmem:[#allocation46_spill] sm:$0xff]  ;;  %v4554_v28 = vld [vmem:[#allocation61_spill] sm:$0xff]  ;;  %v4563_v58 = vld [vmem:[#allocation55_spill] sm:$0xff] }
 0x1d4   : > { %v1154_v46 = vsel %vm4516_vm12, %v1153_v37, %v4532_v45  ;;  %vm4534_vm10 = vnez %v4533_v11  ;;  %vm4539_vm8 = vnez %v4538_v5  ;;  %vm4543_vm11 = vnez %v4542_v49  ;;  %v1038_v37 = vld [vmem:[%s2754_s22] sm:$0xff]  ;;  %v4561_v3 = vld [vmem:[#allocation49_spill] sm:$0xff]  ;;  %s4631_s22 = sld [smem:[#allocation27_spill]] }
 0x1d5   : > { %v4536_v18 = vsel %vm4534_vm10, 0.0, %v4535_v47  ;;  %v4541_v44 = vsel %vm4539_vm8, 0.0, %v4540_v13  ;;  %v4545_v62 = vsel %vm4543_vm11, 0.0, %v4544_v15  ;;  %vm4547_vm9 = vnez %v4546_v23  ;;  %v4565_v51 = vld [vmem:[#allocation58_spill] sm:$0xff]  ;;  %v4576_v47 = vld [vmem:[#allocation68_spill] sm:$0xff] }
 0x1d6   : > { %v1161_v59 = vsel %vm4537_vm7, %v1160_v40, %v4536_v18  ;;  %v1165_v56 = vsel %vm1138_vm15, %v1164_v30, %v4541_v44  ;;  %v1149_v32 = vsel %vm1148_vm1, %v1147_v54, %v4545_v62  ;;  %v4549_v60 = vsel %vm4547_vm9, 0.0, %v4548_v52  ;;  %v4579_v5 = vld [vmem:[#allocation30_spill] sm:$0xff]  ;;  %v4581_v44 = vld [vmem:[#allocation63_spill] sm:$0xff]  ;;  %v4590_v23 = vld [vmem:[#allocation64_spill] sm:$0xff] }
 0x1d7   : > { %v1155_v50 = vsel %vm1146_vm14, %v1154_v46, %v4549_v60  ;;  %vm4551_vm8 = vnez %v4550_v61  ;;  %vm4555_vm12 = vnez %v4554_v28  ;;  %v1123_v2 = vsel %vm2723_vm6, %v1122_v42, -inf  ;;  %v4585_v42 = vld [vmem:[#allocation69_spill] sm:$0xff]  ;;  %v4587_v49 = vld [vmem:[#allocation70_spill] sm:$0xff] }
 0x1d8   : > { %v4553_v20 = vsel %vm4551_vm8, 0.0, %v4552_v53  ;;  %v4557_v14 = vsel %vm4555_vm12, 0.0, %v4556_v12  ;;  %vm4558_vm10 = vcmask 523264   ;;  %vm4560_vm7 = vnez %v4559_v48  ;;  %v4592_v52 = vld [vmem:[#allocation66_spill] sm:$0xff] }
 0x1d9   : > { %v1162_v30 = vsel %vm1146_vm14, %v1161_v59, %v4553_v20  ;;  %v1166_v39 = vsel %vm1140_vm2, %v1165_v56, %v4557_v14  ;;  %1185 = vst.msk [vmem:[%s2728_s16] sm:$0xff] %vm4558_vm10, %v1149_v32  ;;  %v4562_v40 = vsel %vm4560_vm7, 0.0, %v4561_v3  ;;  %vm4564_vm11 = vnez %v4563_v58  ;;  %vm4569_vm6 = vmmov %vm4558_vm10  ;;  %v1108_v11 = vld [vmem:[%s2809_s9] sm:$0xff]  ;;  %s4632_s9 = sld [smem:[#allocation72_spill]] }
 0x1da   : > { %v1156_v34 = vsel %vm1148_vm1, %v1155_v50, %v4562_v40  ;;  %v4566_v54 = vsel %vm4564_vm11, 0.0, %v4565_v51  ;;  %v4567_v1 = vsel %vm3466_vm0, 0.0, %v3529_v26  ;;  %vm4568_vm9 = vcmask 1043456   ;;  %vm4570_vm8 = vmmov %vm4569_vm6  ;;  %p4635_p4 = scmp.ne.s32.totalorder %s4631_s22, 0 }
 0x1db   : > { %v1163_v7 = vsel %vm1148_vm1, %v1162_v30, %v4566_v54  ;;  %v1167_v36 = vsel %vm4568_vm9, %v1166_v39, %v4567_v1  ;;  %v1124_v45 = vsel %vm4569_vm6, %v1123_v2, -inf  ;;  %1186 = vst.msk [vmem:[%s2728_s16 + $0x8] sm:$0xff] %vm4570_vm8, %v1156_v34  ;;  %vm4571_vm12 = vmmov %vm4569_vm6  ;;  %v4572_v38 = vsel %vm3470_vm3, 0.0, %v3531_v6  ;;  %v1052_v6 = vld [vmem:[%s2758_s3] sm:$0xff]  ;;  %v4597_v30 = vld [vmem:[#allocation31_spill] sm:$0xff]  ;;  %s1454_s3 = smul.u32 896, %s2162_s28 }
 0x1dc   : > { %1187 = vst.msk [vmem:[%s2728_s16 + $0x10] sm:$0xff] %vm4571_vm12, %v1163_v7  ;;  %vm4573_vm0 = vcmask 1044480   ;;  %v4574_v46 = vsel %vm3560_vm13, 0.0, %v3564_v10  ;;  %v4577_v18 = vsel %vm3537_vm4, 0.0, %v4576_v47  ;;  %vm4578_vm10 = vcmask 1040384   ;;  %vm4589_vm4 = vmmov %vm4569_vm6  ;;  %v4603_v2 = vld [vmem:[#allocation32_spill] sm:$0xff] }
 0x1dd   : > { %v1168_v26 = vsel %vm4573_vm0, %v1167_v36, %v4572_v38  ;;  %v1171_v59 = vsel %vm4578_vm10, %v4577_v18, %v4574_v46  ;;  %vm4580_vm7 = vnez %v4579_v5  ;;  %v1125_v13 = vrot.slane %v1124_v45, 4  ;;  %vm4594_vm9 = vmmov %vm4589_vm4  ;;  %v4608_v34 = vld [vmem:[#allocation33_spill] sm:$0xff]  ;;  %s4634_s28 = sand.u32 1, %s4629_s8  }
 0x1de   : > { %v1039_v8 = vsel %vm4580_vm7, %v1038_v37, -inf  ;;  %vm4582_vm3 = vnez %v4581_v44  ;;  %vm4586_vm13 = vnez %v4585_v42  ;;  %vm4591_vm11 = vnez %v4590_v23  ;;  %vm4600_vm10 = vmmov %vm4589_vm4  ;;  %v4618_v42 = vld [vmem:[#allocation35_spill] sm:$0xff]  ;;  %s4121_s0 = scalar_lea.sflag [#allocation11], %s4634_s28 }
 0x1df   : > { %v4584_v56 = vsel %vm4582_vm3, 0.0, %v4583_v24  ;;  %v4588_v15 = vsel %vm4586_vm13, 0.0, %v4587_v49  ;;  %v1040_v32 = vsel %vm4589_vm4, %v1039_v8, -inf  ;;  %v4593_v60 = vsel %vm4591_vm11, 0.0, %v4592_v52  ;;  %vm4607_vm6 = vmmov %vm4594_vm9  ;;  %s4114_s21 = scalar_lea.hbm %s4632_s9, %s1454_s3 }
 0x1e0   : > { %v1169_v10 = vsel %vm1146_vm14, %v1168_v26, %v4584_v56  ;;  %v1172_v62 = vsel %vm1138_vm15, %v1171_v59, %v4588_v15  ;;  %v1041_v53 = vrot.slane %v1040_v32, 4  ;;  %v1126_v20 = vmax.f32 %v1124_v45, %v1125_v13  ;;  %vm4612_vm12 = vmmov %vm4607_vm6  ;;  %v4613_v26 = vld [vmem:[#allocation34_spill] sm:$0xff] }
 0x1e1   : > { %v1170_v50 = vsel %vm1148_vm1, %v1169_v10, %v4593_v60  ;;  %v1173_v61 = vsel %vm1140_vm2, %v1172_v62, %v931_v57  ;;  %vm4596_vm8 = vcmask 1043456   ;;  %vm4598_vm5 = vnez %v4597_v30  ;;  %v1066_v57 = vld [vmem:[%s2763_s2] sm:$0xff]  ;;  %vm4617_vm3 = vmmov %vm4607_vm6  ;;  %s1208_s2 = sshll.u32 %s2728_s16, 4  ;;  %s4109_s2 = int_to_ptr.vmem [resolvable:$true] %s1208_s2 }
 0x1e2   : > { %1188 = vst.msk [vmem:[%s2728_s16 + $0x18] sm:$0xff] %vm4594_vm9, %v1170_v50  ;;  %v1174_v22 = vsel %vm4596_vm8, %v1173_v61, %v945_v17  ;;  %v1053_v35 = vsel %vm4598_vm5, %v1052_v6, -inf  ;;  %v1133_v28 = vstv %s3918_s7  ;;  %v1042_v12 = vmax.f32 %v1040_v32, %v1041_v53  ;;  %s1922_s10 = scalar_lea.vmem %s4109_s2, 896  ;;  %p1929_p5 = scmp.lt.s32.totalorder %s4109_s2, %s1927_s11 }
 0x1e3   : > { %v1175_v43 = vsel %vm4573_vm0, %v1174_v22, %v959_v9  ;;  %v1054_v31 = vsel %vm4600_vm10, %v1053_v35, -inf  ;;  %v1127_v17 = vrot.slane %v1126_v20, 2  ;;  %vm1191_vm7 = vcmask 516096   ;;  %v1080_v9 = vld [vmem:[%s2778_s27] sm:$0xff]  ;;  %p1923_p0 = scmp.ne.s32.totalorder %s4109_s2, %s1922_s10  ;;  %p1930_p11 = scmp.lt.s32.totalorder %s1928_s15, %s1922_s10 }
 0x1e4   : > { %v1176_v27 = vsel %vm1146_vm14, %v1175_v43, %v973_v25  ;;  %v1055_v33 = vrot.slane %v1054_v31, 4  ;;  %v1043_v39 = vrot.slane %v1042_v12, 2  ;;  %v1049_v37 = vstv %s3967_s6 }
 0x1e5   : > { %v1177_v14 = vsel %vm1148_vm1, %v1176_v27, %v987_v29  ;;  %vm4604_vm4 = vnez %v4603_v2  ;;  %v1128_v48 = vmax.f32 %v1126_v20, %v1127_v17  ;;  %vm4011_vm11 = vcmp.eq.s32.totalorder %v1133_v28, 1  ;;  %p1924_p8 = pnand %p1923_p0, %p4635_p4  ;;  %p1931_p3 = por %p1930_p11, %p1929_p5 }
 0x1e6   : > { %v1067_v55 = vsel %vm4604_vm4, %v1066_v57, -inf  ;;  %1189 = vst.msk [vmem:[%s2728_s16 + $0x20] sm:$0xff] %vm4594_vm9, %v1177_v14  ;;  %v1056_v25 = vmax.f32 %v1054_v31, %v1055_v33  ;;  %v1044_v29 = vmax.f32 %v1042_v12, %v1043_v39  ;;  %v1063_v3 = vstv %s3995_s25  ;;  %vm4620_vm4 = vmmov %vm4617_vm3 }
 0x1e7   : > { %v1068_v16 = vsel %vm4607_vm6, %v1067_v55, -inf  ;;  %vm4609_vm8 = vnez %v4608_v34  ;;  %v1129_v51 = vrot.slane %v1128_v48, 1  ;;  %vm4033_vm5 = vcmp.eq.s32.totalorder %v1049_v37, 1  ;;  %p1925_p10 = pneg %p1924_p8 }
 0x1e8   : > { %v1069_v40 = vrot.slane %v1068_v16, 4  ;;  %v1081_v58 = vsel %vm4609_vm8, %v1080_v9, -inf  ;;  %v1057_v7 = vrot.slane %v1056_v25, 2  ;;  %v1045_v36 = vrot.slane %v1044_v29, 1 }
 0x1e9   : > { %v1082_v1 = vsel %vm4612_vm12, %v1081_v58, -inf  ;;  %vm4614_vm0 = vnez %v4613_v26  ;;  %v1130_v47 = vmax.f32 %v1128_v48, %v1129_v51  ;;  %vm4045_vm10 = vcmp.eq.s32.totalorder %v1063_v3, 1  ;;  %p1932_p13 = pnand %p1931_p3, %p1925_p10 }
 0x1ea   : > { %v1070_v45 = vmax.f32 %v1068_v16, %v1069_v40  ;;  %v1083_v38 = vrot.slane %v1082_v1, 4  ;;  %v1095_v46 = vsel %vm4614_vm0, %v1094_v63, -inf  ;;  %v1058_v18 = vmax.f32 %v1056_v25, %v1057_v7  ;;  %vm4633_vm0 = vmmov %vm4617_vm3 }
 0x1eb   : > { %v1096_v5 = vsel %vm4617_vm3, %v1095_v46, -inf  ;;  %v1046_v8 = vmax.f32 %v1044_v29, %v1045_v36  ;;  %v1135_v24 = vsel %vm4011_vm11, 0.0, %v1130_v47  ;;  %v1077_v10 = vstv %s4029_s29 }
 0x1ec   : > { %v1071_v6 = vrot.slane %v1070_v45, 2  ;;  %v1084_v13 = vmax.f32 %v1082_v1, %v1083_v38  ;;  %v1097_v44 = vrot.slane %v1096_v5, 4  ;;  %v1059_v56 = vrot.slane %v1058_v18, 1  ;;  %1192 = vst.msk [vmem:[%s2728_s16 + $0x30] sm:$0x1] %vm1191_vm7, %v1135_v24 }
 0x1ed   : > { %vm4619_vm13 = vnez %v4618_v42  ;;  %v1051_v15 = vsel %vm4033_vm5, 0.0, %v1046_v8  ;;  %v1091_v60 = vstv %s4054_s18  ;;  %vm4621_vm11 = vnez %v4481_v41 }
 0x1ee   : > { %v1109_v49 = vsel %vm4619_vm13, %v1108_v11, -inf  ;;  %v1072_v62 = vmax.f32 %v1070_v45, %v1071_v6  ;;  %v1085_v32 = vrot.slane %v1084_v13, 2  ;;  %v1098_v23 = vmax.f32 %v1096_v5, %v1097_v44 }
 0x1ef   : > { %v1060_v52 = vmax.f32 %v1058_v18, %v1059_v56  ;;  %v1110_v50 = vsel %vm4620_vm4, %v1109_v49, -inf  ;;  %v4622_v61 = vsel %vm4621_vm11, 0.0, %v3741_v19  ;;  %vm4623_vm7 = vnez %v4479_v21 }
 0x1f0   : > { %v4624_v53 = vsel %vm4623_vm7, 0.0, %v3729_v4  ;;  %vm4625_vm9 = vcmask 1040384   ;;  %v1073_v22 = vrot.slane %v1072_v62, 1  ;;  %v1086_v30 = vmax.f32 %v1084_v13, %v1085_v32 }
 0x1f1   : > { %v1178_v20 = vsel %vm4625_vm9, %v4624_v53, %v4622_v61  ;;  %v1099_v35 = vrot.slane %v1098_v23, 2  ;;  %v1111_v57 = vrot.slane %v1110_v50, 4  ;;  %v1065_v28 = vsel %vm4045_vm10, 0.0, %v1060_v52 }
 0x1f2   : > { %vm4090_vm6 = vcmp.eq.s32.totalorder %v1077_v10, 1  ;;  %v1105_v41 = vstv %s4065_s12  ;;  %v1179_v19 = vsel %vm1138_vm15, %v1178_v20, %v1051_v15  ;;  %v1074_v12 = vmax.f32 %v1072_v62, %v1073_v22 }
 0x1f3   : > { %v1087_v21 = vrot.slane %v1086_v30, 1  ;;  %v1100_v31 = vmax.f32 %v1098_v23, %v1099_v35  ;;  %v1112_v4 = vmax.f32 %v1110_v50, %v1111_v57  ;;  %vm1092_vm8 = vcmp.eq.s32.totalorder %v1091_v60, 1 }
 0x1f4   : > { %v1180_v17 = vsel %vm1140_vm2, %v1179_v19, %v1065_v28  ;;  %v1079_v27 = vsel %vm4090_vm6, 0.0, %v1074_v12  ;;  %vm1106_vm15 = vcmp.eq.s32.totalorder %v1105_v41, 1  ;;  %vm4628_vm5 = vcmask 1043456  }
 0x1f5   : > { %v1088_v33 = vmax.f32 %v1086_v30, %v1087_v21  ;;  %v1101_v9 = vrot.slane %v1100_v31, 1  ;;  %v1113_v14 = vrot.slane %v1112_v4, 2  ;;  %v1181_v39 = vsel %vm4628_vm5, %v1180_v17, %v1079_v27 }
 0x1f6   : > { %v1119_v48 = vstv %s1118_s23  ;;  %vm4630_vm12 = vcmask 1044480  }
 0x1f7   : > { %v1093_v37 = vsel %vm1092_vm8, 0.0, %v1088_v33  ;;  %v1102_v2 = vmax.f32 %v1100_v31, %v1101_v9  ;;  %v1114_v55 = vmax.f32 %v1112_v4, %v1113_v14  ;;  %vm1120_vm2 = vcmp.eq.s32.totalorder %v1119_v48, 1 }
 0x1f8   : > { %v1182_v0 = vsel %vm4630_vm12, %v1181_v39, %v1093_v37 }
 0x1f9   : > { %v1115_v25 = vrot.slane %v1114_v55, 1  ;;  %v1107_v16 = vsel %vm1106_vm15, 0.0, %v1102_v2 }
 0x1fa   : > { %v1183_v29 = vsel %vm1146_vm14, %v1182_v0, %v1107_v16 }
 0x1fb   : > { %v1116_v63 = vmax.f32 %v1114_v55, %v1115_v25 }
 0x1fd   : > { %v1121_v3 = vsel %vm1120_vm2, 0.0, %v1116_v63 }
 0x1fe   : > { %v1184_v40 = vsel %vm1148_vm1, %v1183_v29, %v1121_v3 }
 0x1ff   : > { %1190 = vst.msk [vmem:[%s2728_s16 + $0x28] sm:$0xff] %vm4633_vm0, %v1184_v40 }
 0x200   : > { %1935 = shalt.err (!%p1932_p13)
}
 0x201   : > { %s1936_s16 = scalar_lea.hbm %s4114_s21, 896  ;;  %s1940_s13 = scalar_lea.hbm %s4632_s9, 5376 }
 0x202   : > { %p1937_p12 = scmp.ne.s32.totalorder %s4114_s21, %s1936_s16  ;;  %p1941_p2 = scmp.lt.u32.totalorder %s4114_s21, %s4632_s9 }
 0x203   : > { %p1942_p1 = scmp.lt.u32.totalorder %s1940_s13, %s1936_s16  ;;  %p1944_p0 = scmp.lt.u32.totalorder %s1936_s16, %s4114_s21 }
 0x204   : > { %p1938_p7 = pnand %p1937_p12, %p4635_p4 }
 0x205   : > { %p1943_p6 = por %p1942_p1, %p1941_p2 }
 0x206   : > { %p1939_p9 = pneg %p1938_p7 }
 0x207   : > { %p1945_p8 = por %p1944_p0, %p1943_p6 }
 0x209   : > { %p1946_p10 = pnand %p1945_p8, %p1939_p9 }
 0x20b   : > { %1949 = shalt.err (!%p1946_p10)
}
 0x20c   : > { %s2321_s14 = smov 128   ;;  %s2322_s5 = smov 8  }
 0x20d   : > { %1459 = dma.vmem_to_hbm [thread:$0]  (%p4635_p4), %s4109_s2, 896, %s4114_s21, %s4121_s0, %s2321_s14, %s2321_s14, %s2322_s5  }
 0x20e PF: > { %s4636_s19 = sld [smem:[#allocation24_spill]]  ;;  %s4637_s17 = sld [smem:[#allocation18_spill]] }
 0x20f   : > { %s4638_s7 = sld [smem:[#allocation28_spill]] }
 0x214   : > { %p1472_p5 = scmp.ge.s32.totalorder %s4636_s19, 2  ;;  %s1223_s6 = sand.u32 1, %s4637_s17  }
 0x215   : > { %p4639_p11 = scmp.ne.s32.totalorder %s4638_s7, 0  ;;  %s1224_s25 = scalar_lea.sflag [#allocation11], %s1223_s6 }
 0x217   : > { %p1468_p3 = pnand %p1472_p5, %p4639_p11 }
 0x219   : > { %2133 = dma.done.wait (!%p1468_p3), %s1224_s25, 896  }
 0x21a   : > { %2135 = vsyncadd (!%p1468_p3), %s1224_s25, 4294966400  ;;  %s42_s30 = sadd.s32 1, %s4636_s19   ;;  %s4640_s23 = sld [smem:[#allocation19_spill]] }
 0x21b   : > { %p39_p13 = scmp.ge.s32.totalorder %s42_s30, 8   ;;  %s4641_s4 = sld [smem:[#allocation20_spill]] }
 0x21c   : > { %s4642_s24 = sld [smem:[#allocation26_spill]]  ;;  %s4643_s25 = sld [smem:[#allocation21_spill]] }
 0x21d   : > { %s4644_s26 = sld [smem:[#allocation22_spill]]  ;;  %s4645_s27 = sld [smem:[#allocation29_spill]] }
 0x21e   : > { %s4646_s28 = sld [smem:[#allocation23_spill]]  ;;  %s4647_s29 = sld [smem:[#allocation25_spill]] }
 0x21f   :  { %41 = sbr.rel (!%p39_p13) target bundleno = 62 (0x3e), region = 209 }
 0x226   :  { %1229 = vsyncpa [#allocation10], 1 }
 0x227   :  { %1231 = vsyncpa [#allocation10 + $0x1], 1 }
 0x228   :  { %1232 = vsyncpa [#allocation11], 1 }
 0x229   :  { %1234 = vsyncpa [#allocation11 + $0x1], 1 }

</bundles_post_ra>
